<compile_context>
chip_gen: v7x
topology: tpu7x:2x2x1
jax: 0.10.0
libtpu: 0.0.40
codegen_flags: <defaults>
</compile_context>

<pallas_src>
import functools

import jax
import jax.numpy as jnp
from jax import lax
from jax.experimental import pallas as pl
from jax.experimental.pallas import tpu as pltpu


def _silu(x):
    return x * jax.nn.sigmoid(x)


def _pick_row_tile(m, target=512):
    """Largest row tile <= target that divides m (keeps pipelining, avoids TM=M blowup)."""
    if m <= target:
        return m
    for cand in (target, 384, 256, 128, 64, 32, 16, 8):
        if m % cand == 0:
            return cand
    # TODO(synk): masked/padded last tile for ragged row counts.
    return m


# ---------------------------------------------------------------------------
# Kernel 1: 1x1 conv_pw as a row-tiled matmul + folded BN + SiLU.
# ---------------------------------------------------------------------------
def _pw_kernel(x_ref, w_ref, scale_ref, bias_ref, o_ref, *, apply_silu):
    y = jnp.dot(x_ref[...].astype(jnp.float32), w_ref[...].astype(jnp.float32),
                preferred_element_type=jnp.float32)
    y = y * scale_ref[...] + bias_ref[...]
    if apply_silu:
        y = _silu(y)
    o_ref[...] = y.astype(o_ref.dtype)


def pointwise_conv_bn(x2d, w, scale, bias, *, apply_silu, out_dtype):
    M, Cin = x2d.shape
    Cout = w.shape[1]
    TM = _pick_row_tile(M)
    return pl.pallas_call(
        functools.partial(_pw_kernel, apply_silu=apply_silu),
        out_shape=jax.ShapeDtypeStruct((M, Cout), out_dtype),
        grid=(M // TM,),
        in_specs=[
            pl.BlockSpec((TM, Cin), lambda i: (i, 0)),
            pl.BlockSpec((Cin, Cout), lambda i: (0, 0)),
            pl.BlockSpec((1, Cout), lambda i: (0, 0)),
            pl.BlockSpec((1, Cout), lambda i: (0, 0)),
        ],
        out_specs=pl.BlockSpec((TM, Cout), lambda i: (i, 0)),
        compiler_params=pltpu.CompilerParams(dimension_semantics=("parallel",)),
    )(x2d, w, scale, bias)


# ---------------------------------------------------------------------------
# Kernel 2: depthwise kxk conv (strided output computed directly) + folded BN +
#           SiLU, with in-VMEM zero padding and a fused global-average pool
#           (second output) feeding the SqueezeExcite gate.
# ---------------------------------------------------------------------------
def _dw_kernel(x_ref, w_ref, scale_ref, bias_ref, o_ref, pool_ref, xp_ref, *,
               k, stride, H, W, Ho, Wo):
    pad = k // 2
    C = scale_ref.shape[-1]

    # Zero-padded input built in VMEM scratch: no jnp.pad HBM round trip.
    xp_ref[...] = jnp.zeros_like(xp_ref)
    xp_ref[pad:pad + H, pad:pad + W, :] = x_ref[0].astype(jnp.float32)

    acc = jnp.zeros((Ho, Wo, C), jnp.float32)
    for dy in range(k):
        for dx in range(k):
            if stride == 1:
                tap = xp_ref[dy:dy + Ho, dx:dx + Wo, :]
            else:
                # Only the strided output positions are read / computed.
                tap = xp_ref[pl.ds(dy, Ho, stride=stride),
                             pl.ds(dx, Wo, stride=stride), :]
            wt = w_ref[dy, dx, :].reshape(1, 1, C).astype(jnp.float32)
            acc = acc + tap * wt

    y = acc * scale_ref[...].reshape(1, 1, C) + bias_ref[...].reshape(1, 1, C)
    y = _silu(y)
    o_ref[0] = y.astype(o_ref.dtype)
    # Fused SqueezeExcite global average pool (per image, per channel).
    pool_ref[...] = jnp.mean(y, axis=(0, 1), keepdims=True).astype(pool_ref.dtype)


def depthwise_conv_bn_act_pool(x, w, scale, bias, *, k, stride, out_dtype):
    N, H, W, C = x.shape
    pad = k // 2
    Hp, Wp = H + 2 * pad, W + 2 * pad
    Ho = (H + 2 * pad - k) // stride + 1
    Wo = (W + 2 * pad - k) // stride + 1

    y, pooled = pl.pallas_call(
        functools.partial(_dw_kernel, k=k, stride=stride, H=H, W=W, Ho=Ho, Wo=Wo),
        out_shape=(jax.ShapeDtypeStruct((N, Ho, Wo, C), out_dtype),
                   jax.ShapeDtypeStruct((N, 1, C), jnp.float32)),
        grid=(N,),
        in_specs=[
            pl.BlockSpec((1, H, W, C), lambda n: (n, 0, 0, 0)),
            pl.BlockSpec((k, k, C), lambda n: (0, 0, 0)),
            pl.BlockSpec((1, C), lambda n: (0, 0)),
            pl.BlockSpec((1, C), lambda n: (0, 0)),
        ],
        out_specs=(pl.BlockSpec((1, Ho, Wo, C), lambda n: (n, 0, 0, 0)),
                   pl.BlockSpec((1, 1, C), lambda n: (n, 0, 0))),
        scratch_shapes=[pltpu.VMEM((Hp, Wp, C), jnp.float32)],
        compiler_params=pltpu.CompilerParams(dimension_semantics=("parallel",)),
    )(x, w, scale, bias)
    return y, pooled


# ---------------------------------------------------------------------------
# Kernel 3: SqueezeExcite gate only (pool -> reduce 1x1 + SiLU -> expand 1x1 ->
#           sigmoid).  The (N, C) gate is tiny; the rescale of the big activation
#           is fused into the final pointwise conv instead of a full-size pass.
# ---------------------------------------------------------------------------
def _se_gate_kernel(p_ref, wr_ref, br_ref, we_ref, be_ref, g_ref):
    pooled = p_ref[...].astype(jnp.float32)                              # (N, C)
    z = _silu(jnp.dot(pooled, wr_ref[...], preferred_element_type=jnp.float32)
              + br_ref[...])
    g = jax.nn.sigmoid(jnp.dot(z, we_ref[...], preferred_element_type=jnp.float32)
                       + be_ref[...])
    g_ref[...] = g.astype(g_ref.dtype)


def se_gate(pooled2d, w_r, b_r, w_e, b_e):
    N, C = pooled2d.shape
    rd = w_r.shape[1]
    return pl.pallas_call(
        _se_gate_kernel,
        out_shape=jax.ShapeDtypeStruct((N, C), jnp.float32),
        grid=(1,),
        in_specs=[
            pl.BlockSpec((N, C), lambda i: (0, 0)),
            pl.BlockSpec((C, rd), lambda i: (0, 0)),
            pl.BlockSpec((1, rd), lambda i: (0, 0)),
            pl.BlockSpec((rd, C), lambda i: (0, 0)),
            pl.BlockSpec((1, C), lambda i: (0, 0)),
        ],
        out_specs=pl.BlockSpec((N, C), lambda i: (0, 0)),
    )(pooled2d, w_r, b_r, w_e, b_e)


# ---------------------------------------------------------------------------
# Kernel 4: 1x1 conv_pwl + folded bn3, with the SE gate applied to the matmul
#           input rows (fused rescale) and an optional fused residual add.
# ---------------------------------------------------------------------------
def _pwl_kernel(x_ref, g_ref, w_ref, scale_ref, bias_ref, o_ref):
    x = x_ref[0].astype(jnp.float32) * g_ref[0].astype(jnp.float32)
    y = jnp.dot(x, w_ref[...].astype(jnp.float32), preferred_element_type=jnp.float32)
    o_ref[0] = (y * scale_ref[...] + bias_ref[...]).astype(o_ref.dtype)


def _pwl_res_kernel(x_ref, g_ref, w_ref, scale_ref, bias_ref, res_ref, o_ref):
    x = x_ref[0].astype(jnp.float32) * g_ref[0].astype(jnp.float32)
    y = jnp.dot(x, w_ref[...].astype(jnp.float32), preferred_element_type=jnp.float32)
    y = y * scale_ref[...] + bias_ref[...] + res_ref[0].astype(jnp.float32)
    o_ref[0] = y.astype(o_ref.dtype)


def pointwise_conv_bn_gated(x3, g3, w, scale, bias, *, residual, out_dtype):
    N, M, Cin = x3.shape
    Cout = w.shape[1]
    TM = _pick_row_tile(M)

    in_specs = [
        pl.BlockSpec((1, TM, Cin), lambda n, i: (n, i, 0)),
        pl.BlockSpec((1, 1, Cin), lambda n, i: (n, 0, 0)),
        pl.BlockSpec((Cin, Cout), lambda n, i: (0, 0)),
        pl.BlockSpec((1, Cout), lambda n, i: (0, 0)),
        pl.BlockSpec((1, Cout), lambda n, i: (0, 0)),
    ]
    args = [x3, g3, w, scale, bias]
    if residual is None:
        kernel = _pwl_kernel
    else:
        kernel = _pwl_res_kernel
        in_specs.append(pl.BlockSpec((1, TM, Cout), lambda n, i: (n, i, 0)))
        args.append(residual)

    return pl.pallas_call(
        kernel,
        out_shape=jax.ShapeDtypeStruct((N, M, Cout), out_dtype),
        grid=(N, M // TM),
        in_specs=in_specs,
        out_specs=pl.BlockSpec((1, TM, Cout), lambda n, i: (n, i, 0)),
        compiler_params=pltpu.CompilerParams(
            dimension_semantics=("parallel", "parallel")),
    )(*args)


# ---------------------------------------------------------------------------
# Full InvertedResidual forward.
# ---------------------------------------------------------------------------
def inverted_residual_forward_nhwc(x, params, *, kernel_size, stride, carry_dtype=None):
    # carry_dtype controls the dtype of the inter-kernel activations (bf16 halves
    # HBM traffic on mem-bound shapes); f32 accumulation is kept inside kernels.
    carry_dtype = carry_dtype or x.dtype
    N, H, W, Cin = x.shape
    Cexp = params["w_pw"].shape[1]
    Cout = params["w_pwl"].shape[1]

    # 1) conv_pw (1x1) + bn1 + SiLU
    y2d = pointwise_conv_bn(
        x.reshape(N * H * W, Cin),
        params["w_pw"], params["bn1_scale"], params["bn1_bias"],
        apply_silu=True, out_dtype=carry_dtype)
    y = y2d.reshape(N, H, W, Cexp)

    # 2) conv_dw (kxk, stride) + bn2 + SiLU  (+ fused SE average pool)
    y, pooled = depthwise_conv_bn_act_pool(
        y, params["w_dw"], params["bn2_scale"], params["bn2_bias"],
        k=kernel_size, stride=stride, out_dtype=carry_dtype)
    Ho, Wo = y.shape[1], y.shape[2]

    # 3) SqueezeExcite gate (N, Cexp); rescale is fused into step 4.
    g = se_gate(pooled.reshape(N, Cexp),
                params["se_wr"], params["se_br"], params["se_we"], params["se_be"])

    # 4) conv_pwl (1x1) + bn3, fused SE rescale (+ residual when shapes match)
    residual = None
    if (Cin == Cout) and (Ho == H) and (Wo == W):
        residual = x.reshape(N, H * W, Cin)
    out = pointwise_conv_bn_gated(
        y.reshape(N, Ho * Wo, Cexp), g.reshape(N, 1, Cexp),
        params["w_pwl"], params["bn3_scale"], params["bn3_bias"],
        residual=residual, out_dtype=x.dtype)
    return out.reshape(N, Ho, Wo, Cout)


def inverted_residual_forward(x_nchw, params, *, kernel_size, stride, carry_dtype=None):
    # NCHW boundary to match the PyTorch module; chain blocks in NHWC to avoid this.
    x = jnp.transpose(x_nchw, (0, 2, 3, 1))
    out = inverted_residual_forward_nhwc(
        x, params, kernel_size=kernel_size, stride=stride, carry_dtype=carry_dtype)
    return jnp.transpose(out, (0, 3, 1, 2))


# ---------------------------------------------------------------------------
# Deterministic parameter construction (synthetic; shapes match the PyTorch module)
# ---------------------------------------------------------------------------
def make_params(key, in_chs, out_chs, kernel_size, exp_ratio=6, se_ratio=0.25, eps=1e-5):
    exp = in_chs * exp_ratio
    rd = max(1, int(exp * se_ratio))
    ks = jax.random.split(key, 20)

    def nrm(k, shape, s=0.1):
        return (s * jax.random.normal(k, shape)).astype(jnp.float32)

    def bn_fold(k0, k1, k2, k3, c):
        gamma = 1.0 + 0.1 * jax.random.normal(k0, (c,))
        beta = 0.1 * jax.random.normal(k1, (c,))
        rmean = 0.05 * jax.random.normal(k2, (c,))
        rvar = 1.0 + 0.1 * jax.random.uniform(k3, (c,))
        scale = gamma / jnp.sqrt(rvar + eps)
        bias = beta - rmean * scale
        return (scale.reshape(1, c).astype(jnp.float32),
                bias.reshape(1, c).astype(jnp.float32))

    bn1_scale, bn1_bias = bn_fold(ks[4], ks[5], ks[6], ks[7], exp)
    bn2_scale, bn2_bias = bn_fold(ks[8], ks[9], ks[10], ks[11], exp)
    bn3_scale, bn3_bias = bn_fold(ks[12], ks[13], ks[14], ks[15], out_chs)

    return dict(
        w_pw=nrm(ks[0], (in_chs, exp)),                   # torch: (exp, in, 1, 1)
        w_dw=nrm(ks[1], (kernel_size, kernel_size, exp)), # torch: (exp, 1, k, k), groups=exp
        w_pwl=nrm(ks[2], (exp, out_chs)),                 # torch: (out, exp, 1, 1)
        se_wr=nrm(ks[3], (exp, rd)),                      # torch: (rd, exp, 1, 1)
        se_br=nrm(ks[16], (1, rd)),
        se_we=nrm(ks[17], (rd, exp)),                     # torch: (exp, rd, 1, 1)
        se_be=nrm(ks[18], (1, exp)),
        bn1_scale=bn1_scale, bn1_bias=bn1_bias,
        bn2_scale=bn2_scale, bn2_bias=bn2_bias,
        bn3_scale=bn3_scale, bn3_bias=bn3_bias,
    )


# ---------------------------------------------------------------------------
# Pure-JAX reference (correctness check only)
# ---------------------------------------------------------------------------
def reference_forward(x_nchw, p, *, kernel_size, stride):
    hp = lax.Precision.HIGHEST
    x = jnp.transpose(x_nchw, (0, 2, 3, 1))
    Cexp = p["w_pw"].shape[1]

    y = jnp.einsum("nhwc,ce->nhwe", x, p["w_pw"], precision=hp)
    y = _silu(y * p["bn1_scale"].reshape(1, 1, 1, -1) + p["bn1_bias"].reshape(1, 1, 1, -1))

    dw = p["w_dw"].reshape(kernel_size, kernel_size, 1, Cexp)
    pad = kernel_size // 2
    y = lax.conv_general_dilated(
        y, dw, window_strides=(stride, stride),
        padding=[(pad, pad), (pad, pad)],
        dimension_numbers=("NHWC", "HWIO", "NHWC"),
        feature_group_count=Cexp, precision=hp)
    y = _silu(y * p["bn2_scale"].reshape(1, 1, 1, -1) + p["bn2_bias"].reshape(1, 1, 1, -1))

    pooled = jnp.mean(y, axis=(1, 2))
    z = _silu(jnp.dot(pooled, p["se_wr"], precision=hp) + p["se_br"])
    g = jax.nn.sigmoid(jnp.dot(z, p["se_we"], precision=hp) + p["se_be"])
    y = y * g[:, None, None, :]

    out = jnp.einsum("nhwe,eo->nhwo", y, p["w_pwl"], precision=hp)
    out = out * p["bn3_scale"].reshape(1, 1, 1, -1) + p["bn3_bias"].reshape(1, 1, 1, -1)
    if out.shape == x.shape:
        out = out + x
    return jnp.transpose(out, (0, 3, 1, 2))


if __name__ == "__main__":
    key = jax.random.PRNGKey(0)

    def run_case(in_chs, out_chs, kernel_size, stride, N=2, H=16, W=16):
        kx, kp = jax.random.split(
            jax.random.fold_in(key, 1000 * in_chs + 100 * out_chs + 10 * kernel_size + stride))
        x = jax.random.normal(kx, (N, in_chs, H, W), dtype=jnp.float32)   # NCHW
        params = make_params(kp, in_chs, out_chs, kernel_size)

        fwd = jax.jit(functools.partial(inverted_residual_forward,
                                        kernel_size=kernel_size, stride=stride))
        out = jax.block_until_ready(fwd(x, params))
        ref = jax.block_until_ready(
            reference_forward(x, params, kernel_size=kernel_size, stride=stride))

        assert out.shape == ref.shape, (out.shape, ref.shape)
        err = float(jnp.max(jnp.abs(out - ref)))
        assert jnp.allclose(out, ref, rtol=1e-4, atol=1e-4), err

    # Case 1: stride 1, in==out -> residual path (N=2, C=4, 16x16, k=3, exp=24, rd=6).
    run_case(4, 4, 3, 1)
    # Case 2: stride 2, in!=out -> strided depthwise output, no residual.
    run_case(4, 8, 3, 2)

    print("KERNEL_OK")
</pallas_src>

<mosaic_0001>
module attributes {stable_mosaic.version = 11 : i64} {
  func.func @_dw_kernel(%arg0: i32, %arg1: memref<1x16x16x24xf32, #tpu.memory_space<vmem>>, %arg2: memref<3x3x24xf32, #tpu.memory_space<vmem>>, %arg3: memref<1x24xf32, #tpu.memory_space<vmem>>, %arg4: memref<1x24xf32, #tpu.memory_space<vmem>>, %arg5: memref<1x16x16x24xf32, #tpu.memory_space<vmem>>, %arg6: memref<1x1x24xf32, #tpu.memory_space<vmem>>, %arg7: memref<18x18x24xf32, #tpu.memory_space<vmem>>) attributes {dimension_semantics = [#tpu.dimension_semantics<parallel>], iteration_bounds = array<i64: 2>, scalar_prefetch = 0 : i64, scratch_operands = 1 : i64, tpu.core_type = #tpu.core_type<tc>, window_params = [{transform_indices = @transform_0, window_bounds = array<i64: 1, 16, 16, 24>}, {pipeline_mode = #tpu.pipeline_mode<synchronous>, transform_indices = @transform_1, window_bounds = array<i64: 3, 3, 24>}, {pipeline_mode = #tpu.pipeline_mode<synchronous>, transform_indices = @transform_2, window_bounds = array<i64: 1, 24>}, {pipeline_mode = #tpu.pipeline_mode<synchronous>, transform_indices = @transform_3, window_bounds = array<i64: 1, 24>}, {transform_indices = @transform_4, window_bounds = array<i64: 1, 16, 16, 24>}, {transform_indices = @transform_5, window_bounds = array<i64: 1, 1, 24>}]} {
    %cst = arith.constant 0.000000e+00 : f32
    %0 = vector.broadcast %cst : f32 to vector<18x18x24xf32>
    %c0 = arith.constant 0 : index
    %c0_0 = arith.constant 0 : index
    %c0_1 = arith.constant 0 : index
    %1 = vector.load %arg7[%c0, %c0_0, %c0_1] : memref<18x18x24xf32, #tpu.memory_space<vmem>>, vector<18x18x24xf32>
    tpu.vector_store %arg7[%c0, %c0_0, %c0_1], %0 {strides = array<i32>} : memref<18x18x24xf32, #tpu.memory_space<vmem>>, vector<18x18x24xf32>,
    %c0_2 = arith.constant 0 : index
    %c0_3 = arith.constant 0 : index
    %c0_4 = arith.constant 0 : index
    %c0_5 = arith.constant 0 : index
    %2 = vector.load %arg1[%c0_2, %c0_3, %c0_4, %c0_5] : memref<1x16x16x24xf32, #tpu.memory_space<vmem>>, vector<1x16x16x24xf32>
    %3 = vector.shape_cast %2 : vector<1x16x16x24xf32> to vector<16x16x24xf32>
    %c1 = arith.constant 1 : index
    %c1_6 = arith.constant 1 : index
    %c0_7 = arith.constant 0 : index
    %4 = vector.load %arg7[%c1, %c1_6, %c0_7] : memref<18x18x24xf32, #tpu.memory_space<vmem>>, vector<16x16x24xf32>
    tpu.vector_store %arg7[%c1, %c1_6, %c0_7], %3 {strides = array<i32>} : memref<18x18x24xf32, #tpu.memory_space<vmem>>, vector<16x16x24xf32>,
    %cst_8 = arith.constant 0.000000e+00 : f32
    %5 = vector.broadcast %cst_8 : f32 to vector<16x16x24xf32>
    %c0_9 = arith.constant 0 : index
    %c0_10 = arith.constant 0 : index
    %c0_11 = arith.constant 0 : index
    %6 = vector.load %arg7[%c0_9, %c0_10, %c0_11] : memref<18x18x24xf32, #tpu.memory_space<vmem>>, vector<16x16x24xf32>
    %c0_12 = arith.constant 0 : index
    %c0_13 = arith.constant 0 : index
    %c0_14 = arith.constant 0 : index
    %7 = vector.load %arg2[%c0_12, %c0_13, %c0_14] : memref<3x3x24xf32, #tpu.memory_space<vmem>>, vector<1x1x24xf32>
    %8 = vector.shape_cast %7 : vector<1x1x24xf32> to vector<24xf32>
    %9 = vector.shape_cast %8 : vector<24xf32> to vector<1x1x24xf32>
    %10 = vector.broadcast %9 : vector<1x1x24xf32> to vector<16x16x24xf32>
    %11 = arith.mulf %6, %10 : vector<16x16x24xf32>
    %12 = arith.addf %5, %11 : vector<16x16x24xf32>
    %c0_15 = arith.constant 0 : index
    %c1_16 = arith.constant 1 : index
    %c0_17 = arith.constant 0 : index
    %13 = vector.load %arg7[%c0_15, %c1_16, %c0_17] : memref<18x18x24xf32, #tpu.memory_space<vmem>>, vector<16x16x24xf32>
    %c0_18 = arith.constant 0 : index
    %c1_19 = arith.constant 1 : index
    %c0_20 = arith.constant 0 : index
    %14 = vector.load %arg2[%c0_18, %c1_19, %c0_20] : memref<3x3x24xf32, #tpu.memory_space<vmem>>, vector<1x1x24xf32>
    %15 = vector.shape_cast %14 : vector<1x1x24xf32> to vector<24xf32>
    %16 = vector.shape_cast %15 : vector<24xf32> to vector<1x1x24xf32>
    %17 = vector.broadcast %16 : vector<1x1x24xf32> to vector<16x16x24xf32>
    %18 = arith.mulf %13, %17 : vector<16x16x24xf32>
    %19 = arith.addf %12, %18 : vector<16x16x24xf32>
    %c0_21 = arith.constant 0 : index
    %c2 = arith.constant 2 : index
    %c0_22 = arith.constant 0 : index
    %20 = vector.load %arg7[%c0_21, %c2, %c0_22] : memref<18x18x24xf32, #tpu.memory_space<vmem>>, vector<16x16x24xf32>
    %c0_23 = arith.constant 0 : index
    %c2_24 = arith.constant 2 : index
    %c0_25 = arith.constant 0 : index
    %21 = vector.load %arg2[%c0_23, %c2_24, %c0_25] : memref<3x3x24xf32, #tpu.memory_space<vmem>>, vector<1x1x24xf32>
    %22 = vector.shape_cast %21 : vector<1x1x24xf32> to vector<24xf32>
    %23 = vector.shape_cast %22 : vector<24xf32> to vector<1x1x24xf32>
    %24 = vector.broadcast %23 : vector<1x1x24xf32> to vector<16x16x24xf32>
    %25 = arith.mulf %20, %24 : vector<16x16x24xf32>
    %26 = arith.addf %19, %25 : vector<16x16x24xf32>
    %c1_26 = arith.constant 1 : index
    %c0_27 = arith.constant 0 : index
    %c0_28 = arith.constant 0 : index
    %27 = vector.load %arg7[%c1_26, %c0_27, %c0_28] : memref<18x18x24xf32, #tpu.memory_space<vmem>>, vector<16x16x24xf32>
    %c1_29 = arith.constant 1 : index
    %c0_30 = arith.constant 0 : index
    %c0_31 = arith.constant 0 : index
    %28 = vector.load %arg2[%c1_29, %c0_30, %c0_31] : memref<3x3x24xf32, #tpu.memory_space<vmem>>, vector<1x1x24xf32>
    %29 = vector.shape_cast %28 : vector<1x1x24xf32> to vector<24xf32>
    %30 = vector.shape_cast %29 : vector<24xf32> to vector<1x1x24xf32>
    %31 = vector.broadcast %30 : vector<1x1x24xf32> to vector<16x16x24xf32>
    %32 = arith.mulf %27, %31 : vector<16x16x24xf32>
    %33 = arith.addf %26, %32 : vector<16x16x24xf32>
    %c1_32 = arith.constant 1 : index
    %c1_33 = arith.constant 1 : index
    %c0_34 = arith.constant 0 : index
    %34 = vector.load %arg7[%c1_32, %c1_33, %c0_34] : memref<18x18x24xf32, #tpu.memory_space<vmem>>, vector<16x16x24xf32>
    %c1_35 = arith.constant 1 : index
    %c1_36 = arith.constant 1 : index
    %c0_37 = arith.constant 0 : index
    %35 = vector.load %arg2[%c1_35, %c1_36, %c0_37] : memref<3x3x24xf32, #tpu.memory_space<vmem>>, vector<1x1x24xf32>
    %36 = vector.shape_cast %35 : vector<1x1x24xf32> to vector<24xf32>
    %37 = vector.shape_cast %36 : vector<24xf32> to vector<1x1x24xf32>
    %38 = vector.broadcast %37 : vector<1x1x24xf32> to vector<16x16x24xf32>
    %39 = arith.mulf %34, %38 : vector<16x16x24xf32>
    %40 = arith.addf %33, %39 : vector<16x16x24xf32>
    %c1_38 = arith.constant 1 : index
    %c2_39 = arith.constant 2 : index
    %c0_40 = arith.constant 0 : index
    %41 = vector.load %arg7[%c1_38, %c2_39, %c0_40] : memref<18x18x24xf32, #tpu.memory_space<vmem>>, vector<16x16x24xf32>
    %c1_41 = arith.constant 1 : index
    %c2_42 = arith.constant 2 : index
    %c0_43 = arith.constant 0 : index
    %42 = vector.load %arg2[%c1_41, %c2_42, %c0_43] : memref<3x3x24xf32, #tpu.memory_space<vmem>>, vector<1x1x24xf32>
    %43 = vector.shape_cast %42 : vector<1x1x24xf32> to vector<24xf32>
    %44 = vector.shape_cast %43 : vector<24xf32> to vector<1x1x24xf32>
    %45 = vector.broadcast %44 : vector<1x1x24xf32> to vector<16x16x24xf32>
    %46 = arith.mulf %41, %45 : vector<16x16x24xf32>
    %47 = arith.addf %40, %46 : vector<16x16x24xf32>
    %c2_44 = arith.constant 2 : index
    %c0_45 = arith.constant 0 : index
    %c0_46 = arith.constant 0 : index
    %48 = vector.load %arg7[%c2_44, %c0_45, %c0_46] : memref<18x18x24xf32, #tpu.memory_space<vmem>>, vector<16x16x24xf32>
    %c2_47 = arith.constant 2 : index
    %c0_48 = arith.constant 0 : index
    %c0_49 = arith.constant 0 : index
    %49 = vector.load %arg2[%c2_47, %c0_48, %c0_49] : memref<3x3x24xf32, #tpu.memory_space<vmem>>, vector<1x1x24xf32>
    %50 = vector.shape_cast %49 : vector<1x1x24xf32> to vector<24xf32>
    %51 = vector.shape_cast %50 : vector<24xf32> to vector<1x1x24xf32>
    %52 = vector.broadcast %51 : vector<1x1x24xf32> to vector<16x16x24xf32>
    %53 = arith.mulf %48, %52 : vector<16x16x24xf32>
    %54 = arith.addf %47, %53 : vector<16x16x24xf32>
    %c2_50 = arith.constant 2 : index
    %c1_51 = arith.constant 1 : index
    %c0_52 = arith.constant 0 : index
    %55 = vector.load %arg7[%c2_50, %c1_51, %c0_52] : memref<18x18x24xf32, #tpu.memory_space<vmem>>, vector<16x16x24xf32>
    %c2_53 = arith.constant 2 : index
    %c1_54 = arith.constant 1 : index
    %c0_55 = arith.constant 0 : index
    %56 = vector.load %arg2[%c2_53, %c1_54, %c0_55] : memref<3x3x24xf32, #tpu.memory_space<vmem>>, vector<1x1x24xf32>
    %57 = vector.shape_cast %56 : vector<1x1x24xf32> to vector<24xf32>
    %58 = vector.shape_cast %57 : vector<24xf32> to vector<1x1x24xf32>
    %59 = vector.broadcast %58 : vector<1x1x24xf32> to vector<16x16x24xf32>
    %60 = arith.mulf %55, %59 : vector<16x16x24xf32>
    %61 = arith.addf %54, %60 : vector<16x16x24xf32>
    %c2_56 = arith.constant 2 : index
    %c2_57 = arith.constant 2 : index
    %c0_58 = arith.constant 0 : index
    %62 = vector.load %arg7[%c2_56, %c2_57, %c0_58] : memref<18x18x24xf32, #tpu.memory_space<vmem>>, vector<16x16x24xf32>
    %c2_59 = arith.constant 2 : index
    %c2_60 = arith.constant 2 : index
    %c0_61 = arith.constant 0 : index
    %63 = vector.load %arg2[%c2_59, %c2_60, %c0_61] : memref<3x3x24xf32, #tpu.memory_space<vmem>>, vector<1x1x24xf32>
    %64 = vector.shape_cast %63 : vector<1x1x24xf32> to vector<24xf32>
    %65 = vector.shape_cast %64 : vector<24xf32> to vector<1x1x24xf32>
    %66 = vector.broadcast %65 : vector<1x1x24xf32> to vector<16x16x24xf32>
    %67 = arith.mulf %62, %66 : vector<16x16x24xf32>
    %68 = arith.addf %61, %67 : vector<16x16x24xf32>
    %c0_62 = arith.constant 0 : index
    %c0_63 = arith.constant 0 : index
    %69 = vector.load %arg3[%c0_62, %c0_63] : memref<1x24xf32, #tpu.memory_space<vmem>>, vector<1x24xf32>
    %70 = vector.shape_cast %69 : vector<1x24xf32> to vector<1x1x24xf32>
    %71 = vector.broadcast %70 : vector<1x1x24xf32> to vector<16x16x24xf32>
    %72 = arith.mulf %68, %71 : vector<16x16x24xf32>
    %c0_64 = arith.constant 0 : index
    %c0_65 = arith.constant 0 : index
    %73 = vector.load %arg4[%c0_64, %c0_65] : memref<1x24xf32, #tpu.memory_space<vmem>>, vector<1x24xf32>
    %74 = vector.shape_cast %73 : vector<1x24xf32> to vector<1x1x24xf32>
    %75 = vector.broadcast %74 : vector<1x1x24xf32> to vector<16x16x24xf32>
    %76 = arith.addf %72, %75 : vector<16x16x24xf32>
    %77 = arith.negf %76 : vector<16x16x24xf32>
    %78 = math.exp %77 : vector<16x16x24xf32>
    %cst_66 = arith.constant 1.000000e+00 : f32
    %79 = vector.broadcast %cst_66 : f32 to vector<16x16x24xf32>
    %80 = arith.addf %79, %78 : vector<16x16x24xf32>
    %81 = arith.divf %79, %80 : vector<16x16x24xf32>
    %82 = arith.mulf %76, %81 : vector<16x16x24xf32>
    %c0_67 = arith.constant 0 : index
    %c0_68 = arith.constant 0 : index
    %c0_69 = arith.constant 0 : index
    %c0_70 = arith.constant 0 : index
    %83 = vector.load %arg5[%c0_67, %c0_68, %c0_69, %c0_70] : memref<1x16x16x24xf32, #tpu.memory_space<vmem>>, vector<1x16x16x24xf32>
    %84 = vector.shape_cast %83 : vector<1x16x16x24xf32> to vector<16x16x24xf32>
    %85 = vector.shape_cast %82 : vector<16x16x24xf32> to vector<1x16x16x24xf32>
    tpu.vector_store %arg5[%c0_67, %c0_68, %c0_69, %c0_70], %85 {strides = array<i32>} : memref<1x16x16x24xf32, #tpu.memory_space<vmem>>, vector<1x16x16x24xf32>,
    %cst_71 = arith.constant dense<0.000000e+00> : vector<24xf32>
    %86 = vector.multi_reduction <add>, %82, %cst_71 [0, 1] : vector<16x16x24xf32> to vector<24xf32>
    %87 = vector.shape_cast %86 : vector<24xf32> to vector<1x1x24xf32>
    %cst_72 = arith.constant 2.560000e+02 : f32
    %88 = vector.broadcast %cst_72 : f32 to vector<1x1x24xf32>
    %89 = arith.divf %87, %88 : vector<1x1x24xf32>
    %c0_73 = arith.constant 0 : index
    %c0_74 = arith.constant 0 : index
    %c0_75 = arith.constant 0 : index
    %90 = vector.load %arg6[%c0_73, %c0_74, %c0_75] : memref<1x1x24xf32, #tpu.memory_space<vmem>>, vector<1x1x24xf32>
    tpu.vector_store %arg6[%c0_73, %c0_74, %c0_75], %89 {strides = array<i32>} : memref<1x1x24xf32, #tpu.memory_space<vmem>>, vector<1x1x24xf32>,
    return
  }
  func.func @transform_0(%arg0: i32) -> (i32, i32, i32, i32) {
    %c0_i32 = arith.constant 0 : i32
    %c0_i32_0 = arith.constant 0 : i32
    %c0_i32_1 = arith.constant 0 : i32
    %c0_i32_2 = arith.constant 0 : i32
    return %arg0, %c0_i32, %c0_i32_0, %c0_i32_1 : i32, i32, i32, i32
  }
  func.func @transform_1(%arg0: i32) -> (i32, i32, i32) {
    %c0_i32 = arith.constant 0 : i32
    %c0_i32_0 = arith.constant 0 : i32
    %c0_i32_1 = arith.constant 0 : i32
    %c0_i32_2 = arith.constant 0 : i32
    return %c0_i32, %c0_i32_0, %c0_i32_1 : i32, i32, i32
  }
  func.func @transform_2(%arg0: i32) -> (i32, i32) {
    %c0_i32 = arith.constant 0 : i32
    %c0_i32_0 = arith.constant 0 : i32
    %c0_i32_1 = arith.constant 0 : i32
    return %c0_i32, %c0_i32_0 : i32, i32
  }
  func.func @transform_3(%arg0: i32) -> (i32, i32) {
    %c0_i32 = arith.constant 0 : i32
    %c0_i32_0 = arith.constant 0 : i32
    %c0_i32_1 = arith.constant 0 : i32
    return %c0_i32, %c0_i32_0 : i32, i32
  }
  func.func @transform_4(%arg0: i32) -> (i32, i32, i32, i32) {
    %c0_i32 = arith.constant 0 : i32
    %c0_i32_0 = arith.constant 0 : i32
    %c0_i32_1 = arith.constant 0 : i32
    %c0_i32_2 = arith.constant 0 : i32
    return %arg0, %c0_i32, %c0_i32_0, %c0_i32_1 : i32, i32, i32, i32
  }
  func.func @transform_5(%arg0: i32) -> (i32, i32, i32) {
    %c0_i32 = arith.constant 0 : i32
    %c0_i32_0 = arith.constant 0 : i32
    %c0_i32_1 = arith.constant 0 : i32
    return %arg0, %c0_i32, %c0_i32_0 : i32, i32, i32
  }
}

module attributes {stable_mosaic.version = 11 : i64} {
  func.func @_pw_kernel(%arg0: i32, %arg1: memref<512x4xf32, #tpu.memory_space<vmem>>, %arg2: memref<4x24xf32, #tpu.memory_space<vmem>>, %arg3: memref<1x24xf32, #tpu.memory_space<vmem>>, %arg4: memref<1x24xf32, #tpu.memory_space<vmem>>, %arg5: memref<512x24xf32, #tpu.memory_space<vmem>>) attributes {dimension_semantics = [#tpu.dimension_semantics<parallel>], iteration_bounds = array<i64: 1>, scalar_prefetch = 0 : i64, scratch_operands = 0 : i64, tpu.core_type = #tpu.core_type<tc>, window_params = [{transform_indices = @transform_0, window_bounds = array<i64: 512, 4>}, {pipeline_mode = #tpu.pipeline_mode<synchronous>, transform_indices = @transform_1, window_bounds = array<i64: 4, 24>}, {pipeline_mode = #tpu.pipeline_mode<synchronous>, transform_indices = @transform_2, window_bounds = array<i64: 1, 24>}, {pipeline_mode = #tpu.pipeline_mode<synchronous>, transform_indices = @transform_3, window_bounds = array<i64: 1, 24>}, {transform_indices = @transform_4, window_bounds = array<i64: 512, 24>}]} {
    %c0 = arith.constant 0 : index
    %c0_0 = arith.constant 0 : index
    %0 = vector.load %arg1[%c0, %c0_0] : memref<512x4xf32, #tpu.memory_space<vmem>>, vector<512x4xf32>
    %c0_1 = arith.constant 0 : index
    %c0_2 = arith.constant 0 : index
    %1 = vector.load %arg2[%c0_1, %c0_2] : memref<4x24xf32, #tpu.memory_space<vmem>>, vector<4x24xf32>
    %cst = arith.constant dense<0.000000e+00> : vector<512x24xf32>
    %2 = tpu.matmul %0, %1, %cst {dimension_numbers = #tpu.dot_dimension_numbers<[1], [0], [0], [1], [0, 0, 1, 1], [], []>} : vector<512x4xf32>, vector<4x24xf32>, vector<512x24xf32> -> vector<512x24xf32>
    %c0_3 = arith.constant 0 : index
    %c0_4 = arith.constant 0 : index
    %3 = vector.load %arg3[%c0_3, %c0_4] : memref<1x24xf32, #tpu.memory_space<vmem>>, vector<1x24xf32>
    %4 = vector.broadcast %3 : vector<1x24xf32> to vector<512x24xf32>
    %5 = arith.mulf %2, %4 : vector<512x24xf32>
    %c0_5 = arith.constant 0 : index
    %c0_6 = arith.constant 0 : index
    %6 = vector.load %arg4[%c0_5, %c0_6] : memref<1x24xf32, #tpu.memory_space<vmem>>, vector<1x24xf32>
    %7 = vector.broadcast %6 : vector<1x24xf32> to vector<512x24xf32>
    %8 = arith.addf %5, %7 : vector<512x24xf32>
    %9 = arith.negf %8 : vector<512x24xf32>
    %10 = math.exp %9 : vector<512x24xf32>
    %cst_7 = arith.constant 1.000000e+00 : f32
    %11 = vector.broadcast %cst_7 : f32 to vector<512x24xf32>
    %12 = arith.addf %11, %10 : vector<512x24xf32>
    %13 = arith.divf %11, %12 : vector<512x24xf32>
    %14 = arith.mulf %8, %13 : vector<512x24xf32>
    %c0_8 = arith.constant 0 : index
    %c0_9 = arith.constant 0 : index
    %15 = vector.load %arg5[%c0_8, %c0_9] : memref<512x24xf32, #tpu.memory_space<vmem>>, vector<512x24xf32>
    tpu.vector_store %arg5[%c0_8, %c0_9], %14 {strides = array<i32>} : memref<512x24xf32, #tpu.memory_space<vmem>>, vector<512x24xf32>,
    return
  }
  func.func @transform_0(%arg0: i32) -> (i32, i32) {
    %c0_i32 = arith.constant 0 : i32
    %c0_i32_0 = arith.constant 0 : i32
    return %arg0, %c0_i32 : i32, i32
  }
  func.func @transform_1(%arg0: i32) -> (i32, i32) {
    %c0_i32 = arith.constant 0 : i32
    %c0_i32_0 = arith.constant 0 : i32
    %c0_i32_1 = arith.constant 0 : i32
    return %c0_i32, %c0_i32_0 : i32, i32
  }
  func.func @transform_2(%arg0: i32) -> (i32, i32) {
    %c0_i32 = arith.constant 0 : i32
    %c0_i32_0 = arith.constant 0 : i32
    %c0_i32_1 = arith.constant 0 : i32
    return %c0_i32, %c0_i32_0 : i32, i32
  }
  func.func @transform_3(%arg0: i32) -> (i32, i32) {
    %c0_i32 = arith.constant 0 : i32
    %c0_i32_0 = arith.constant 0 : i32
    %c0_i32_1 = arith.constant 0 : i32
    return %c0_i32, %c0_i32_0 : i32, i32
  }
  func.func @transform_4(%arg0: i32) -> (i32, i32) {
    %c0_i32 = arith.constant 0 : i32
    %c0_i32_0 = arith.constant 0 : i32
    return %arg0, %c0_i32 : i32, i32
  }
}

module attributes {stable_mosaic.version = 11 : i64} {
  func.func @_se_gate_kernel(%arg0: i32, %arg1: memref<2x24xf32, #tpu.memory_space<vmem>>, %arg2: memref<24x6xf32, #tpu.memory_space<vmem>>, %arg3: memref<1x6xf32, #tpu.memory_space<vmem>>, %arg4: memref<6x24xf32, #tpu.memory_space<vmem>>, %arg5: memref<1x24xf32, #tpu.memory_space<vmem>>, %arg6: memref<2x24xf32, #tpu.memory_space<vmem>>) attributes {dimension_semantics = [#tpu.dimension_semantics<arbitrary>], iteration_bounds = array<i64: 1>, scalar_prefetch = 0 : i64, scratch_operands = 0 : i64, tpu.core_type = #tpu.core_type<tc>, window_params = [{pipeline_mode = #tpu.pipeline_mode<synchronous>, transform_indices = @transform_0, window_bounds = array<i64: 2, 24>}, {pipeline_mode = #tpu.pipeline_mode<synchronous>, transform_indices = @transform_1, window_bounds = array<i64: 24, 6>}, {pipeline_mode = #tpu.pipeline_mode<synchronous>, transform_indices = @transform_2, window_bounds = array<i64: 1, 6>}, {pipeline_mode = #tpu.pipeline_mode<synchronous>, transform_indices = @transform_3, window_bounds = array<i64: 6, 24>}, {pipeline_mode = #tpu.pipeline_mode<synchronous>, transform_indices = @transform_4, window_bounds = array<i64: 1, 24>}, {pipeline_mode = #tpu.pipeline_mode<synchronous>, transform_indices = @transform_5, window_bounds = array<i64: 2, 24>}]} {
    %c0 = arith.constant 0 : index
    %c0_0 = arith.constant 0 : index
    %0 = vector.load %arg1[%c0, %c0_0] : memref<2x24xf32, #tpu.memory_space<vmem>>, vector<2x24xf32>
    %c0_1 = arith.constant 0 : index
    %c0_2 = arith.constant 0 : index
    %1 = vector.load %arg2[%c0_1, %c0_2] : memref<24x6xf32, #tpu.memory_space<vmem>>, vector<24x6xf32>
    %cst = arith.constant dense<0.000000e+00> : vector<2x6xf32>
    %2 = tpu.matmul %0, %1, %cst {dimension_numbers = #tpu.dot_dimension_numbers<[1], [0], [0], [1], [0, 0, 1, 1], [], []>} : vector<2x24xf32>, vector<24x6xf32>, vector<2x6xf32> -> vector<2x6xf32>
    %c0_3 = arith.constant 0 : index
    %c0_4 = arith.constant 0 : index
    %3 = vector.load %arg3[%c0_3, %c0_4] : memref<1x6xf32, #tpu.memory_space<vmem>>, vector<1x6xf32>
    %4 = vector.broadcast %3 : vector<1x6xf32> to vector<2x6xf32>
    %5 = arith.addf %2, %4 : vector<2x6xf32>
    %6 = arith.negf %5 : vector<2x6xf32>
    %7 = math.exp %6 : vector<2x6xf32>
    %cst_5 = arith.constant 1.000000e+00 : f32
    %8 = vector.broadcast %cst_5 : f32 to vector<2x6xf32>
    %9 = arith.addf %8, %7 : vector<2x6xf32>
    %10 = arith.divf %8, %9 : vector<2x6xf32>
    %11 = arith.mulf %5, %10 : vector<2x6xf32>
    %c0_6 = arith.constant 0 : index
    %c0_7 = arith.constant 0 : index
    %12 = vector.load %arg4[%c0_6, %c0_7] : memref<6x24xf32, #tpu.memory_space<vmem>>, vector<6x24xf32>
    %cst_8 = arith.constant dense<0.000000e+00> : vector<2x24xf32>
    %13 = tpu.matmul %11, %12, %cst_8 {dimension_numbers = #tpu.dot_dimension_numbers<[1], [0], [0], [1], [0, 0, 1, 1], [], []>} : vector<2x6xf32>, vector<6x24xf32>, vector<2x24xf32> -> vector<2x24xf32>
    %c0_9 = arith.constant 0 : index
    %c0_10 = arith.constant 0 : index
    %14 = vector.load %arg5[%c0_9, %c0_10] : memref<1x24xf32, #tpu.memory_space<vmem>>, vector<1x24xf32>
    %15 = vector.broadcast %14 : vector<1x24xf32> to vector<2x24xf32>
    %16 = arith.addf %13, %15 : vector<2x24xf32>
    %17 = arith.negf %16 : vector<2x24xf32>
    %18 = math.exp %17 : vector<2x24xf32>
    %cst_11 = arith.constant 1.000000e+00 : f32
    %19 = vector.broadcast %cst_11 : f32 to vector<2x24xf32>
    %20 = arith.addf %19, %18 : vector<2x24xf32>
    %21 = arith.divf %19, %20 : vector<2x24xf32>
    %c0_12 = arith.constant 0 : index
    %c0_13 = arith.constant 0 : index
    %22 = vector.load %arg6[%c0_12, %c0_13] : memref<2x24xf32, #tpu.memory_space<vmem>>, vector<2x24xf32>
    tpu.vector_store %arg6[%c0_12, %c0_13], %21 {strides = array<i32>} : memref<2x24xf32, #tpu.memory_space<vmem>>, vector<2x24xf32>,
    return
  }
  func.func @transform_0(%arg0: i32) -> (i32, i32) {
    %c0_i32 = arith.constant 0 : i32
    %c0_i32_0 = arith.constant 0 : i32
    %c0_i32_1 = arith.constant 0 : i32
    return %c0_i32, %c0_i32_0 : i32, i32
  }
  func.func @transform_1(%arg0: i32) -> (i32, i32) {
    %c0_i32 = arith.constant 0 : i32
    %c0_i32_0 = arith.constant 0 : i32
    %c0_i32_1 = arith.constant 0 : i32
    return %c0_i32, %c0_i32_0 : i32, i32
  }
  func.func @transform_2(%arg0: i32) -> (i32, i32) {
    %c0_i32 = arith.constant 0 : i32
    %c0_i32_0 = arith.constant 0 : i32
    %c0_i32_1 = arith.constant 0 : i32
    return %c0_i32, %c0_i32_0 : i32, i32
  }
  func.func @transform_3(%arg0: i32) -> (i32, i32) {
    %c0_i32 = arith.constant 0 : i32
    %c0_i32_0 = arith.constant 0 : i32
    %c0_i32_1 = arith.constant 0 : i32
    return %c0_i32, %c0_i32_0 : i32, i32
  }
  func.func @transform_4(%arg0: i32) -> (i32, i32) {
    %c0_i32 = arith.constant 0 : i32
    %c0_i32_0 = arith.constant 0 : i32
    %c0_i32_1 = arith.constant 0 : i32
    return %c0_i32, %c0_i32_0 : i32, i32
  }
  func.func @transform_5(%arg0: i32) -> (i32, i32) {
    %c0_i32 = arith.constant 0 : i32
    %c0_i32_0 = arith.constant 0 : i32
    %c0_i32_1 = arith.constant 0 : i32
    return %c0_i32, %c0_i32_0 : i32, i32
  }
}

module attributes {stable_mosaic.version = 11 : i64} {
  func.func @_pwl_res_kernel(%arg0: i32, %arg1: i32, %arg2: memref<1x256x24xf32, #tpu.memory_space<vmem>>, %arg3: memref<1x1x24xf32, #tpu.memory_space<vmem>>, %arg4: memref<24x4xf32, #tpu.memory_space<vmem>>, %arg5: memref<1x4xf32, #tpu.memory_space<vmem>>, %arg6: memref<1x4xf32, #tpu.memory_space<vmem>>, %arg7: memref<1x256x4xf32, #tpu.memory_space<vmem>>, %arg8: memref<1x256x4xf32, #tpu.memory_space<vmem>>) attributes {dimension_semantics = [#tpu.dimension_semantics<parallel>, #tpu.dimension_semantics<parallel>], iteration_bounds = array<i64: 2, 1>, scalar_prefetch = 0 : i64, scratch_operands = 0 : i64, tpu.core_type = #tpu.core_type<tc>, window_params = [{transform_indices = @transform_0, window_bounds = array<i64: 1, 256, 24>}, {transform_indices = @transform_1, window_bounds = array<i64: 1, 1, 24>}, {pipeline_mode = #tpu.pipeline_mode<synchronous>, transform_indices = @transform_2, window_bounds = array<i64: 24, 4>}, {pipeline_mode = #tpu.pipeline_mode<synchronous>, transform_indices = @transform_3, window_bounds = array<i64: 1, 4>}, {pipeline_mode = #tpu.pipeline_mode<synchronous>, transform_indices = @transform_4, window_bounds = array<i64: 1, 4>}, {transform_indices = @transform_5, window_bounds = array<i64: 1, 256, 4>}, {transform_indices = @transform_6, window_bounds = array<i64: 1, 256, 4>}]} {
    %c0 = arith.constant 0 : index
    %c0_0 = arith.constant 0 : index
    %c0_1 = arith.constant 0 : index
    %0 = vector.load %arg2[%c0, %c0_0, %c0_1] : memref<1x256x24xf32, #tpu.memory_space<vmem>>, vector<1x256x24xf32>
    %1 = vector.shape_cast %0 : vector<1x256x24xf32> to vector<256x24xf32>
    %c0_2 = arith.constant 0 : index
    %c0_3 = arith.constant 0 : index
    %c0_4 = arith.constant 0 : index
    %2 = vector.load %arg3[%c0_2, %c0_3, %c0_4] : memref<1x1x24xf32, #tpu.memory_space<vmem>>, vector<1x1x24xf32>
    %3 = vector.shape_cast %2 : vector<1x1x24xf32> to vector<1x24xf32>
    %4 = vector.broadcast %3 : vector<1x24xf32> to vector<256x24xf32>
    %5 = arith.mulf %1, %4 : vector<256x24xf32>
    %c0_5 = arith.constant 0 : index
    %c0_6 = arith.constant 0 : index
    %6 = vector.load %arg4[%c0_5, %c0_6] : memref<24x4xf32, #tpu.memory_space<vmem>>, vector<24x4xf32>
    %cst = arith.constant dense<0.000000e+00> : vector<256x4xf32>
    %7 = tpu.matmul %5, %6, %cst {dimension_numbers = #tpu.dot_dimension_numbers<[1], [0], [0], [1], [0, 0, 1, 1], [], []>} : vector<256x24xf32>, vector<24x4xf32>, vector<256x4xf32> -> vector<256x4xf32>
    %c0_7 = arith.constant 0 : index
    %c0_8 = arith.constant 0 : index
    %8 = vector.load %arg5[%c0_7, %c0_8] : memref<1x4xf32, #tpu.memory_space<vmem>>, vector<1x4xf32>
    %9 = vector.broadcast %8 : vector<1x4xf32> to vector<256x4xf32>
    %10 = arith.mulf %7, %9 : vector<256x4xf32>
    %c0_9 = arith.constant 0 : index
    %c0_10 = arith.constant 0 : index
    %11 = vector.load %arg6[%c0_9, %c0_10] : memref<1x4xf32, #tpu.memory_space<vmem>>, vector<1x4xf32>
    %12 = vector.broadcast %11 : vector<1x4xf32> to vector<256x4xf32>
    %13 = arith.addf %10, %12 : vector<256x4xf32>
    %c0_11 = arith.constant 0 : index
    %c0_12 = arith.constant 0 : index
    %c0_13 = arith.constant 0 : index
    %14 = vector.load %arg7[%c0_11, %c0_12, %c0_13] : memref<1x256x4xf32, #tpu.memory_space<vmem>>, vector<1x256x4xf32>
    %15 = vector.shape_cast %14 : vector<1x256x4xf32> to vector<256x4xf32>
    %16 = arith.addf %13, %15 : vector<256x4xf32>
    %c0_14 = arith.constant 0 : index
    %c0_15 = arith.constant 0 : index
    %c0_16 = arith.constant 0 : index
    %17 = vector.load %arg8[%c0_14, %c0_15, %c0_16] : memref<1x256x4xf32, #tpu.memory_space<vmem>>, vector<1x256x4xf32>
    %18 = vector.shape_cast %17 : vector<1x256x4xf32> to vector<256x4xf32>
    %19 = vector.shape_cast %16 : vector<256x4xf32> to vector<1x256x4xf32>
    tpu.vector_store %arg8[%c0_14, %c0_15, %c0_16], %19 {strides = array<i32>} : memref<1x256x4xf32, #tpu.memory_space<vmem>>, vector<1x256x4xf32>,
    return
  }
  func.func @transform_0(%arg0: i32, %arg1: i32) -> (i32, i32, i32) {
    %c0_i32 = arith.constant 0 : i32
    %c0_i32_0 = arith.constant 0 : i32
    return %arg0, %arg1, %c0_i32 : i32, i32, i32
  }
  func.func @transform_1(%arg0: i32, %arg1: i32) -> (i32, i32, i32) {
    %c0_i32 = arith.constant 0 : i32
    %c0_i32_0 = arith.constant 0 : i32
    %c0_i32_1 = arith.constant 0 : i32
    return %arg0, %c0_i32, %c0_i32_0 : i32, i32, i32
  }
  func.func @transform_2(%arg0: i32, %arg1: i32) -> (i32, i32) {
    %c0_i32 = arith.constant 0 : i32
    %c0_i32_0 = arith.constant 0 : i32
    %c0_i32_1 = arith.constant 0 : i32
    return %c0_i32, %c0_i32_0 : i32, i32
  }
  func.func @transform_3(%arg0: i32, %arg1: i32) -> (i32, i32) {
    %c0_i32 = arith.constant 0 : i32
    %c0_i32_0 = arith.constant 0 : i32
    %c0_i32_1 = arith.constant 0 : i32
    return %c0_i32, %c0_i32_0 : i32, i32
  }
  func.func @transform_4(%arg0: i32, %arg1: i32) -> (i32, i32) {
    %c0_i32 = arith.constant 0 : i32
    %c0_i32_0 = arith.constant 0 : i32
    %c0_i32_1 = arith.constant 0 : i32
    return %c0_i32, %c0_i32_0 : i32, i32
  }
  func.func @transform_5(%arg0: i32, %arg1: i32) -> (i32, i32, i32) {
    %c0_i32 = arith.constant 0 : i32
    %c0_i32_0 = arith.constant 0 : i32
    return %arg0, %arg1, %c0_i32 : i32, i32, i32
  }
  func.func @transform_6(%arg0: i32, %arg1: i32) -> (i32, i32, i32) {
    %c0_i32 = arith.constant 0 : i32
    %c0_i32_0 = arith.constant 0 : i32
    return %arg0, %arg1, %c0_i32 : i32, i32, i32
  }
}

</mosaic_0001>

<bundles_post_ra>
// kernel: inverted_residual_forward.6
= control target key start
LH: loop header
LB: loop body
LE: loop exit
PB: predicated region body
PF: predicated region fallthrough
CT: control target
= control target key end

     0   :  { %v251_v0 = vmov 0.0|0.0   ;;  %vm252_vm0 = vmmov 0   ;;  %v253_v3 = vmov 0.0   ;;  %vm31_vm1 = vcmask 195584   ;;  %s308_s1 = inlined_call_operand.vmem [shape: f32[24,6], index: 1, kind: input, shape index: {}]   ;;  %s309_s0 = inlined_call_operand.vmem [shape: f32[2,24], index: 0, kind: input, shape index: {}]   ;;  %s310_s3 = inlined_call_operand.vmem [shape: f32[6,24], index: 3, kind: input, shape index: {}]   ;;  %s311_s2 = inlined_call_operand.vmem [shape: f32[1,6], index: 2, kind: input, shape index: {}]   ;;  %s312_s4 = inlined_call_operand.vmem [shape: f32[1,24], index: 4, kind: input, shape index: {}]   ;;  %s313_s5 = inlined_call_operand.vmem [shape: f32[2,24], index: 5, kind: output, shape index: {}]  }
   0x1   :  { %237 = vmatprep.subr.bf16.mxu0 %v251_v0  ;;  %v21_v1 = vld [vmem:[%s308_s1] sm:$0xff]  ;;  %v22_v2 = vld [vmem:[%s308_s1 + $0x8] sm:$0xff]  ;;  %229 = vmatprep.mubr.msk.f32.mxu0 %vm252_vm0, %v253_v3  ;;  %v23_v5 = vld [vmem:[%s308_s1 + $0x10] sm:$0xff]  ;;  %vm124_vm2 = vcmask 1045504   ;;  %vm120_vm3 = vcmask 48128   ;;  %vm204_vm4 = vcmask 189440  }
   0x2   :  { %v238_v4 = vpack.c.bf16 %v22_v2, %v21_v1  ;;  %232 = vmatprep.subr.mxu1 %v253_v3  ;;  %234 = vmatprep.mubr.msk.f32.mxu1 %vm252_vm0, %v253_v3  ;;  %v20_v6 = vld [vmem:[%s309_s0] sm:$0x3] }
   0x3   :  { %v112_v7 = vld [vmem:[%s310_s3] sm:$0x3f] }
   0x4   :  { %239 = vmatpush3.bf16.msra.mxu0 %v238_v4  ;;  %233 = vmatpush3.msk.msra.mxu1 %vm124_vm2, %v112_v7  ;;  %v210_v8 = vld [vmem:[%s311_s2] ss:$0 sm:$0xff] }
   0x5   :  { %227 = vmatprep.subr.mxu0 %v253_v3  ;;  %v213_v17 = vld [vmem:[%s312_s4] ss:$0 sm:$0xff] }
   0x8   :  { %228 = vmatpush3.msra.mxu0 %v23_v5 }
   0x9   :  { %230 = vmatmul.mubr.msk.f32.vlgmr.msra.gmra.mrb[0].mxu0 %vm31_vm1, %v20_v6 }
  0xdc   :  { %v101_v9 = vpop.f32.mrb[0].mxu0 }
  0xdd   :  { %v102_v10 = vadd.f32 %v210_v8, %v101_v9  ;;  %v231_v11 = vpop.f32.mrb[1].mxu0 }
  0xdf   :  { %v212_v12 = vmul.f32 -1.442695, %v102_v10 }
  0xe1   :  { %243 = vpow2.f32 %v212_v12 }
  0xeb   :  { %v244_v13 = vpop.eup %243 }
  0xec   :  { %v108_v14 = vadd.f32 1.0, %v244_v13 }
  0xee   :  { %245 = vrcp.f32 %v108_v14 }
  0xf8   :  { %v246_v15 = vpop.eup %245 }
  0xf9   :  { %v111_v16 = vmul.f32 %v246_v15, %v102_v10 }
  0xfb   :  { %235 = vmatmul.mubr.msk.f32.vlgmr.msra.gmra.mrb[0].mxu1 %vm120_vm3, %v111_v16 }
 0x1ce   :  { %v194_v18 = vpop.f32.mrb[0].mxu1 }
 0x1cf   :  { %v195_v19 = vadd.f32 %v213_v17, %v194_v18  ;;  %v236_v20 = vpop.f32.mrb[1].mxu1 }
 0x1d1   :  { %v216_v21 = vmul.f32 -1.442695, %v195_v19 }
 0x1d3   :  { %247 = vpow2.f32 %v216_v21 }
 0x1dd   :  { %v248_v22 = vpop.eup %247 }
 0x1de   :  { %v201_v23 = vadd.f32 1.0, %v248_v22 }
 0x1e0   :  { %249 = vrcp.f32 %v201_v23 }
 0x1ea   :  { %v250_v24 = vpop.eup %249 }
 0x1eb   :  { %205 = vst.msk [vmem:[%s313_s5] sm:$0x3] %vm204_vm4, %v250_v24 }

// kernel: inverted_residual_forward.4
= control target key start
LH: loop header
LB: loop body
LE: loop exit
PB: predicated region body
PF: predicated region fallthrough
CT: control target
= control target key end

     0   :  { %vm275_vm0 = vcmask 1043456   ;;  %vm82_vm1 = vcmask 31744   ;;  %vm1254_vm2 = vcmask 195584   ;;  %s2927_s1 = inlined_call_operand.vmem [shape: f32[4,24], index: 1, kind: input, shape index: {}]   ;;  %s2928_s0 = inlined_call_operand.vmem [shape: f32[512,4], index: 0, kind: input, shape index: {}]   ;;  %s2929_s2 = inlined_call_operand.vmem [shape: f32[1,24], index: 2, kind: input, shape index: {}]   ;;  %s2930_s3 = inlined_call_operand.vmem [shape: f32[1,24], index: 3, kind: input, shape index: {}]   ;;  %s2931_s4 = inlined_call_operand.vmem [shape: f32[512,24], index: 4, kind: output, shape index: {}]  }
   0x1   :  { %v81_v0 = vld [vmem:[%s2927_s1] sm:$0xf]  ;;  %v18_v3 = vld [vmem:[%s2928_s0 + $0x8] sm:$0xff]  ;;  %v19_v5 = vld [vmem:[%s2928_s0 + $0x10] sm:$0xff] }
   0x2   :  { %v17_v1 = vld [vmem:[%s2928_s0] sm:$0xff]  ;;  %1519 = vmatprep.subr.msk.mxu0 %vm275_vm0, %v81_v0  ;;  %1617 = vmatprep.subr.msk.mxu1 %vm275_vm0, %v81_v0  ;;  %v50_v4 = vld [vmem:[%s2928_s0 + $0x108] sm:$0xff]  ;;  %v51_v6 = vld [vmem:[%s2928_s0 + $0x110] sm:$0xff] }
   0x3   :  { %v49_v2 = vld [vmem:[%s2928_s0 + $0x100] sm:$0xff]  ;;  %1520 = vmatpush3.msk.msra.mxu0 %vm275_vm0, %v81_v0  ;;  %1618 = vmatpush3.msk.msra.mxu1 %vm275_vm0, %v81_v0  ;;  %v20_v7 = vld [vmem:[%s2928_s0 + $0x18] sm:$0xff]  ;;  %v22_v11 = vld [vmem:[%s2928_s0 + $0x28] sm:$0xff] }
   0x4   :  { %1521 = vmatprep.mubr.msk.f32.mxu0 %vm82_vm1, %v17_v1  ;;  %1569 = vmatprep.mubr.msk.f32.mxu1 %vm82_vm1, %v49_v2  ;;  %v52_v8 = vld [vmem:[%s2928_s0 + $0x118] sm:$0xff]  ;;  %v21_v9 = vld [vmem:[%s2928_s0 + $0x20] sm:$0xff]  ;;  %v54_v12 = vld [vmem:[%s2928_s0 + $0x128] sm:$0xff] }
   0x5   :  { %1522 = vmatmul.mubr.msk.f32.vlgmr.msra.gmra.mrb[0].mxu0 %vm82_vm1, %v18_v3  ;;  %1570 = vmatmul.mubr.msk.f32.vlgmr.msra.gmra.mrb[0].mxu1 %vm82_vm1, %v50_v4  ;;  %v53_v10 = vld [vmem:[%s2928_s0 + $0x120] sm:$0xff]  ;;  %v23_v13 = vld [vmem:[%s2928_s0 + $0x30] sm:$0xff]  ;;  %v24_v15 = vld [vmem:[%s2928_s0 + $0x38] sm:$0xff] }
   0x6   :  { %1524 = vmatprep.mubr.msk.f32.mxu0 %vm82_vm1, %v19_v5  ;;  %1572 = vmatprep.mubr.msk.f32.mxu1 %vm82_vm1, %v51_v6  ;;  %v55_v14 = vld [vmem:[%s2928_s0 + $0x130] sm:$0xff]  ;;  %v56_v16 = vld [vmem:[%s2928_s0 + $0x138] sm:$0xff]  ;;  %v25_v17 = vld [vmem:[%s2928_s0 + $0x40] sm:$0xff] }
   0x7   :  { %v57_v18 = vld [vmem:[%s2928_s0 + $0x140] sm:$0xff]  ;;  %v26_v19 = vld [vmem:[%s2928_s0 + $0x48] sm:$0xff]  ;;  %v27_v21 = vld [vmem:[%s2928_s0 + $0x50] sm:$0xff] }
   0x8   :  { %v58_v20 = vld [vmem:[%s2928_s0 + $0x148] sm:$0xff]  ;;  %v59_v22 = vld [vmem:[%s2928_s0 + $0x150] sm:$0xff]  ;;  %v28_v23 = vld [vmem:[%s2928_s0 + $0x58] sm:$0xff] }
   0x9   :  { %1525 = vmatmul.mubr.msk.f32.gmra.mrb[2].mxu0 %vm82_vm1, %v20_v7  ;;  %1573 = vmatmul.mubr.msk.f32.gmra.mrb[2].mxu1 %vm82_vm1, %v52_v8  ;;  %v60_v24 = vld [vmem:[%s2928_s0 + $0x158] sm:$0xff]  ;;  %v29_v25 = vld [vmem:[%s2928_s0 + $0x60] sm:$0xff]  ;;  %v30_v27 = vld [vmem:[%s2928_s0 + $0x68] sm:$0xff] }
   0xa   :  { %1527 = vmatprep.mubr.msk.f32.mxu0 %vm82_vm1, %v21_v9  ;;  %1575 = vmatprep.mubr.msk.f32.mxu1 %vm82_vm1, %v53_v10  ;;  %v61_v26 = vld [vmem:[%s2928_s0 + $0x160] sm:$0xff]  ;;  %v62_v28 = vld [vmem:[%s2928_s0 + $0x168] sm:$0xff]  ;;  %v31_v29 = vld [vmem:[%s2928_s0 + $0x70] sm:$0xff] }
   0xb   :  { %v63_v30 = vld [vmem:[%s2928_s0 + $0x170] sm:$0xff]  ;;  %v32_v31 = vld [vmem:[%s2928_s0 + $0x78] sm:$0xff]  ;;  %v33_v33 = vld [vmem:[%s2928_s0 + $0x80] sm:$0xff] }
   0xc   :  { %v64_v32 = vld [vmem:[%s2928_s0 + $0x178] sm:$0xff]  ;;  %v65_v34 = vld [vmem:[%s2928_s0 + $0x180] sm:$0xff]  ;;  %v34_v35 = vld [vmem:[%s2928_s0 + $0x88] sm:$0xff] }
   0xd   :  { %1528 = vmatmul.mubr.msk.f32.gmra.mrb[4].mxu0 %vm82_vm1, %v22_v11  ;;  %1576 = vmatmul.mubr.msk.f32.gmra.mrb[4].mxu1 %vm82_vm1, %v54_v12  ;;  %v66_v36 = vld [vmem:[%s2928_s0 + $0x188] sm:$0xff]  ;;  %v35_v37 = vld [vmem:[%s2928_s0 + $0x90] sm:$0xff]  ;;  %v36_v39 = vld [vmem:[%s2928_s0 + $0x98] sm:$0xff] }
   0xe   :  { %1530 = vmatprep.mubr.msk.f32.mxu0 %vm82_vm1, %v23_v13  ;;  %1578 = vmatprep.mubr.msk.f32.mxu1 %vm82_vm1, %v55_v14  ;;  %v67_v38 = vld [vmem:[%s2928_s0 + $0x190] sm:$0xff]  ;;  %v68_v40 = vld [vmem:[%s2928_s0 + $0x198] sm:$0xff]  ;;  %v37_v41 = vld [vmem:[%s2928_s0 + $0xa0] sm:$0xff] }
   0xf   :  { %v69_v42 = vld [vmem:[%s2928_s0 + $0x1a0] sm:$0xff]  ;;  %v38_v43 = vld [vmem:[%s2928_s0 + $0xa8] sm:$0xff]  ;;  %v39_v45 = vld [vmem:[%s2928_s0 + $0xb0] sm:$0xff] }
  0x10   :  { %v70_v44 = vld [vmem:[%s2928_s0 + $0x1a8] sm:$0xff]  ;;  %v71_v46 = vld [vmem:[%s2928_s0 + $0x1b0] sm:$0xff]  ;;  %v40_v47 = vld [vmem:[%s2928_s0 + $0xb8] sm:$0xff] }
  0x11   :  { %1531 = vmatmul.mubr.msk.f32.gmra.mrb[6].mxu0 %vm82_vm1, %v24_v15  ;;  %1579 = vmatmul.mubr.msk.f32.gmra.mrb[6].mxu1 %vm82_vm1, %v56_v16  ;;  %v72_v48 = vld [vmem:[%s2928_s0 + $0x1b8] sm:$0xff]  ;;  %v41_v49 = vld [vmem:[%s2928_s0 + $0xc0] sm:$0xff]  ;;  %v42_v51 = vld [vmem:[%s2928_s0 + $0xc8] sm:$0xff] }
  0x12   :  { %1533 = vmatprep.mubr.msk.f32.mxu0 %vm82_vm1, %v25_v17  ;;  %1581 = vmatprep.mubr.msk.f32.mxu1 %vm82_vm1, %v57_v18  ;;  %v73_v50 = vld [vmem:[%s2928_s0 + $0x1c0] sm:$0xff]  ;;  %v74_v52 = vld [vmem:[%s2928_s0 + $0x1c8] sm:$0xff]  ;;  %v43_v53 = vld [vmem:[%s2928_s0 + $0xd0] sm:$0xff] }
  0x13   :  { %v75_v54 = vld [vmem:[%s2928_s0 + $0x1d0] sm:$0xff]  ;;  %v44_v55 = vld [vmem:[%s2928_s0 + $0xd8] sm:$0xff]  ;;  %v45_v57 = vld [vmem:[%s2928_s0 + $0xe0] sm:$0xff] }
  0x14   :  { %v76_v56 = vld [vmem:[%s2928_s0 + $0x1d8] sm:$0xff]  ;;  %v77_v58 = vld [vmem:[%s2928_s0 + $0x1e0] sm:$0xff]  ;;  %v46_v59 = vld [vmem:[%s2928_s0 + $0xe8] sm:$0xff] }
  0x15   :  { %1534 = vmatmul.mubr.msk.f32.gmra.mrb[8].mxu0 %vm82_vm1, %v26_v19  ;;  %1582 = vmatmul.mubr.msk.f32.gmra.mrb[8].mxu1 %vm82_vm1, %v58_v20  ;;  %v78_v60 = vld [vmem:[%s2928_s0 + $0x1e8] sm:$0xff]  ;;  %v47_v61 = vld [vmem:[%s2928_s0 + $0xf0] sm:$0xff]  ;;  %v48_v63 = vld [vmem:[%s2928_s0 + $0xf8] sm:$0xff] }
  0x16   :  { %1536 = vmatprep.mubr.msk.f32.mxu0 %vm82_vm1, %v27_v21  ;;  %1584 = vmatprep.mubr.msk.f32.mxu1 %vm82_vm1, %v59_v22  ;;  %v79_v62 = vld [vmem:[%s2928_s0 + $0x1f0] sm:$0xff]  ;;  %v80_v0 = vld [vmem:[%s2928_s0 + $0x1f8] sm:$0xff]  ;;  %v2164_v1 = vld [vmem:[%s2929_s2] ss:$0 sm:$0xff] }
  0x17   :  { %v2169_v3 = vld [vmem:[%s2930_s3] ss:$0 sm:$0xff] }
  0x19   :  { %1537 = vmatmul.mubr.msk.f32.gmra.mrb[10].mxu0 %vm82_vm1, %v28_v23  ;;  %1585 = vmatmul.mubr.msk.f32.gmra.mrb[10].mxu1 %vm82_vm1, %v60_v24 }
  0x1a   :  { %1539 = vmatprep.mubr.msk.f32.mxu0 %vm82_vm1, %v29_v25  ;;  %1587 = vmatprep.mubr.msk.f32.mxu1 %vm82_vm1, %v61_v26 }
  0x1d   :  { %1540 = vmatmul.mubr.msk.f32.gmra.mrb[12].mxu0 %vm82_vm1, %v30_v27  ;;  %1588 = vmatmul.mubr.msk.f32.gmra.mrb[12].mxu1 %vm82_vm1, %v62_v28 }
  0x1e   :  { %1542 = vmatprep.mubr.msk.f32.mxu0 %vm82_vm1, %v31_v29  ;;  %1590 = vmatprep.mubr.msk.f32.mxu1 %vm82_vm1, %v63_v30 }
  0x21   :  { %1543 = vmatmul.mubr.msk.f32.gmra.mrb[14].mxu0 %vm82_vm1, %v32_v31  ;;  %1591 = vmatmul.mubr.msk.f32.gmra.mrb[14].mxu1 %vm82_vm1, %v64_v32 }
  0x22   :  { %1545 = vmatprep.mubr.msk.f32.mxu0 %vm82_vm1, %v33_v33  ;;  %1593 = vmatprep.mubr.msk.f32.mxu1 %vm82_vm1, %v65_v34 }
  0x25   :  { %1546 = vmatmul.mubr.msk.f32.gmra.mrb[16].mxu0 %vm82_vm1, %v34_v35  ;;  %1594 = vmatmul.mubr.msk.f32.gmra.mrb[16].mxu1 %vm82_vm1, %v66_v36 }
  0x26   :  { %1548 = vmatprep.mubr.msk.f32.mxu0 %vm82_vm1, %v35_v37  ;;  %1596 = vmatprep.mubr.msk.f32.mxu1 %vm82_vm1, %v67_v38 }
  0x29   :  { %1549 = vmatmul.mubr.msk.f32.gmra.mrb[18].mxu0 %vm82_vm1, %v36_v39  ;;  %1597 = vmatmul.mubr.msk.f32.gmra.mrb[18].mxu1 %vm82_vm1, %v68_v40 }
  0x2a   :  { %1551 = vmatprep.mubr.msk.f32.mxu0 %vm82_vm1, %v37_v41  ;;  %1599 = vmatprep.mubr.msk.f32.mxu1 %vm82_vm1, %v69_v42 }
  0x2d   :  { %1552 = vmatmul.mubr.msk.f32.gmra.mrb[20].mxu0 %vm82_vm1, %v38_v43  ;;  %1600 = vmatmul.mubr.msk.f32.gmra.mrb[20].mxu1 %vm82_vm1, %v70_v44 }
  0x2e   :  { %1554 = vmatprep.mubr.msk.f32.mxu0 %vm82_vm1, %v39_v45  ;;  %1602 = vmatprep.mubr.msk.f32.mxu1 %vm82_vm1, %v71_v46 }
  0x31   :  { %1555 = vmatmul.mubr.msk.f32.gmra.mrb[22].mxu0 %vm82_vm1, %v40_v47  ;;  %1603 = vmatmul.mubr.msk.f32.gmra.mrb[22].mxu1 %vm82_vm1, %v72_v48 }
  0x32   :  { %1557 = vmatprep.mubr.msk.f32.mxu0 %vm82_vm1, %v41_v49  ;;  %1605 = vmatprep.mubr.msk.f32.mxu1 %vm82_vm1, %v73_v50 }
  0x35   :  { %1558 = vmatmul.mubr.msk.f32.gmra.mrb[24].mxu0 %vm82_vm1, %v42_v51  ;;  %1606 = vmatmul.mubr.msk.f32.gmra.mrb[24].mxu1 %vm82_vm1, %v74_v52 }
  0x36   :  { %1560 = vmatprep.mubr.msk.f32.mxu0 %vm82_vm1, %v43_v53  ;;  %1608 = vmatprep.mubr.msk.f32.mxu1 %vm82_vm1, %v75_v54 }
  0x39   :  { %1561 = vmatmul.mubr.msk.f32.gmra.mrb[26].mxu0 %vm82_vm1, %v44_v55  ;;  %1609 = vmatmul.mubr.msk.f32.gmra.mrb[26].mxu1 %vm82_vm1, %v76_v56 }
  0x3a   :  { %1563 = vmatprep.mubr.msk.f32.mxu0 %vm82_vm1, %v45_v57  ;;  %1611 = vmatprep.mubr.msk.f32.mxu1 %vm82_vm1, %v77_v58 }
  0x3d   :  { %1564 = vmatmul.mubr.msk.f32.gmra.mrb[28].mxu0 %vm82_vm1, %v46_v59  ;;  %1612 = vmatmul.mubr.msk.f32.gmra.mrb[28].mxu1 %vm82_vm1, %v78_v60 }
  0x3e   :  { %1566 = vmatprep.mubr.msk.f32.mxu0 %vm82_vm1, %v47_v61  ;;  %1614 = vmatprep.mubr.msk.f32.mxu1 %vm82_vm1, %v79_v62 }
  0x41   :  { %1567 = vmatmul.mubr.msk.f32.gmra.mrb[30].mxu0 %vm82_vm1, %v48_v63  ;;  %1615 = vmatmul.mubr.msk.f32.gmra.mrb[30].mxu1 %vm82_vm1, %v80_v0 }
  0xd8   :  { %v1523_v2 = vpop.f32.mrb[0].mxu0  ;;  %v1571_v4 = vpop.f32.mrb[0].mxu1 }
  0xd9   :  { %v672_v5 = vmul.f32 %v1523_v2, %v2164_v1  ;;  %v704_v6 = vmul.f32 %v1571_v4, %v2164_v1  ;;  %v345_v7 = vpop.f32.mrb[1].mxu0  ;;  %v505_v8 = vpop.f32.mrb[1].mxu1 }
  0xda   :  { %v671_v9 = vmul.f32 %v2164_v1, %v345_v7  ;;  %v703_v10 = vmul.f32 %v2164_v1, %v505_v8 }
  0xdb   :  { %v2176_v11 = vadd.f32 %v2169_v3, %v672_v5  ;;  %v2179_v12 = vadd.f32 %v2169_v3, %v704_v6 }
  0xdc   :  { %v2182_v13 = vadd.f32 %v2169_v3, %v671_v9  ;;  %v2185_v14 = vadd.f32 %v2169_v3, %v703_v10  ;;  %v1526_v15 = vpop.f32.mrb[2].mxu0  ;;  %v1574_v16 = vpop.f32.mrb[2].mxu1 }
  0xdd   :  { %v1391_v17 = vmul.f32 -1.442695, %v2176_v11  ;;  %v1423_v18 = vmul.f32 -1.442695, %v2179_v12  ;;  %v674_v19 = vmul.f32 %v1526_v15, %v2164_v1  ;;  %v706_v20 = vmul.f32 %v1574_v16, %v2164_v1  ;;  %v355_v21 = vpop.f32.mrb[3].mxu0  ;;  %v515_v22 = vpop.f32.mrb[3].mxu1 }
  0xde   :  { %v1390_v23 = vmul.f32 -1.442695, %v2182_v13  ;;  %v1422_v24 = vmul.f32 -1.442695, %v2185_v14  ;;  %v673_v25 = vmul.f32 %v2164_v1, %v355_v21  ;;  %v705_v26 = vmul.f32 %v2164_v1, %v515_v22 }
  0xdf   :  { %1619 = vpow2.f32 %v1391_v17  ;;  %v2196_v27 = vadd.f32 %v2169_v3, %v674_v19  ;;  %v2199_v28 = vadd.f32 %v2169_v3, %v706_v20 }
  0xe0   :  { %1621 = vpow2.f32 %v1423_v18  ;;  %v2202_v29 = vadd.f32 %v2169_v3, %v673_v25  ;;  %v2205_v30 = vadd.f32 %v2169_v3, %v705_v26  ;;  %v1529_v31 = vpop.f32.mrb[4].mxu0  ;;  %v1577_v32 = vpop.f32.mrb[4].mxu1 }
  0xe1   :  { %1623 = vpow2.f32 %v1390_v23  ;;  %v1393_v33 = vmul.f32 -1.442695, %v2196_v27  ;;  %v1425_v34 = vmul.f32 -1.442695, %v2199_v28  ;;  %v676_v35 = vmul.f32 %v1529_v31, %v2164_v1  ;;  %v365_v36 = vpop.f32.mrb[5].mxu0  ;;  %v525_v37 = vpop.f32.mrb[5].mxu1 }
  0xe2   :  { %1625 = vpow2.f32 %v1422_v24  ;;  %v1392_v38 = vmul.f32 -1.442695, %v2202_v29  ;;  %v1424_v39 = vmul.f32 -1.442695, %v2205_v30  ;;  %v708_v40 = vmul.f32 %v1577_v32, %v2164_v1 }
  0xe3   :  { %1627 = vpow2.f32 %v1393_v33  ;;  %v2214_v41 = vadd.f32 %v2169_v3, %v676_v35  ;;  %v675_v42 = vmul.f32 %v2164_v1, %v365_v36  ;;  %v707_v43 = vmul.f32 %v2164_v1, %v525_v37 }
  0xe4   :  { %1629 = vpow2.f32 %v1425_v34  ;;  %v2219_v44 = vadd.f32 %v2169_v3, %v708_v40  ;;  %v1532_v45 = vpop.f32.mrb[6].mxu0  ;;  %v1580_v46 = vpop.f32.mrb[6].mxu1 }
  0xe5   :  { %1631 = vpow2.f32 %v1392_v38  ;;  %v1395_v47 = vmul.f32 -1.442695, %v2214_v41  ;;  %v2223_v48 = vadd.f32 %v2169_v3, %v675_v42  ;;  %v2226_v49 = vadd.f32 %v2169_v3, %v707_v43  ;;  %v375_v50 = vpop.f32.mrb[7].mxu0  ;;  %v535_v51 = vpop.f32.mrb[7].mxu1 }
  0xe6   :  { %1633 = vpow2.f32 %v1424_v39  ;;  %v1427_v52 = vmul.f32 -1.442695, %v2219_v44  ;;  %v678_v55 = vmul.f32 %v1532_v45, %v2164_v1  ;;  %v710_v59 = vmul.f32 %v1580_v46, %v2164_v1 }
  0xe7   :  { %1635 = vpow2.f32 %v1395_v47  ;;  %v1394_v53 = vmul.f32 -1.442695, %v2223_v48  ;;  %v1426_v54 = vmul.f32 -1.442695, %v2226_v49  ;;  %v677_v4 = vmul.f32 %v2164_v1, %v375_v50 }
  0xe8   :  { %1637 = vpow2.f32 %v1427_v52  ;;  %v1535_v56 = vpop.f32.mrb[8].mxu0  ;;  %v1583_v57 = vpop.f32.mrb[8].mxu1  ;;  %v2235_v7 = vadd.f32 %v2169_v3, %v678_v55  ;;  %v2238_v16 = vadd.f32 %v2169_v3, %v710_v59  ;;  %v709_v17 = vmul.f32 %v2164_v1, %v535_v51 }
  0xe9   :  { %v1620_v58 = vpop.eup %1619  ;;  %1639 = vpow2.f32 %v1394_v53  ;;  %v385_v60 = vpop.f32.mrb[9].mxu0  ;;  %v680_v21 = vmul.f32 %v1535_v56, %v2164_v1  ;;  %v2243_v25 = vadd.f32 %v2169_v3, %v677_v4  ;;  %v712_v33 = vmul.f32 %v1583_v57, %v2164_v1 }
  0xea   :  { %v545_v61 = vpop.f32.mrb[9].mxu1  ;;  %v1622_v62 = vpop.eup %1621  ;;  %v999_v63 = vadd.f32 1.0, %v1620_v58  ;;  %1641 = vpow2.f32 %v1426_v54  ;;  %v1397_v32 = vmul.f32 -1.442695, %v2235_v7  ;;  %v1429_v38 = vmul.f32 -1.442695, %v2238_v16 }
  0xeb   :  { %v1624_v0 = vpop.eup %1623  ;;  %v1031_v2 = vadd.f32 1.0, %v1622_v62  ;;  %v2251_v39 = vadd.f32 %v2169_v3, %v709_v17  ;;  %v2258_v46 = vadd.f32 %v2169_v3, %v680_v21  ;;  %v679_v47 = vmul.f32 %v2164_v1, %v385_v60 }
  0xec   :  { %v1626_v5 = vpop.eup %1625  ;;  %1643 = vrcp.f32 %v999_v63  ;;  %v998_v6 = vadd.f32 1.0, %v1624_v0  ;;  %v1538_v8 = vpop.f32.mrb[10].mxu0  ;;  %v1396_v52 = vmul.f32 -1.442695, %v2243_v25  ;;  %v711_v53 = vmul.f32 %v2164_v1, %v545_v61 }
  0xed   :  { %v1586_v9 = vpop.f32.mrb[10].mxu1  ;;  %v1628_v10 = vpop.eup %1627  ;;  %1645 = vrcp.f32 %v1031_v2  ;;  %v1030_v15 = vadd.f32 1.0, %v1626_v5  ;;  %v2264_v56 = vadd.f32 %v2169_v3, %v712_v33  ;;  %v682_v57 = vmul.f32 %v1538_v8, %v2164_v1 }
  0xee   :  { %v395_v18 = vpop.f32.mrb[11].mxu0  ;;  %v1630_v19 = vpop.eup %1629  ;;  %1647 = vrcp.f32 %v998_v6  ;;  %v1001_v20 = vadd.f32 1.0, %v1628_v10  ;;  %v1428_v62 = vmul.f32 -1.442695, %v2251_v39  ;;  %v714_v63 = vmul.f32 %v1586_v9, %v2164_v1 }
  0xef   :  { %v555_v22 = vpop.f32.mrb[11].mxu1  ;;  %v1632_v23 = vpop.eup %1631  ;;  %1649 = vrcp.f32 %v1030_v15  ;;  %v1033_v24 = vadd.f32 1.0, %v1630_v19  ;;  %v1399_v4 = vmul.f32 -1.442695, %v2258_v46  ;;  %v2279_v5 = vadd.f32 %v2169_v3, %v679_v47 }
  0xf0   :  { %v1634_v26 = vpop.eup %1633  ;;  %1651 = vrcp.f32 %v1001_v20  ;;  %v1000_v31 = vadd.f32 1.0, %v1632_v23  ;;  %v1541_v34 = vpop.f32.mrb[12].mxu0  ;;  %v681_v6 = vmul.f32 %v2164_v1, %v395_v18  ;;  %v2284_v15 = vadd.f32 %v2169_v3, %v711_v53 }
  0xf1   :  { %v2247_v35 = vpop.f32.mrb[12].mxu1  ;;  %v1636_v36 = vpop.eup %1635  ;;  %1653 = vrcp.f32 %v1033_v24  ;;  %v1032_v37 = vadd.f32 1.0, %v1634_v26  ;;  %v713_v9 = vmul.f32 %v2164_v1, %v555_v22  ;;  %v2289_v20 = vadd.f32 %v2169_v3, %v682_v57 }
  0xf2   :  { %v2253_v40 = vpop.f32.mrb[13].mxu0  ;;  %v2255_v42 = vpop.f32.mrb[13].mxu1  ;;  %1655 = vrcp.f32 %v1000_v31  ;;  %v1003_v45 = vadd.f32 1.0, %v1636_v36  ;;  %v684_v21 = vmul.f32 %v1541_v34, %v2164_v1  ;;  %v2303_v24 = vadd.f32 %v2169_v3, %v714_v63 }
  0xf3   :  { %v1638_v43 = vpop.eup %1637  ;;  %1657 = vrcp.f32 %v1032_v37  ;;  %v2316_v34 = vadd.f32 %v2169_v3, %v681_v6  ;;  %v1401_v47 = vmul.f32 -1.442695, %v2289_v20 }
  0xf4   :  { %v1640_v50 = vpop.eup %1639  ;;  %v1035_v51 = vadd.f32 1.0, %v1638_v43  ;;  %1659 = vrcp.f32 %v1003_v45  ;;  %v2267_v58 = vpop.f32.mrb[14].mxu0  ;;  %v2325_v43 = vadd.f32 %v2169_v3, %v713_v9 }
  0xf5   :  { %v1642_v54 = vpop.eup %1641  ;;  %v1002_v55 = vadd.f32 1.0, %v1640_v50  ;;  %v2269_v59 = vpop.f32.mrb[14].mxu1  ;;  %v2334_v50 = vadd.f32 %v2169_v3, %v684_v21 }
  0xf6   :  { %1661 = vrcp.f32 %v1035_v51  ;;  %v1034_v60 = vadd.f32 1.0, %v1642_v54  ;;  %v2273_v0 = vpop.f32.mrb[15].mxu0  ;;  %v2275_v61 = vpop.f32.mrb[15].mxu1 }
  0xf7   :  { %v1644_v2 = vpop.eup %1643  ;;  %1663 = vrcp.f32 %v1002_v55  ;;  %v1403_v6 = vmul.f32 -1.442695, %v2334_v50 }
  0xf8   :  { %v1646_v8 = vpop.eup %1645  ;;  %v1191_v10 = vmul.f32 %v1644_v2, %v2176_v11  ;;  %1665 = vrcp.f32 %v1034_v60  ;;  %v2292_v23 = vpop.f32.mrb[16].mxu0  ;;  %v1432_v2 = vmul.f32 -1.442695, %v2325_v43 }
  0xf9   :  { %v1648_v17 = vpop.eup %1647  ;;  %v1223_v19 = vmul.f32 %v1646_v8, %v2179_v12  ;;  %1667 = vpow2.f32 %v1397_v32  ;;  %v2294_v18 = vpop.f32.mrb[16].mxu1  ;;  %v1431_v12 = vmul.f32 -1.442695, %v2264_v56 }
  0xfa   :  { %v1650_v11 = vpop.eup %1649  ;;  %1256 = vst.msk [vmem:[%s2931_s4 + $0x8] sm:$0xff] %vm1254_vm2, %v1191_v10  ;;  %v1190_v22 = vmul.f32 %v1648_v17, %v2182_v13  ;;  %1669 = vpow2.f32 %v1429_v38  ;;  %v2305_v26 = vpop.f32.mrb[17].mxu0  ;;  %v1398_v13 = vmul.f32 -1.442695, %v2279_v5  ;;  %v1430_v38 = vmul.f32 -1.442695, %v2284_v15 }
  0xfb   :  { %v2307_v31 = vpop.f32.mrb[17].mxu1  ;;  %v1652_v32 = vpop.eup %1651  ;;  %1288 = vst.msk [vmem:[%s2931_s4 + $0x108] sm:$0xff] %vm1254_vm2, %v1223_v19  ;;  %v1222_v33 = vmul.f32 %v1650_v11, %v2185_v14  ;;  %1671 = vpow2.f32 %v1396_v52  ;;  %v716_v11 = vmul.f32 %v2247_v35, %v2164_v1 }
  0xfc   :  { %v1654_v36 = vpop.eup %1653  ;;  %1255 = vst.msk [vmem:[%s2931_s4] sm:$0xff] %vm1254_vm2, %v1190_v22  ;;  %v1193_v37 = vmul.f32 %v1652_v32, %v2196_v27  ;;  %1673 = vpow2.f32 %v1428_v62  ;;  %v2336_v27 = vpop.f32.mrb[18].mxu0  ;;  %v1400_v62 = vmul.f32 -1.442695, %v2316_v34 }
  0xfd   :  { %v1656_v14 = vpop.eup %1655  ;;  %1287 = vst.msk [vmem:[%s2931_s4 + $0x100] sm:$0xff] %vm1254_vm2, %v1222_v33  ;;  %v1225_v45 = vmul.f32 %v1654_v36, %v2199_v28  ;;  %1675 = vpow2.f32 %v1399_v4  ;;  %v2338_v51 = vpop.f32.mrb[18].mxu1  ;;  %v1433_v28 = vmul.f32 -1.442695, %v2303_v24 }
  0xfe   :  { %v1658_v52 = vpop.eup %1657  ;;  %1258 = vst.msk [vmem:[%s2931_s4 + $0x18] sm:$0xff] %vm1254_vm2, %v1193_v37  ;;  %v1192_v53 = vmul.f32 %v1656_v14, %v2202_v29  ;;  %1677 = vpow2.f32 %v1431_v12  ;;  %v2346_v54 = vpop.f32.mrb[19].mxu0  ;;  %v683_v12 = vmul.f32 %v2164_v1, %v2253_v40  ;;  %v715_v37 = vmul.f32 %v2164_v1, %v2255_v42 }
  0xff   :  { %v2348_v55 = vpop.f32.mrb[19].mxu1  ;;  %v1660_v57 = vpop.eup %1659  ;;  %1290 = vst.msk [vmem:[%s2931_s4 + $0x118] sm:$0xff] %vm1254_vm2, %v1225_v45  ;;  %v1224_v60 = vmul.f32 %v1658_v52, %v2205_v30  ;;  %1679 = vpow2.f32 %v1398_v13  ;;  %v2407_v45 = vadd.f32 %v2169_v3, %v716_v11  ;;  %v718_v42 = vmul.f32 %v2269_v59, %v2164_v1 }
 0x100   :  { %v1662_v63 = vpop.eup %1661  ;;  %1257 = vst.msk [vmem:[%s2931_s4 + $0x10] sm:$0xff] %vm1254_vm2, %v1192_v53  ;;  %v1195_v29 = vmul.f32 %v1660_v57, %v2214_v41  ;;  %1681 = vpow2.f32 %v1430_v38  ;;  %v2368_v8 = vpop.f32.mrb[20].mxu0  ;;  %v2414_v57 = vadd.f32 %v2169_v3, %v683_v12 }
 0x101   :  { %v1664_v4 = vpop.eup %1663  ;;  %1289 = vst.msk [vmem:[%s2931_s4 + $0x110] sm:$0xff] %vm1254_vm2, %v1224_v60  ;;  %v1227_v30 = vmul.f32 %v1662_v63, %v2219_v44  ;;  %1683 = vpow2.f32 %v1401_v47  ;;  %v2370_v10 = vpop.f32.mrb[20].mxu1  ;;  %v686_v47 = vmul.f32 %v2267_v58, %v2164_v1  ;;  %v685_v63 = vmul.f32 %v2164_v1, %v2273_v0 }
 0x102   :  { %v1666_v9 = vpop.eup %1665  ;;  %1260 = vst.msk [vmem:[%s2931_s4 + $0x28] sm:$0xff] %vm1254_vm2, %v1195_v29  ;;  %v1194_v41 = vmul.f32 %v1664_v4, %v2223_v48  ;;  %1685 = vpow2.f32 %v1433_v28  ;;  %v2377_v17 = vpop.f32.mrb[21].mxu0 }
 0x103   :  { %v2379_v19 = vpop.f32.mrb[21].mxu1  ;;  %v1668_v44 = vpop.eup %1667  ;;  %1292 = vst.msk [vmem:[%s2931_s4 + $0x128] sm:$0xff] %vm1254_vm2, %v1227_v30  ;;  %v1226_v21 = vmul.f32 %v1666_v9, %v2226_v49  ;;  %1687 = vpow2.f32 %v1400_v62  ;;  %v2425_v30 = vadd.f32 %v2169_v3, %v715_v37  ;;  %v2433_v0 = vadd.f32 %v2169_v3, %v686_v47 }
 0x104   :  { %v1670_v22 = vpop.eup %1669  ;;  %1259 = vst.msk [vmem:[%s2931_s4 + $0x20] sm:$0xff] %vm1254_vm2, %v1194_v41  ;;  %v1005_v48 = vadd.f32 1.0, %v1668_v44  ;;  %1689 = vpow2.f32 %v1432_v2  ;;  %v2398_v35 = vpop.f32.mrb[22].mxu0  ;;  %v1435_v44 = vmul.f32 -1.442695, %v2407_v45  ;;  %v688_v47 = vmul.f32 %v2292_v23, %v2164_v1 }
 0x105   :  { %v1672_v32 = vpop.eup %1671  ;;  %1291 = vst.msk [vmem:[%s2931_s4 + $0x120] sm:$0xff] %vm1254_vm2, %v1226_v21  ;;  %v1037_v49 = vadd.f32 1.0, %v1670_v22  ;;  %1691 = vpow2.f32 %v1403_v6  ;;  %v2400_v33 = vpop.f32.mrb[22].mxu1  ;;  %v1402_v22 = vmul.f32 -1.442695, %v2414_v57  ;;  %v687_v23 = vmul.f32 %v2164_v1, %v2305_v26 }
 0x106   :  { %v1674_v13 = vpop.eup %1673  ;;  %1693 = vrcp.f32 %v1005_v48  ;;  %v1004_v36 = vadd.f32 1.0, %v1672_v32  ;;  %v2404_v38 = vpop.f32.mrb[23].mxu0  ;;  %v2437_v48 = vadd.f32 %v2169_v3, %v718_v42  ;;  %v2473_v26 = vadd.f32 %v2169_v3, %v688_v47 }
 0x107   :  { %v1676_v40 = vpop.eup %1675  ;;  %1695 = vrcp.f32 %v1037_v49  ;;  %v1036_v14 = vadd.f32 1.0, %v1674_v13  ;;  %v2411_v52 = vpop.f32.mrb[23].mxu1  ;;  %v2440_v49 = vadd.f32 %v2169_v3, %v685_v63  ;;  %v717_v13 = vmul.f32 %v2164_v1, %v2275_v61 }
 0x108   :  { %v1678_v53 = vpop.eup %1677  ;;  %1697 = vrcp.f32 %v1004_v36  ;;  %v1007_v28 = vadd.f32 1.0, %v1676_v40  ;;  %v2420_v29 = vpop.f32.mrb[24].mxu0  ;;  %v720_v61 = vmul.f32 %v2294_v18, %v2164_v1  ;;  %v719_v18 = vmul.f32 %v2164_v1, %v2307_v31 }
 0x109   :  { %v1680_v60 = vpop.eup %1679  ;;  %1699 = vrcp.f32 %v1036_v14  ;;  %v1039_v62 = vadd.f32 1.0, %v1678_v53  ;;  %v2422_v58 = vpop.f32.mrb[24].mxu1  ;;  %v1434_v14 = vmul.f32 -1.442695, %v2425_v30  ;;  %v722_v47 = vmul.f32 %v2338_v51, %v2164_v1 }
 0x10a   :  { %v1682_v2 = vpop.eup %1681  ;;  %1701 = vrcp.f32 %v1007_v28  ;;  %v1006_v4 = vadd.f32 1.0, %v1680_v60  ;;  %v2427_v6 = vpop.f32.mrb[25].mxu0 }
 0x10b   :  { %v2429_v9 = vpop.f32.mrb[25].mxu1  ;;  %v1684_v59 = vpop.eup %1683  ;;  %1703 = vrcp.f32 %v1039_v62  ;;  %v1038_v41 = vadd.f32 1.0, %v1682_v2  ;;  %v1405_v62 = vmul.f32 -1.442695, %v2433_v0 }
 0x10c   :  { %v1686_v21 = vpop.eup %1685  ;;  %1705 = vrcp.f32 %v1006_v4  ;;  %v1009_v11 = vadd.f32 1.0, %v1684_v59  ;;  %v2444_v36 = vpop.f32.mrb[26].mxu0  ;;  %v1437_v59 = vmul.f32 -1.442695, %v2437_v48 }
 0x10d   :  { %v1688_v12 = vpop.eup %1687  ;;  %1707 = vrcp.f32 %v1038_v41  ;;  %v1041_v32 = vadd.f32 1.0, %v1686_v21  ;;  %v2449_v53 = vpop.f32.mrb[26].mxu1 }
 0x10e   :  { %v1690_v37 = vpop.eup %1689  ;;  %1709 = vrcp.f32 %v1009_v11  ;;  %v1008_v40 = vadd.f32 1.0, %v1688_v12  ;;  %v2451_v28 = vpop.f32.mrb[27].mxu0  ;;  %v2463_v11 = vadd.f32 %v2169_v3, %v717_v13 }
 0x10f   :  { %v1692_v42 = vpop.eup %1691  ;;  %1711 = vrcp.f32 %v1041_v32  ;;  %v1040_v60 = vadd.f32 1.0, %v1690_v37  ;;  %v2456_v63 = vpop.f32.mrb[27].mxu1 }
 0x110   :  { %v1694_v2 = vpop.eup %1693  ;;  %1713 = vrcp.f32 %v1008_v40  ;;  %v1011_v4 = vadd.f32 1.0, %v1692_v42  ;;  %v2467_v12 = vpop.f32.mrb[28].mxu0 }
 0x111   :  { %v1696_v41 = vpop.eup %1695  ;;  %v1197_v21 = vmul.f32 %v1694_v2, %v2235_v7  ;;  %1715 = vrcp.f32 %v1040_v60  ;;  %v2469_v32 = vpop.f32.mrb[28].mxu1  ;;  %v690_v7 = vmul.f32 %v2336_v27, %v2164_v1 }
 0x112   :  { %v1698_v37 = vpop.eup %1697  ;;  %v1229_v40 = vmul.f32 %v1696_v41, %v2238_v16  ;;  %1717 = vrcp.f32 %v1011_v4  ;;  %v2477_v42 = vpop.f32.mrb[29].mxu0  ;;  %v2487_v16 = vadd.f32 %v2169_v3, %v720_v61  ;;  %v1404_v4 = vmul.f32 -1.442695, %v2440_v49 }
 0x113   :  { %v2479_v13 = vpop.f32.mrb[29].mxu1  ;;  %v1700_v60 = vpop.eup %1699  ;;  %1262 = vst.msk [vmem:[%s2931_s4 + $0x38] sm:$0xff] %vm1254_vm2, %v1197_v21  ;;  %v1196_v31 = vmul.f32 %v1698_v37, %v2243_v25  ;;  %1719 = vpow2.f32 %v1435_v44  ;;  %v2498_v25 = vadd.f32 %v2169_v3, %v687_v23  ;;  %v1436_v61 = vmul.f32 -1.442695, %v2463_v11 }
 0x114   :  { %v1702_v27 = vpop.eup %1701  ;;  %1294 = vst.msk [vmem:[%s2931_s4 + $0x138] sm:$0xff] %vm1254_vm2, %v1229_v40  ;;  %v1228_v2 = vmul.f32 %v1700_v60, %v2251_v39  ;;  %1721 = vpow2.f32 %v1402_v22  ;;  %v2507_v41 = vadd.f32 %v2169_v3, %v719_v18  ;;  %v2509_v39 = vpop.f32.mrb[30].mxu0 }
 0x115   :  { %v1704_v44 = vpop.eup %1703  ;;  %1261 = vst.msk [vmem:[%s2931_s4 + $0x30] sm:$0xff] %vm1254_vm2, %v1196_v31  ;;  %v1199_v51 = vmul.f32 %v1702_v27, %v2258_v46  ;;  %1723 = vpow2.f32 %v1434_v14  ;;  %v2511_v22 = vpop.f32.mrb[30].mxu1  ;;  %v1407_v46 = vmul.f32 -1.442695, %v2473_v26  ;;  %v2520_v14 = vadd.f32 %v2169_v3, %v690_v7 }
 0x116   :  { %v1706_v23 = vpop.eup %1705  ;;  %1293 = vst.msk [vmem:[%s2931_s4 + $0x130] sm:$0xff] %vm1254_vm2, %v1228_v2  ;;  %v1231_v21 = vmul.f32 %v1704_v44, %v2264_v56  ;;  %1725 = vpow2.f32 %v1405_v62  ;;  %v2522_v18 = vpop.f32.mrb[31].mxu0  ;;  %v1439_v56 = vmul.f32 -1.442695, %v2487_v16  ;;  %v2533_v62 = vadd.f32 %v2169_v3, %v722_v47 }
 0x117   :  { %v2524_v37 = vpop.f32.mrb[31].mxu1  ;;  %v1708_v40 = vpop.eup %1707  ;;  %1264 = vst.msk [vmem:[%s2931_s4 + $0x48] sm:$0xff] %vm1254_vm2, %v1199_v51  ;;  %v1198_v60 = vmul.f32 %v1706_v23, %v2279_v5  ;;  %1727 = vpow2.f32 %v1437_v59  ;;  %v1406_v27 = vmul.f32 -1.442695, %v2498_v25  ;;  %v1438_v59 = vmul.f32 -1.442695, %v2507_v41 }
 0x118   :  { %v1710_v7 = vpop.eup %1709  ;;  %1296 = vst.msk [vmem:[%s2931_s4 + $0x148] sm:$0xff] %vm1254_vm2, %v1231_v21  ;;  %v1230_v31 = vmul.f32 %v1708_v40, %v2284_v15  ;;  %1729 = vpow2.f32 %v1404_v4  ;;  %v1409_v4 = vmul.f32 -1.442695, %v2520_v14  ;;  %v1441_v51 = vmul.f32 -1.442695, %v2533_v62 }
 0x119   :  { %v1712_v2 = vpop.eup %1711  ;;  %1263 = vst.msk [vmem:[%s2931_s4 + $0x40] sm:$0xff] %vm1254_vm2, %v1198_v60  ;;  %v1201_v5 = vmul.f32 %v1710_v7, %v2289_v20  ;;  %1731 = vpow2.f32 %v1436_v61  ;;  %v689_v21 = vmul.f32 %v2164_v1, %v2346_v54  ;;  %v721_v40 = vmul.f32 %v2164_v1, %v2348_v55 }
 0x11a   :  { %v1714_v47 = vpop.eup %1713  ;;  %1295 = vst.msk [vmem:[%s2931_s4 + $0x140] sm:$0xff] %vm1254_vm2, %v1230_v31  ;;  %v1233_v15 = vmul.f32 %v1712_v2, %v2303_v24  ;;  %1733 = vpow2.f32 %v1407_v46  ;;  %v692_v54 = vmul.f32 %v2368_v8, %v2164_v1  ;;  %v724_v31 = vmul.f32 %v2370_v10, %v2164_v1 }
 0x11b   :  { %v1716_v44 = vpop.eup %1715  ;;  %1266 = vst.msk [vmem:[%s2931_s4 + $0x58] sm:$0xff] %vm1254_vm2, %v1201_v5  ;;  %v1200_v20 = vmul.f32 %v1714_v47, %v2316_v34  ;;  %1735 = vpow2.f32 %v1439_v56  ;;  %v2586_v2 = vadd.f32 %v2169_v3, %v689_v21  ;;  %v691_v5 = vmul.f32 %v2164_v1, %v2377_v17 }
 0x11c   :  { %v1718_v61 = vpop.eup %1717  ;;  %1298 = vst.msk [vmem:[%s2931_s4 + $0x158] sm:$0xff] %vm1254_vm2, %v1233_v15  ;;  %v1232_v24 = vmul.f32 %v1716_v44, %v2325_v43  ;;  %1737 = vpow2.f32 %v1406_v27  ;;  %v2591_v8 = vadd.f32 %v2169_v3, %v721_v40  ;;  %v2594_v10 = vadd.f32 %v2169_v3, %v692_v54 }
 0x11d   :  { %v1720_v23 = vpop.eup %1719  ;;  %1265 = vst.msk [vmem:[%s2931_s4 + $0x50] sm:$0xff] %vm1254_vm2, %v1200_v20  ;;  %v1203_v34 = vmul.f32 %v1718_v61, %v2334_v50  ;;  %1739 = vpow2.f32 %v1438_v59  ;;  %v694_v54 = vmul.f32 %v2398_v35, %v2164_v1 }
 0x11e   :  { %v1722_v46 = vpop.eup %1721  ;;  %1297 = vst.msk [vmem:[%s2931_s4 + $0x150] sm:$0xff] %vm1254_vm2, %v1232_v24  ;;  %v1043_v43 = vadd.f32 1.0, %v1720_v23  ;;  %1741 = vpow2.f32 %v1409_v4  ;;  %v1408_v24 = vmul.f32 -1.442695, %v2586_v2  ;;  %v2601_v23 = vadd.f32 %v2169_v3, %v691_v5 }
 0x11f   :  { %v1724_v60 = vpop.eup %1723  ;;  %1268 = vst.msk [vmem:[%s2931_s4 + $0x68] sm:$0xff] %vm1254_vm2, %v1203_v34  ;;  %v1010_v50 = vadd.f32 1.0, %v1722_v46  ;;  %1743 = vpow2.f32 %v1441_v51  ;;  %v2597_v51 = vadd.f32 %v2169_v3, %v724_v31  ;;  %v1440_v46 = vmul.f32 -1.442695, %v2591_v8 }
 0x120   :  { %v1726_v56 = vpop.eup %1725  ;;  %1745 = vrcp.f32 %v1043_v43  ;;  %v1042_v7 = vadd.f32 1.0, %v1724_v60  ;;  %v723_v43 = vmul.f32 %v2164_v1, %v2379_v19  ;;  %v1410_v19 = vmul.f32 -1.442695, %v2601_v23 }
 0x121   :  { %v1728_v27 = vpop.eup %1727  ;;  %1747 = vrcp.f32 %v1010_v50  ;;  %v1013_v55 = vadd.f32 1.0, %v1726_v56  ;;  %v1411_v50 = vmul.f32 -1.442695, %v2594_v10  ;;  %v1443_v31 = vmul.f32 -1.442695, %v2597_v51 }
 0x122   :  { %v1730_v59 = vpop.eup %1729  ;;  %1749 = vrcp.f32 %v1042_v7  ;;  %v1045_v47 = vadd.f32 1.0, %v1728_v27  ;;  %v726_v27 = vmul.f32 %v2400_v33, %v2164_v1  ;;  %v2616_v35 = vadd.f32 %v2169_v3, %v723_v43 }
 0x123   :  { %v1732_v15 = vpop.eup %1731  ;;  %1751 = vrcp.f32 %v1013_v55  ;;  %v1012_v4 = vadd.f32 1.0, %v1730_v59  ;;  %v693_v59 = vmul.f32 %v2164_v1, %v2404_v38 }
 0x124   :  { %v1734_v44 = vpop.eup %1733  ;;  %1753 = vrcp.f32 %v1045_v47  ;;  %v1044_v20 = vadd.f32 1.0, %v1732_v15 }
 0x125   :  { %v1736_v61 = vpop.eup %1735  ;;  %1755 = vrcp.f32 %v1012_v4  ;;  %v1015_v17 = vadd.f32 1.0, %v1734_v44  ;;  %v725_v4 = vmul.f32 %v2164_v1, %v2411_v52  ;;  %v728_v52 = vmul.f32 %v2422_v58, %v2164_v1 }
 0x126   :  { %v1738_v34 = vpop.eup %1737  ;;  %1757 = vrcp.f32 %v1044_v20  ;;  %v1047_v21 = vadd.f32 1.0, %v1736_v61  ;;  %v2622_v20 = vadd.f32 %v2169_v3, %v694_v54  ;;  %v696_v61 = vmul.f32 %v2420_v29, %v2164_v1 }
 0x127   :  { %v1740_v40 = vpop.eup %1739  ;;  %1759 = vrcp.f32 %v1015_v17  ;;  %v1014_v60 = vadd.f32 1.0, %v1738_v34  ;;  %v2628_v34 = vadd.f32 %v2169_v3, %v726_v27  ;;  %v2638_v29 = vadd.f32 %v2169_v3, %v693_v59 }
 0x128   :  { %v1742_v56 = vpop.eup %1741  ;;  %1761 = vrcp.f32 %v1047_v21  ;;  %v1046_v7 = vadd.f32 1.0, %v1740_v40  ;;  %v1442_v40 = vmul.f32 -1.442695, %v2616_v35  ;;  %v2658_v54 = vadd.f32 %v2169_v3, %v696_v61 }
 0x129   :  { %v1744_v55 = vpop.eup %1743  ;;  %1763 = vrcp.f32 %v1014_v60  ;;  %v1017_v5 = vadd.f32 1.0, %v1742_v56  ;;  %v1413_v60 = vmul.f32 -1.442695, %v2622_v20  ;;  %v1445_v56 = vmul.f32 -1.442695, %v2628_v34 }
 0x12a   :  { %v1746_v47 = vpop.eup %1745  ;;  %1765 = vrcp.f32 %v1046_v7  ;;  %v1049_v15 = vadd.f32 1.0, %v1744_v55  ;;  %v2667_v7 = vadd.f32 %v2169_v3, %v728_v52  ;;  %v1412_v27 = vmul.f32 -1.442695, %v2638_v29 }
 0x12b   :  { %v1748_v44 = vpop.eup %1747  ;;  %v1235_v33 = vmul.f32 %v1746_v47, %v2407_v45  ;;  %1767 = vrcp.f32 %v1017_v5  ;;  %v727_v61 = vmul.f32 %v2164_v1, %v2429_v9  ;;  %v730_v9 = vmul.f32 %v2449_v53, %v2164_v1 }
 0x12c   :  { %v1750_v38 = vpop.eup %1749  ;;  %v1202_v17 = vmul.f32 %v1748_v44, %v2414_v57  ;;  %1769 = vrcp.f32 %v1049_v15  ;;  %v695_v57 = vmul.f32 %v2164_v1, %v2427_v6  ;;  %v1447_v47 = vmul.f32 -1.442695, %v2667_v7 }
 0x12d   :  { %v1752_v21 = vpop.eup %1751  ;;  %1300 = vst.msk [vmem:[%s2931_s4 + $0x168] sm:$0xff] %vm1254_vm2, %v1235_v33  ;;  %v1234_v45 = vmul.f32 %v1750_v38, %v2425_v30  ;;  %1771 = vpow2.f32 %v1408_v24  ;;  %v2649_v30 = vadd.f32 %v2169_v3, %v725_v4 }
 0x12e   :  { %v1754_v43 = vpop.eup %1753  ;;  %1267 = vst.msk [vmem:[%s2931_s4 + $0x60] sm:$0xff] %vm1254_vm2, %v1202_v17  ;;  %v1205_v58 = vmul.f32 %v1752_v21, %v2433_v0  ;;  %1773 = vpow2.f32 %v1440_v46  ;;  %v2676_v55 = vadd.f32 %v2169_v3, %v695_v57  ;;  %v698_v17 = vmul.f32 %v2444_v36, %v2164_v1 }
 0x12f   :  { %v1756_v24 = vpop.eup %1755  ;;  %1299 = vst.msk [vmem:[%s2931_s4 + $0x160] sm:$0xff] %vm1254_vm2, %v1234_v45  ;;  %v1237_v6 = vmul.f32 %v1754_v43, %v2437_v48  ;;  %1775 = vpow2.f32 %v1411_v50  ;;  %v1444_v5 = vmul.f32 -1.442695, %v2649_v30  ;;  %v697_v57 = vmul.f32 %v2164_v1, %v2451_v28 }
 0x130   :  { %v1758_v0 = vpop.eup %1757  ;;  %1270 = vst.msk [vmem:[%s2931_s4 + $0x78] sm:$0xff] %vm1254_vm2, %v1205_v58  ;;  %v1204_v46 = vmul.f32 %v1756_v24, %v2440_v49  ;;  %1777 = vpow2.f32 %v1443_v31  ;;  %v1414_v4 = vmul.f32 -1.442695, %v2676_v55  ;;  %v2731_v58 = vld [vmem:[%s2930_s3] ss:$0 sm:$0xff] }
 0x131   :  { %v1760_v48 = vpop.eup %1759  ;;  %1302 = vst.msk [vmem:[%s2931_s4 + $0x178] sm:$0xff] %vm1254_vm2, %v1237_v6  ;;  %v1236_v50 = vmul.f32 %v1758_v0, %v2463_v11  ;;  %1779 = vpow2.f32 %v1410_v19  ;;  %v1415_v11 = vmul.f32 -1.442695, %v2658_v54  ;;  %v2737_v6 = vadd.f32 %v2731_v58, %v698_v17 }
 0x132   :  { %v1762_v49 = vpop.eup %1761  ;;  %1269 = vst.msk [vmem:[%s2931_s4 + $0x70] sm:$0xff] %vm1254_vm2, %v1204_v46  ;;  %v1207_v31 = vmul.f32 %v1760_v48, %v2473_v26  ;;  %1781 = vpow2.f32 %v1442_v40  ;;  %v2734_v40 = vadd.f32 %v2731_v58, %v727_v61  ;;  %v2740_v28 = vadd.f32 %v2731_v58, %v730_v9  ;;  %v1876_v48 = vld [vmem:[%s2929_s2] ss:$0 sm:$0xff] }
 0x133   :  { %v1764_v59 = vpop.eup %1763  ;;  %1301 = vst.msk [vmem:[%s2931_s4 + $0x170] sm:$0xff] %vm1254_vm2, %v1236_v50  ;;  %v1239_v3 = vmul.f32 %v1762_v49, %v2487_v16  ;;  %1783 = vpow2.f32 %v1413_v60  ;;  %v729_v50 = vmul.f32 %v1876_v48, %v2456_v63  ;;  %v699_v63 = vmul.f32 %v1876_v48, %v2477_v42 }
 0x134   :  { %v1766_v19 = vpop.eup %1765  ;;  %1272 = vst.msk [vmem:[%s2931_s4 + $0x88] sm:$0xff] %vm1254_vm2, %v1207_v31  ;;  %v1206_v26 = vmul.f32 %v1764_v59, %v2498_v25  ;;  %1785 = vpow2.f32 %v1445_v56  ;;  %v2743_v56 = vadd.f32 %v2731_v58, %v697_v57  ;;  %v1446_v31 = vmul.f32 -1.442695, %v2734_v40 }
 0x135   :  { %v1768_v15 = vpop.eup %1767  ;;  %1304 = vst.msk [vmem:[%s2931_s4 + $0x188] sm:$0xff] %vm1254_vm2, %v1239_v3  ;;  %v1238_v16 = vmul.f32 %v1766_v19, %v2507_v41  ;;  %1787 = vpow2.f32 %v1412_v27  ;;  %v732_v19 = vmul.f32 %v1876_v48, %v2469_v32  ;;  %v734_v9 = vmul.f32 %v1876_v48, %v2511_v22 }
 0x136   :  { %v1770_v44 = vpop.eup %1769  ;;  %1271 = vst.msk [vmem:[%s2931_s4 + $0x80] sm:$0xff] %vm1254_vm2, %v1206_v26  ;;  %v1209_v25 = vmul.f32 %v1768_v15, %v2520_v14  ;;  %1789 = vpow2.f32 %v1444_v5  ;;  %v700_v5 = vmul.f32 %v1876_v48, %v2467_v12  ;;  %v1449_v15 = vmul.f32 -1.442695, %v2740_v28 }
 0x137   :  { %v1772_v33 = vpop.eup %1771  ;;  %1303 = vst.msk [vmem:[%s2931_s4 + $0x180] sm:$0xff] %vm1254_vm2, %v1238_v16  ;;  %v1241_v41 = vmul.f32 %v1770_v44, %v2533_v62  ;;  %1791 = vpow2.f32 %v1415_v11  ;;  %v1417_v11 = vmul.f32 -1.442695, %v2737_v6  ;;  %v1416_v44 = vmul.f32 -1.442695, %v2743_v56 }
 0x138   :  { %v1774_v38 = vpop.eup %1773  ;;  %1274 = vst.msk [vmem:[%s2931_s4 + $0x98] sm:$0xff] %vm1254_vm2, %v1209_v25  ;;  %v1016_v14 = vadd.f32 1.0, %v1772_v33  ;;  %1793 = vpow2.f32 %v1447_v47  ;;  %v2757_v12 = vadd.f32 %v2731_v58, %v729_v50  ;;  %v2760_v32 = vadd.f32 %v2731_v58, %v700_v5 }
 0x139   :  { %v1776_v52 = vpop.eup %1775  ;;  %1306 = vst.msk [vmem:[%s2931_s4 + $0x198] sm:$0xff] %vm1254_vm2, %v1241_v41  ;;  %v1048_v62 = vadd.f32 1.0, %v1774_v38  ;;  %1795 = vpow2.f32 %v1414_v4  ;;  %v731_v41 = vmul.f32 %v1876_v48, %v2479_v13  ;;  %v2764_v42 = vadd.f32 %v2731_v58, %v732_v19 }
 0x13a   :  { %v1778_v21 = vpop.eup %1777  ;;  %1797 = vrcp.f32 %v1016_v14  ;;  %v1019_v45 = vadd.f32 1.0, %v1776_v52  ;;  %v702_v14 = vmul.f32 %v1876_v48, %v2509_v39  ;;  %v701_v57 = vmul.f32 %v1876_v48, %v2522_v18 }
 0x13b   :  { %v1780_v43 = vpop.eup %1779  ;;  %1799 = vrcp.f32 %v1048_v62  ;;  %v1051_v36 = vadd.f32 1.0, %v1778_v21  ;;  %v2769_v62 = vadd.f32 %v2731_v58, %v699_v63  ;;  %v733_v22 = vmul.f32 %v1876_v48, %v2524_v37 }
 0x13c   :  { %v1782_v24 = vpop.eup %1781  ;;  %1801 = vrcp.f32 %v1019_v45  ;;  %v1018_v53 = vadd.f32 1.0, %v1780_v43  ;;  %v1448_v45 = vmul.f32 -1.442695, %v2757_v12 }
 0x13d   :  { %v1784_v60 = vpop.eup %1783  ;;  %1803 = vrcp.f32 %v1051_v36  ;;  %v1050_v1 = vadd.f32 1.0, %v1782_v24  ;;  %v1419_v36 = vmul.f32 -1.442695, %v2760_v32  ;;  %v2791_v24 = vadd.f32 %v2731_v58, %v702_v14 }
 0x13e   :  { %v1786_v0 = vpop.eup %1785  ;;  %1805 = vrcp.f32 %v1018_v53  ;;  %v1021_v46 = vadd.f32 1.0, %v1784_v60  ;;  %v1451_v53 = vmul.f32 -1.442695, %v2764_v42  ;;  %v2800_v60 = vadd.f32 %v2731_v58, %v734_v9 }
 0x13f   :  { %v1788_v27 = vpop.eup %1787  ;;  %1807 = vrcp.f32 %v1050_v1  ;;  %v1053_v49 = vadd.f32 1.0, %v1786_v0  ;;  %v1418_v0 = vmul.f32 -1.442695, %v2769_v62 }
 0x140   :  { %v1790_v59 = vpop.eup %1789  ;;  %1809 = vrcp.f32 %v1021_v46  ;;  %v1020_v3 = vadd.f32 1.0, %v1788_v27  ;;  %v2809_v46 = vadd.f32 %v2731_v58, %v701_v57  ;;  %v2818_v27 = vadd.f32 %v2731_v58, %v733_v22 }
 0x141   :  { %v1792_v26 = vpop.eup %1791  ;;  %1811 = vrcp.f32 %v1053_v49  ;;  %v1052_v47 = vadd.f32 1.0, %v1790_v59 }
 0x142   :  { %v1794_v16 = vpop.eup %1793  ;;  %1813 = vrcp.f32 %v1020_v3  ;;  %v1023_v4 = vadd.f32 1.0, %v1792_v26  ;;  %v1420_v3 = vmul.f32 -1.442695, %v2809_v46  ;;  %v1452_v19 = vmul.f32 -1.442695, %v2818_v27 }
 0x143   :  { %v1796_v25 = vpop.eup %1795  ;;  %1815 = vrcp.f32 %v1052_v47  ;;  %v1055_v33 = vadd.f32 1.0, %v1794_v16 }
 0x144   :  { %v1798_v61 = vpop.eup %1797  ;;  %1817 = vrcp.f32 %v1023_v4  ;;  %v1022_v38 = vadd.f32 1.0, %v1796_v25 }
 0x145   :  { %v1800_v17 = vpop.eup %1799  ;;  %v1208_v52 = vmul.f32 %v1798_v61, %v2586_v2  ;;  %1819 = vrcp.f32 %v1055_v33  ;;  %v2781_v2 = vadd.f32 %v2731_v58, %v731_v41  ;;  %v1453_v58 = vmul.f32 -1.442695, %v2800_v60 }
 0x146   :  { %v1802_v21 = vpop.eup %1801  ;;  %v1240_v13 = vmul.f32 %v1800_v17, %v2591_v8  ;;  %1821 = vrcp.f32 %v1022_v38 }
 0x147   :  { %v1804_v43 = vpop.eup %1803  ;;  %1273 = vst.msk [vmem:[%s2931_s4 + $0x90] sm:$0xff] %vm1254_vm2, %v1208_v52  ;;  %v1211_v39 = vmul.f32 %v1802_v21, %v2594_v10  ;;  %1823 = vpow2.f32 %v1446_v31  ;;  %v1450_v50 = vmul.f32 -1.442695, %v2781_v2  ;;  %v1421_v31 = vmul.f32 -1.442695, %v2791_v24 }
 0x148   :  { %v1806_v8 = vpop.eup %1805  ;;  %1305 = vst.msk [vmem:[%s2931_s4 + $0x190] sm:$0xff] %vm1254_vm2, %v1240_v13  ;;  %v1243_v18 = vmul.f32 %v1804_v43, %v2597_v51  ;;  %1825 = vpow2.f32 %v1417_v11 }
 0x149   :  { %v1808_v10 = vpop.eup %1807  ;;  %1276 = vst.msk [vmem:[%s2931_s4 + $0xa8] sm:$0xff] %vm1254_vm2, %v1211_v39  ;;  %v1210_v37 = vmul.f32 %v1806_v8, %v2601_v23  ;;  %1827 = vpow2.f32 %v1449_v15 }
 0x14a   :  { %v1810_v51 = vpop.eup %1809  ;;  %1308 = vst.msk [vmem:[%s2931_s4 + $0x1a8] sm:$0xff] %vm1254_vm2, %v1243_v18  ;;  %v1242_v1 = vmul.f32 %v1808_v10, %v2616_v35  ;;  %1829 = vpow2.f32 %v1416_v44 }
 0x14b   :  { %v1812_v23 = vpop.eup %1811  ;;  %1275 = vst.msk [vmem:[%s2931_s4 + $0xa0] sm:$0xff] %vm1254_vm2, %v1210_v37  ;;  %v1213_v48 = vmul.f32 %v1810_v51, %v2622_v20  ;;  %1831 = vpow2.f32 %v1448_v45 }
 0x14c   :  { %v1814_v35 = vpop.eup %1813  ;;  %1307 = vst.msk [vmem:[%s2931_s4 + $0x1a0] sm:$0xff] %vm1254_vm2, %v1242_v1  ;;  %v1245_v49 = vmul.f32 %v1812_v23, %v2628_v34  ;;  %1833 = vpow2.f32 %v1419_v36 }
 0x14d   :  { %v1816_v5 = vpop.eup %1815  ;;  %1278 = vst.msk [vmem:[%s2931_s4 + $0xb8] sm:$0xff] %vm1254_vm2, %v1213_v48  ;;  %v1212_v20 = vmul.f32 %v1814_v35, %v2638_v29  ;;  %1835 = vpow2.f32 %v1451_v53 }
 0x14e   :  { %v1818_v59 = vpop.eup %1817  ;;  %1310 = vst.msk [vmem:[%s2931_s4 + $0x1b8] sm:$0xff] %vm1254_vm2, %v1245_v49  ;;  %v1244_v34 = vmul.f32 %v1816_v5, %v2649_v30  ;;  %1837 = vpow2.f32 %v1418_v0 }
 0x14f   :  { %v1820_v11 = vpop.eup %1819  ;;  %1277 = vst.msk [vmem:[%s2931_s4 + $0xb0] sm:$0xff] %vm1254_vm2, %v1212_v20  ;;  %v1215_v29 = vmul.f32 %v1818_v59, %v2658_v54  ;;  %1839 = vpow2.f32 %v1450_v50 }
 0x150   :  { %v1822_v26 = vpop.eup %1821  ;;  %1309 = vst.msk [vmem:[%s2931_s4 + $0x1b0] sm:$0xff] %vm1254_vm2, %v1244_v34  ;;  %v1247_v30 = vmul.f32 %v1820_v11, %v2667_v7  ;;  %1841 = vpow2.f32 %v1421_v31 }
 0x151   :  { %v1824_v47 = vpop.eup %1823  ;;  %1280 = vst.msk [vmem:[%s2931_s4 + $0xc8] sm:$0xff] %vm1254_vm2, %v1215_v29  ;;  %v1214_v54 = vmul.f32 %v1822_v26, %v2676_v55  ;;  %1843 = vpow2.f32 %v1453_v58 }
 0x152   :  { %v1826_v15 = vpop.eup %1825  ;;  %1312 = vst.msk [vmem:[%s2931_s4 + $0x1c8] sm:$0xff] %vm1254_vm2, %v1247_v30  ;;  %v1054_v63 = vadd.f32 1.0, %v1824_v47  ;;  %1845 = vpow2.f32 %v1420_v3 }
 0x153   :  { %v1828_v16 = vpop.eup %1827  ;;  %1279 = vst.msk [vmem:[%s2931_s4 + $0xc0] sm:$0xff] %vm1254_vm2, %v1214_v54  ;;  %v1025_v7 = vadd.f32 1.0, %v1826_v15  ;;  %1847 = vpow2.f32 %v1452_v19 }
 0x154   :  { %v1830_v4 = vpop.eup %1829  ;;  %1849 = vrcp.f32 %v1054_v63  ;;  %v1057_v55 = vadd.f32 1.0, %v1828_v16 }
 0x155   :  { %v1832_v44 = vpop.eup %1831  ;;  %1851 = vrcp.f32 %v1025_v7  ;;  %v1024_v25 = vadd.f32 1.0, %v1830_v4 }
 0x156   :  { %v1834_v33 = vpop.eup %1833  ;;  %1853 = vrcp.f32 %v1057_v55  ;;  %v1056_v41 = vadd.f32 1.0, %v1832_v44 }
 0x157   :  { %v1836_v61 = vpop.eup %1835  ;;  %1855 = vrcp.f32 %v1024_v25  ;;  %v1027_v38 = vadd.f32 1.0, %v1834_v33 }
 0x158   :  { %v1838_v14 = vpop.eup %1837  ;;  %1857 = vrcp.f32 %v1056_v41  ;;  %v1059_v17 = vadd.f32 1.0, %v1836_v61 }
 0x159   :  { %v1840_v52 = vpop.eup %1839  ;;  %1859 = vrcp.f32 %v1027_v38  ;;  %v1026_v9 = vadd.f32 1.0, %v1838_v14 }
 0x15a   :  { %v1842_v21 = vpop.eup %1841  ;;  %1861 = vrcp.f32 %v1059_v17  ;;  %v1058_v13 = vadd.f32 1.0, %v1840_v52 }
 0x15b   :  { %v1844_v45 = vpop.eup %1843  ;;  %1863 = vrcp.f32 %v1026_v9  ;;  %v1029_v57 = vadd.f32 1.0, %v1842_v21 }
 0x15c   :  { %v1846_v43 = vpop.eup %1845  ;;  %1865 = vrcp.f32 %v1058_v13  ;;  %v1061_v39 = vadd.f32 1.0, %v1844_v45 }
 0x15d   :  { %v1848_v22 = vpop.eup %1847  ;;  %1867 = vrcp.f32 %v1029_v57  ;;  %v1028_v8 = vadd.f32 1.0, %v1846_v43 }
 0x15e   :  { %v1850_v18 = vpop.eup %1849  ;;  %1869 = vrcp.f32 %v1061_v39  ;;  %v1060_v36 = vadd.f32 1.0, %v1848_v22 }
 0x15f   :  { %v1852_v10 = vpop.eup %1851  ;;  %v1246_v37 = vmul.f32 %v1850_v18, %v2734_v40  ;;  %1871 = vrcp.f32 %v1028_v8 }
 0x160   :  { %v1854_v53 = vpop.eup %1853  ;;  %v1217_v51 = vmul.f32 %v1852_v10, %v2737_v6  ;;  %1873 = vrcp.f32 %v1060_v36 }
 0x161   :  { %v1856_v1 = vpop.eup %1855  ;;  %1311 = vst.msk [vmem:[%s2931_s4 + $0x1c0] sm:$0xff] %vm1254_vm2, %v1246_v37  ;;  %v1249_v0 = vmul.f32 %v1854_v53, %v2740_v28 }
 0x162   :  { %v1858_v23 = vpop.eup %1857  ;;  %1282 = vst.msk [vmem:[%s2931_s4 + $0xd8] sm:$0xff] %vm1254_vm2, %v1217_v51  ;;  %v1216_v40 = vmul.f32 %v1856_v1, %v2743_v56 }
 0x163   :  { %v1860_v48 = vpop.eup %1859  ;;  %1314 = vst.msk [vmem:[%s2931_s4 + $0x1d8] sm:$0xff] %vm1254_vm2, %v1249_v0  ;;  %v1248_v6 = vmul.f32 %v1858_v23, %v2757_v12 }
 0x164   :  { %v1862_v50 = vpop.eup %1861  ;;  %1281 = vst.msk [vmem:[%s2931_s4 + $0xd0] sm:$0xff] %vm1254_vm2, %v1216_v40  ;;  %v1219_v28 = vmul.f32 %v1860_v48, %v2760_v32 }
 0x165   :  { %v1864_v35 = vpop.eup %1863  ;;  %1313 = vst.msk [vmem:[%s2931_s4 + $0x1d0] sm:$0xff] %vm1254_vm2, %v1248_v6  ;;  %v1251_v56 = vmul.f32 %v1862_v50, %v2764_v42 }
 0x166   :  { %v1866_v49 = vpop.eup %1865  ;;  %1284 = vst.msk [vmem:[%s2931_s4 + $0xe8] sm:$0xff] %vm1254_vm2, %v1219_v28  ;;  %v1218_v12 = vmul.f32 %v1864_v35, %v2769_v62 }
 0x167   :  { %v1868_v31 = vpop.eup %1867  ;;  %1316 = vst.msk [vmem:[%s2931_s4 + $0x1e8] sm:$0xff] %vm1254_vm2, %v1251_v56  ;;  %v1250_v32 = vmul.f32 %v1866_v49, %v2781_v2 }
 0x168   :  { %v1870_v5 = vpop.eup %1869  ;;  %1283 = vst.msk [vmem:[%s2931_s4 + $0xe0] sm:$0xff] %vm1254_vm2, %v1218_v12  ;;  %v1221_v42 = vmul.f32 %v1868_v31, %v2791_v24 }
 0x169   :  { %v1872_v20 = vpop.eup %1871  ;;  %1315 = vst.msk [vmem:[%s2931_s4 + $0x1e0] sm:$0xff] %vm1254_vm2, %v1250_v32  ;;  %v1253_v62 = vmul.f32 %v1870_v5, %v2800_v60 }
 0x16a   :  { %v1874_v58 = vpop.eup %1873  ;;  %1286 = vst.msk [vmem:[%s2931_s4 + $0xf8] sm:$0xff] %vm1254_vm2, %v1221_v42  ;;  %v1220_v2 = vmul.f32 %v1872_v20, %v2809_v46 }
 0x16b   :  { %1318 = vst.msk [vmem:[%s2931_s4 + $0x1f8] sm:$0xff] %vm1254_vm2, %v1253_v62  ;;  %v1252_v24 = vmul.f32 %v1874_v58, %v2818_v27 }
 0x16c   :  { %1285 = vst.msk [vmem:[%s2931_s4 + $0xf0] sm:$0xff] %vm1254_vm2, %v1220_v2 }
 0x16d   :  { %1317 = vst.msk [vmem:[%s2931_s4 + $0x1f0] sm:$0xff] %vm1254_vm2, %v1252_v24 }

// kernel: inverted_residual_forward.7
= control target key start
LH: loop header
LB: loop body
LE: loop exit
PB: predicated region body
PF: predicated region fallthrough
CT: control target
= control target key end

     0   :  { %s1257_s21 = smov 0   ;;  %s1259_s22 = smov 0   ;;  %s1584_s0 = inlined_call_operand.vmem [shape: f32[2,256,24], index: 0, kind: input, shape index: {}]   ;;  %s1585_s1 = inlined_call_operand.vmem [shape: f32[2,1,24], index: 1, kind: input, shape index: {}]   ;;  %s1586_s2 = inlined_call_operand.vmem [shape: f32[24,4], index: 2, kind: input, shape index: {}]   ;;  %s1587_s3 = inlined_call_operand.vmem [shape: f32[1,4], index: 3, kind: input, shape index: {}]   ;;  %s1588_s4 = inlined_call_operand.vmem [shape: f32[1,4], index: 4, kind: input, shape index: {}]   ;;  %s1589_s5 = inlined_call_operand.vmem [shape: f32[2,256,4], index: 5, kind: input, shape index: {}]   ;;  %s1590_s6 = inlined_call_operand.vmem [shape: f32[2,256,4], index: 6, kind: output, shape index: {}]  }
   0x1   :  { %s1261_s23 = smov 0  }
   0x2 LB: > { %s28_s24 = sadd.s32 1, %s1216_s22  ;;  %p1030_p0 = scmp.ge.s32.totalorder %s1220_s23, 1  ;;  %s1220_s23 = sphi %s1261_s23, %s16_s23   ;;  %s1216_s22 = sphi %s1259_s22, %s1592_s22   ;;  %s1212_s21 = sphi %s1257_s21, %s1591_s21  }
   0x3   : > { %p30_p1 = scmp.ge.s32.totalorder %s28_s24, 2  ;;  %p258_p2 = scmp.lt.s32.totalorder %s1220_s23, 3 }
   0x5   : > { %s1594_s24 = smov (%p30_p1, %s28_s24), 0  ;;  %p259_p3 = pnand %p1030_p0, %p258_p2 }
   0x6   : > { %v412_v0 = vld [vmem:[%s1586_s2] sm:$0xff] (!%p259_p3)  ;;  %v413_v1 = vld [vmem:[%s1586_s2 + $0x8] sm:$0xff] (!%p259_p3)  ;;  %p309_p4 = scmp.lt.s32.totalorder (!%p259_p3), %s1212_s21, 1  ;;  %v414_v3 = vld [vmem:[%s1586_s2 + $0x10] sm:$0xff] (!%p259_p3)  ;;  %vm415_vm0 = vcmask (!%p259_p3), 195584   ;;  %vm879_vm1 = vcmask (!%p259_p3), 31744  }
   0x7   : > { %262 = sbr.rel (%p259_p3) target bundleno = 270 (0x10e), region = 44  ;;  %v1166_v2 = vpack.c.bf16 (!%p259_p3), %v413_v1, %v412_v0 }
   0x9   : > { %1167 = vmatprep.subr.bf16.mxu0 (!%p259_p3), %v1166_v2  ;;  %1170 = vmatprep.subr.bf16.mxu1 (!%p259_p3), %v1166_v2 }
   0xa   : > { %1169 = vmatpush3.bf16.msra.mxu0 (!%p259_p3), %v1166_v2  ;;  %1172 = vmatpush3.bf16.msra.mxu1 (!%p259_p3), %v1166_v2 }
   0xb   : > { %1116 = vmatprep.subr.mxu0 (!%p259_p3), %v414_v3  ;;  %1171 = vmatprep.subr.mxu1 (!%p259_p3), %v414_v3 }
   0xe   : > { %s1596_s21 = smov (!%p309_p4, %s1212_s21), 1  ;;  %1117 = vmatpush3.msra.mxu0 %v414_v3  ;;  %1173 = vmatpush3.msra.mxu1 %v414_v3 }
   0xf   : > { %s1284_s7 = sshll.u32 %s1596_s21, 8  ;;  %s320_s10 = scalar_lea.vmem %s1585_s1, %s1596_s21 }
  0x10   : > { %s1293_s13 = scalar_lea.vmem %s1584_s0, %s1284_s7  ;;  %v1295_v4 = vld [vmem:[%s320_s10] ss:$0 sm:$0xff]  ;;  %s1402_s18 = scalar_lea.vmem %s1589_s5, %s1284_s7 }
  0x11   : > { %v341_v5 = vld [vmem:[%s1293_s13] sm:$0xff]  ;;  %v342_v7 = vld [vmem:[%s1293_s13 + $0x8] sm:$0xff]  ;;  %v343_v12 = vld [vmem:[%s1293_s13 + $0x10] sm:$0xff]  ;;  %s1423_s26 = scalar_lea.vmem %s1590_s6, %s1284_s7 }
  0x12   : > { %v357_v6 = vld [vmem:[%s1293_s13 + $0x80] sm:$0xff]  ;;  %v380_v8 = vmul.f32 %v1295_v4, %v341_v5  ;;  %v381_v10 = vmul.f32 %v1295_v4, %v342_v7  ;;  %v358_v11 = vld [vmem:[%s1293_s13 + $0x88] sm:$0xff]  ;;  %v359_v13 = vld [vmem:[%s1293_s13 + $0x90] sm:$0xff]  ;;  %v382_v15 = vmul.f32 %v1295_v4, %v343_v12 }
  0x13   : > { %v396_v9 = vmul.f32 %v1295_v4, %v357_v6  ;;  %v397_v14 = vmul.f32 %v1295_v4, %v358_v11  ;;  %v398_v16 = vmul.f32 %v1295_v4, %v359_v13  ;;  %v344_v17 = vld [vmem:[%s1293_s13 + $0x18] sm:$0xff]  ;;  %v345_v19 = vld [vmem:[%s1293_s13 + $0x20] sm:$0xff]  ;;  %v346_v25 = vld [vmem:[%s1293_s13 + $0x28] sm:$0xff] }
  0x14   : > { %v360_v18 = vld [vmem:[%s1293_s13 + $0x98] sm:$0xff]  ;;  %1118 = vmatprep.mubr.msk.f32.mxu0 %vm415_vm0, %v380_v8  ;;  %v361_v20 = vld [vmem:[%s1293_s13 + $0xa0] sm:$0xff]  ;;  %v383_v21 = vmul.f32 %v1295_v4, %v344_v17  ;;  %v384_v23 = vmul.f32 %v1295_v4, %v345_v19  ;;  %v362_v26 = vld [vmem:[%s1293_s13 + $0xa8] sm:$0xff]  ;;  %v385_v29 = vmul.f32 %v1295_v4, %v346_v25 }
  0x15   : > { %1142 = vmatprep.mubr.msk.f32.mxu1 %vm415_vm0, %v396_v9  ;;  %1119 = vmatmul.mubr.msk.f32.vlgmr.msra.gmra.mrb[0].mxu0 %vm415_vm0, %v381_v10  ;;  %v399_v22 = vmul.f32 %v1295_v4, %v360_v18  ;;  %v400_v24 = vmul.f32 %v1295_v4, %v361_v20  ;;  %v347_v27 = vld [vmem:[%s1293_s13 + $0x30] sm:$0xff]  ;;  %v401_v30 = vmul.f32 %v1295_v4, %v362_v26  ;;  %v348_v33 = vld [vmem:[%s1293_s13 + $0x38] sm:$0xff]  ;;  %v349_v35 = vld [vmem:[%s1293_s13 + $0x40] sm:$0xff] }
  0x16   : > { %1143 = vmatmul.mubr.msk.f32.vlgmr.msra.gmra.mrb[0].mxu1 %vm415_vm0, %v397_v14  ;;  %1121 = vmatprep.mubr.msk.f32.mxu0 %vm415_vm0, %v382_v15  ;;  %v363_v28 = vld [vmem:[%s1293_s13 + $0xb0] sm:$0xff]  ;;  %v386_v31 = vmul.f32 %v1295_v4, %v347_v27  ;;  %v364_v34 = vld [vmem:[%s1293_s13 + $0xb8] sm:$0xff]  ;;  %v365_v36 = vld [vmem:[%s1293_s13 + $0xc0] sm:$0xff]  ;;  %v387_v37 = vmul.f32 %v1295_v4, %v348_v33  ;;  %v388_v39 = vmul.f32 %v1295_v4, %v349_v35 }
  0x17   : > { %1145 = vmatprep.mubr.msk.f32.mxu1 %vm415_vm0, %v398_v16  ;;  %v402_v32 = vmul.f32 %v1295_v4, %v363_v28  ;;  %v403_v38 = vmul.f32 %v1295_v4, %v364_v34  ;;  %v404_v40 = vmul.f32 %v1295_v4, %v365_v36  ;;  %v350_v41 = vld [vmem:[%s1293_s13 + $0x48] sm:$0xff]  ;;  %v351_v43 = vld [vmem:[%s1293_s13 + $0x50] sm:$0xff]  ;;  %v352_v49 = vld [vmem:[%s1293_s13 + $0x58] sm:$0xff] }
  0x18   : > { %v366_v42 = vld [vmem:[%s1293_s13 + $0xc8] sm:$0xff]  ;;  %v367_v44 = vld [vmem:[%s1293_s13 + $0xd0] sm:$0xff]  ;;  %v389_v45 = vmul.f32 %v1295_v4, %v350_v41  ;;  %v390_v47 = vmul.f32 %v1295_v4, %v351_v43  ;;  %v368_v50 = vld [vmem:[%s1293_s13 + $0xd8] sm:$0xff]  ;;  %v391_v53 = vmul.f32 %v1295_v4, %v352_v49 }
  0x19   : > { %1122 = vmatmul.mubr.msk.f32.gmra.mrb[2].mxu0 %vm415_vm0, %v383_v21  ;;  %v405_v46 = vmul.f32 %v1295_v4, %v366_v42  ;;  %v406_v48 = vmul.f32 %v1295_v4, %v367_v44  ;;  %v353_v51 = vld [vmem:[%s1293_s13 + $0x60] sm:$0xff]  ;;  %v407_v54 = vmul.f32 %v1295_v4, %v368_v50  ;;  %v354_v57 = vld [vmem:[%s1293_s13 + $0x68] sm:$0xff]  ;;  %v355_v59 = vld [vmem:[%s1293_s13 + $0x70] sm:$0xff] }
  0x1a   : > { %1146 = vmatmul.mubr.msk.f32.gmra.mrb[2].mxu1 %vm415_vm0, %v399_v22  ;;  %1124 = vmatprep.mubr.msk.f32.mxu0 %vm415_vm0, %v384_v23  ;;  %v369_v52 = vld [vmem:[%s1293_s13 + $0xe0] sm:$0xff]  ;;  %v392_v55 = vmul.f32 %v1295_v4, %v353_v51  ;;  %v370_v58 = vld [vmem:[%s1293_s13 + $0xe8] sm:$0xff]  ;;  %v371_v60 = vld [vmem:[%s1293_s13 + $0xf0] sm:$0xff]  ;;  %v393_v61 = vmul.f32 %v1295_v4, %v354_v57  ;;  %v394_v63 = vmul.f32 %v1295_v4, %v355_v59 }
  0x1b   : > { %1148 = vmatprep.mubr.msk.f32.mxu1 %vm415_vm0, %v400_v24  ;;  %v408_v56 = vmul.f32 %v1295_v4, %v369_v52  ;;  %v409_v62 = vmul.f32 %v1295_v4, %v370_v58  ;;  %v410_v0 = vmul.f32 %v1295_v4, %v371_v60  ;;  %v356_v1 = vld [vmem:[%s1293_s13 + $0x78] sm:$0xff]  ;;  %v1396_v6 = vld [vmem:[%s1587_s3] ss:$0 sm:$0xff]  ;;  %v816_v13 = vld [vmem:[%s1402_s18 + $0x8] sm:$0xff] }
  0x1c   : > { %v372_v2 = vld [vmem:[%s1293_s13 + $0xf8] sm:$0xff]  ;;  %v395_v3 = vmul.f32 %v1295_v4, %v356_v1  ;;  %v1407_v7 = vld [vmem:[%s1588_s4] ss:$0 sm:$0xff]  ;;  %v832_v14 = vld [vmem:[%s1402_s18 + $0x88] sm:$0xff] }
  0x1d   : > { %1125 = vmatmul.mubr.msk.f32.gmra.mrb[4].mxu0 %vm415_vm0, %v385_v29  ;;  %v411_v5 = vmul.f32 %v1295_v4, %v372_v2  ;;  %v815_v19 = vld [vmem:[%s1402_s18] sm:$0xff]  ;;  %v818_v33 = vld [vmem:[%s1402_s18 + $0x18] sm:$0xff] }
  0x1e   : > { %1149 = vmatmul.mubr.msk.f32.gmra.mrb[4].mxu1 %vm415_vm0, %v401_v30  ;;  %1127 = vmatprep.mubr.msk.f32.mxu0 %vm415_vm0, %v386_v31  ;;  %v831_v20 = vld [vmem:[%s1402_s18 + $0x80] sm:$0xff]  ;;  %v834_v34 = vld [vmem:[%s1402_s18 + $0x98] sm:$0xff] }
  0x1f   : > { %1151 = vmatprep.mubr.msk.f32.mxu1 %vm415_vm0, %v402_v32  ;;  %v819_v59 = vld [vmem:[%s1402_s18 + $0x20] sm:$0xff] }
  0x20   : > { %v835_v60 = vld [vmem:[%s1402_s18 + $0xa0] sm:$0xff] }
  0x21   : > { %1128 = vmatmul.mubr.msk.f32.gmra.mrb[6].mxu0 %vm415_vm0, %v387_v37 }
  0x22   : > { %1152 = vmatmul.mubr.msk.f32.gmra.mrb[6].mxu1 %vm415_vm0, %v403_v38  ;;  %1130 = vmatprep.mubr.msk.f32.mxu0 %vm415_vm0, %v388_v39  ;;  %v817_v39 = vld [vmem:[%s1402_s18 + $0x10] sm:$0xff] }
  0x23   : > { %1154 = vmatprep.mubr.msk.f32.mxu1 %vm415_vm0, %v404_v40  ;;  %v833_v40 = vld [vmem:[%s1402_s18 + $0x90] sm:$0xff] }
  0x25   : > { %1131 = vmatmul.mubr.msk.f32.gmra.mrb[8].mxu0 %vm415_vm0, %v389_v45 }
  0x26   : > { %1155 = vmatmul.mubr.msk.f32.gmra.mrb[8].mxu1 %vm415_vm0, %v405_v46  ;;  %1133 = vmatprep.mubr.msk.f32.mxu0 %vm415_vm0, %v390_v47 }
  0x27   : > { %1157 = vmatprep.mubr.msk.f32.mxu1 %vm415_vm0, %v406_v48 }
  0x29   : > { %1134 = vmatmul.mubr.msk.f32.gmra.mrb[10].mxu0 %vm415_vm0, %v391_v53  ;;  %v820_v53 = vld [vmem:[%s1402_s18 + $0x28] sm:$0xff] }
  0x2a   : > { %1158 = vmatmul.mubr.msk.f32.gmra.mrb[10].mxu1 %vm415_vm0, %v407_v54  ;;  %1136 = vmatprep.mubr.msk.f32.mxu0 %vm415_vm0, %v392_v55  ;;  %v836_v54 = vld [vmem:[%s1402_s18 + $0xa8] sm:$0xff] }
  0x2b   : > { %1160 = vmatprep.mubr.msk.f32.mxu1 %vm415_vm0, %v408_v56 }
  0x2d   : > { %1137 = vmatmul.mubr.msk.f32.gmra.mrb[12].mxu0 %vm415_vm0, %v393_v61 }
  0x2e   : > { %1161 = vmatmul.mubr.msk.f32.gmra.mrb[12].mxu1 %vm415_vm0, %v409_v62  ;;  %1139 = vmatprep.mubr.msk.f32.mxu0 %vm415_vm0, %v394_v63 }
  0x2f   : > { %1163 = vmatprep.mubr.msk.f32.mxu1 %vm415_vm0, %v410_v0 }
  0x31   : > { %1140 = vmatmul.mubr.msk.f32.gmra.mrb[14].mxu0 %vm415_vm0, %v395_v3 }
  0x32   : > { %1164 = vmatmul.mubr.msk.f32.gmra.mrb[14].mxu1 %vm415_vm0, %v411_v5 }
  0xe8   : > { %v1120_v4 = vpop.f32.mrb[0].mxu0 }
  0xe9   : > { %v1144_v8 = vpop.f32.mrb[0].mxu1  ;;  %v745_v9 = vmul.f32 %v1120_v4, %v1396_v6  ;;  %v578_v11 = vpop.f32.mrb[1].mxu0 }
  0xea   : > { %v761_v10 = vmul.f32 %v1144_v8, %v1396_v6  ;;  %v658_v12 = vpop.f32.mrb[1].mxu1  ;;  %v744_v15 = vmul.f32 %v1396_v6, %v578_v11  ;;  %v822_v11 = vld [vmem:[%s1402_s18 + $0x38] sm:$0xff] }
  0xeb   : > { %v760_v16 = vmul.f32 %v1396_v6, %v658_v12  ;;  %v784_v17 = vadd.f32 %v1407_v7, %v745_v9  ;;  %v838_v12 = vld [vmem:[%s1402_s18 + $0xb8] sm:$0xff] }
  0xec   : > { %v800_v18 = vadd.f32 %v1407_v7, %v761_v10  ;;  %v783_v21 = vadd.f32 %v1407_v7, %v744_v15  ;;  %v1123_v23 = vpop.f32.mrb[2].mxu0 }
  0xed   : > { %v799_v22 = vadd.f32 %v1407_v7, %v760_v16  ;;  %v1147_v24 = vpop.f32.mrb[2].mxu1  ;;  %v848_v25 = vadd.f32 %v816_v13, %v784_v17  ;;  %v747_v27 = vmul.f32 %v1123_v23, %v1396_v6  ;;  %v588_v29 = vpop.f32.mrb[3].mxu0  ;;  %v821_v17 = vld [vmem:[%s1402_s18 + $0x30] sm:$0xff] }
  0xee   : > { %v864_v26 = vadd.f32 %v832_v14, %v800_v18  ;;  %v763_v28 = vmul.f32 %v1147_v24, %v1396_v6  ;;  %v668_v30 = vpop.f32.mrb[3].mxu1  ;;  %v847_v31 = vadd.f32 %v815_v19, %v783_v21  ;;  %v746_v35 = vmul.f32 %v1396_v6, %v588_v29  ;;  %v837_v18 = vld [vmem:[%s1402_s18 + $0xb0] sm:$0xff] }
  0xef   : > { %v863_v32 = vadd.f32 %v831_v20, %v799_v22  ;;  %v762_v36 = vmul.f32 %v1396_v6, %v668_v30  ;;  %881 = vst.msk [vmem:[%s1423_s26 + $0x8] sm:$0xff] %vm879_vm1, %v848_v25  ;;  %v786_v37 = vadd.f32 %v1407_v7, %v747_v27 }
  0xf0   : > { %897 = vst.msk [vmem:[%s1423_s26 + $0x88] sm:$0xff] %vm879_vm1, %v864_v26  ;;  %v802_v38 = vadd.f32 %v1407_v7, %v763_v28  ;;  %880 = vst.msk [vmem:[%s1423_s26] sm:$0xff] %vm879_vm1, %v847_v31  ;;  %v785_v41 = vadd.f32 %v1407_v7, %v746_v35  ;;  %v1126_v43 = vpop.f32.mrb[4].mxu0  ;;  %v824_v31 = vld [vmem:[%s1402_s18 + $0x48] sm:$0xff] }
  0xf1   : > { %896 = vst.msk [vmem:[%s1423_s26 + $0x80] sm:$0xff] %vm879_vm1, %v863_v32  ;;  %v801_v42 = vadd.f32 %v1407_v7, %v762_v36  ;;  %v1150_v44 = vpop.f32.mrb[4].mxu1  ;;  %v850_v45 = vadd.f32 %v818_v33, %v786_v37  ;;  %v749_v47 = vmul.f32 %v1126_v43, %v1396_v6  ;;  %v598_v49 = vpop.f32.mrb[5].mxu0  ;;  %v840_v32 = vld [vmem:[%s1402_s18 + $0xc8] sm:$0xff]  ;;  %v823_v37 = vld [vmem:[%s1402_s18 + $0x40] sm:$0xff] }
  0xf2   : > { %v866_v46 = vadd.f32 %v834_v34, %v802_v38  ;;  %v765_v48 = vmul.f32 %v1150_v44, %v1396_v6  ;;  %v678_v50 = vpop.f32.mrb[5].mxu1  ;;  %v849_v51 = vadd.f32 %v817_v39, %v785_v41  ;;  %v748_v55 = vmul.f32 %v1396_v6, %v598_v49  ;;  %v839_v38 = vld [vmem:[%s1402_s18 + $0xc0] sm:$0xff] }
  0xf3   : > { %v865_v52 = vadd.f32 %v833_v40, %v801_v42  ;;  %v764_v56 = vmul.f32 %v1396_v6, %v678_v50  ;;  %883 = vst.msk [vmem:[%s1423_s26 + $0x18] sm:$0xff] %vm879_vm1, %v850_v45  ;;  %v788_v57 = vadd.f32 %v1407_v7, %v749_v47 }
  0xf4   : > { %899 = vst.msk [vmem:[%s1423_s26 + $0x98] sm:$0xff] %vm879_vm1, %v866_v46  ;;  %v804_v58 = vadd.f32 %v1407_v7, %v765_v48  ;;  %882 = vst.msk [vmem:[%s1423_s26 + $0x10] sm:$0xff] %vm879_vm1, %v849_v51  ;;  %v787_v61 = vadd.f32 %v1407_v7, %v748_v55  ;;  %v1129_v63 = vpop.f32.mrb[6].mxu0  ;;  %v826_v51 = vld [vmem:[%s1402_s18 + $0x58] sm:$0xff] }
  0xf5   : > { %898 = vst.msk [vmem:[%s1423_s26 + $0x90] sm:$0xff] %vm879_vm1, %v865_v52  ;;  %v803_v62 = vadd.f32 %v1407_v7, %v764_v56  ;;  %v1153_v0 = vpop.f32.mrb[6].mxu1  ;;  %v852_v1 = vadd.f32 %v820_v53, %v788_v57  ;;  %v751_v3 = vmul.f32 %v1129_v63, %v1396_v6  ;;  %v608_v4 = vpop.f32.mrb[7].mxu0  ;;  %v842_v52 = vld [vmem:[%s1402_s18 + $0xd8] sm:$0xff]  ;;  %v825_v57 = vld [vmem:[%s1402_s18 + $0x50] sm:$0xff] }
  0xf6   : > { %v868_v2 = vadd.f32 %v836_v54, %v804_v58  ;;  %v767_v5 = vmul.f32 %v1153_v0, %v1396_v6  ;;  %v688_v8 = vpop.f32.mrb[7].mxu1  ;;  %v851_v9 = vadd.f32 %v819_v59, %v787_v61  ;;  %v750_v13 = vmul.f32 %v1396_v6, %v608_v4  ;;  %v841_v58 = vld [vmem:[%s1402_s18 + $0xd0] sm:$0xff] }
  0xf7   : > { %v867_v10 = vadd.f32 %v835_v60, %v803_v62  ;;  %v766_v14 = vmul.f32 %v1396_v6, %v688_v8  ;;  %885 = vst.msk [vmem:[%s1423_s26 + $0x28] sm:$0xff] %vm879_vm1, %v852_v1  ;;  %v790_v15 = vadd.f32 %v1407_v7, %v751_v3 }
  0xf8   : > { %901 = vst.msk [vmem:[%s1423_s26 + $0xa8] sm:$0xff] %vm879_vm1, %v868_v2  ;;  %v806_v16 = vadd.f32 %v1407_v7, %v767_v5  ;;  %884 = vst.msk [vmem:[%s1423_s26 + $0x20] sm:$0xff] %vm879_vm1, %v851_v9  ;;  %v789_v19 = vadd.f32 %v1407_v7, %v750_v13  ;;  %v1132_v21 = vpop.f32.mrb[8].mxu0  ;;  %v828_v9 = vld [vmem:[%s1402_s18 + $0x68] sm:$0xff] }
  0xf9   : > { %900 = vst.msk [vmem:[%s1423_s26 + $0xa0] sm:$0xff] %vm879_vm1, %v867_v10  ;;  %v805_v20 = vadd.f32 %v1407_v7, %v766_v14  ;;  %v1156_v22 = vpop.f32.mrb[8].mxu1  ;;  %v854_v23 = vadd.f32 %v822_v11, %v790_v15  ;;  %v753_v25 = vmul.f32 %v1132_v21, %v1396_v6  ;;  %v618_v27 = vpop.f32.mrb[9].mxu0  ;;  %v844_v10 = vld [vmem:[%s1402_s18 + $0xe8] sm:$0xff]  ;;  %v827_v15 = vld [vmem:[%s1402_s18 + $0x60] sm:$0xff] }
  0xfa   : > { %v870_v24 = vadd.f32 %v838_v12, %v806_v16  ;;  %v769_v26 = vmul.f32 %v1156_v22, %v1396_v6  ;;  %v698_v28 = vpop.f32.mrb[9].mxu1  ;;  %v853_v29 = vadd.f32 %v821_v17, %v789_v19  ;;  %v752_v33 = vmul.f32 %v1396_v6, %v618_v27  ;;  %v843_v16 = vld [vmem:[%s1402_s18 + $0xe0] sm:$0xff] }
  0xfb   : > { %v869_v30 = vadd.f32 %v837_v18, %v805_v20  ;;  %v768_v34 = vmul.f32 %v1396_v6, %v698_v28  ;;  %887 = vst.msk [vmem:[%s1423_s26 + $0x38] sm:$0xff] %vm879_vm1, %v854_v23  ;;  %v792_v35 = vadd.f32 %v1407_v7, %v753_v25 }
  0xfc   : > { %903 = vst.msk [vmem:[%s1423_s26 + $0xb8] sm:$0xff] %vm879_vm1, %v870_v24  ;;  %v808_v36 = vadd.f32 %v1407_v7, %v769_v26  ;;  %886 = vst.msk [vmem:[%s1423_s26 + $0x30] sm:$0xff] %vm879_vm1, %v853_v29  ;;  %v791_v39 = vadd.f32 %v1407_v7, %v752_v33  ;;  %v1135_v41 = vpop.f32.mrb[10].mxu0  ;;  %v830_v29 = vld [vmem:[%s1402_s18 + $0x78] sm:$0xff] }
  0xfd   : > { %902 = vst.msk [vmem:[%s1423_s26 + $0xb0] sm:$0xff] %vm879_vm1, %v869_v30  ;;  %v807_v40 = vadd.f32 %v1407_v7, %v768_v34  ;;  %v1159_v42 = vpop.f32.mrb[10].mxu1  ;;  %v856_v43 = vadd.f32 %v824_v31, %v792_v35  ;;  %v755_v45 = vmul.f32 %v1135_v41, %v1396_v6  ;;  %v628_v47 = vpop.f32.mrb[11].mxu0  ;;  %v846_v30 = vld [vmem:[%s1402_s18 + $0xf8] sm:$0xff]  ;;  %v829_v35 = vld [vmem:[%s1402_s18 + $0x70] sm:$0xff] }
  0xfe   : > { %v872_v44 = vadd.f32 %v840_v32, %v808_v36  ;;  %v771_v46 = vmul.f32 %v1159_v42, %v1396_v6  ;;  %v708_v48 = vpop.f32.mrb[11].mxu1  ;;  %v855_v49 = vadd.f32 %v823_v37, %v791_v39  ;;  %v754_v53 = vmul.f32 %v1396_v6, %v628_v47  ;;  %v845_v36 = vld [vmem:[%s1402_s18 + $0xf0] sm:$0xff] }
  0xff   : > { %v871_v50 = vadd.f32 %v839_v38, %v807_v40  ;;  %v770_v54 = vmul.f32 %v1396_v6, %v708_v48  ;;  %889 = vst.msk [vmem:[%s1423_s26 + $0x48] sm:$0xff] %vm879_vm1, %v856_v43  ;;  %v794_v55 = vadd.f32 %v1407_v7, %v755_v45 }
 0x100   : > { %905 = vst.msk [vmem:[%s1423_s26 + $0xc8] sm:$0xff] %vm879_vm1, %v872_v44  ;;  %v810_v56 = vadd.f32 %v1407_v7, %v771_v46  ;;  %888 = vst.msk [vmem:[%s1423_s26 + $0x40] sm:$0xff] %vm879_vm1, %v855_v49  ;;  %v793_v59 = vadd.f32 %v1407_v7, %v754_v53  ;;  %v1138_v61 = vpop.f32.mrb[12].mxu0 }
 0x101   : > { %904 = vst.msk [vmem:[%s1423_s26 + $0xc0] sm:$0xff] %vm879_vm1, %v871_v50  ;;  %v809_v60 = vadd.f32 %v1407_v7, %v770_v54  ;;  %v1162_v62 = vpop.f32.mrb[12].mxu1  ;;  %v858_v63 = vadd.f32 %v826_v51, %v794_v55  ;;  %v757_v1 = vmul.f32 %v1138_v61, %v1396_v6  ;;  %v638_v3 = vpop.f32.mrb[13].mxu0 }
 0x102   : > { %v874_v0 = vadd.f32 %v842_v52, %v810_v56  ;;  %v773_v2 = vmul.f32 %v1162_v62, %v1396_v6  ;;  %v718_v5 = vpop.f32.mrb[13].mxu1  ;;  %v857_v4 = vadd.f32 %v825_v57, %v793_v59  ;;  %v756_v11 = vmul.f32 %v1396_v6, %v638_v3 }
 0x103   : > { %v873_v8 = vadd.f32 %v841_v58, %v809_v60  ;;  %v772_v12 = vmul.f32 %v1396_v6, %v718_v5  ;;  %891 = vst.msk [vmem:[%s1423_s26 + $0x58] sm:$0xff] %vm879_vm1, %v858_v63  ;;  %v796_v13 = vadd.f32 %v1407_v7, %v757_v1 }
 0x104   : > { %907 = vst.msk [vmem:[%s1423_s26 + $0xd8] sm:$0xff] %vm879_vm1, %v874_v0  ;;  %v812_v14 = vadd.f32 %v1407_v7, %v773_v2  ;;  %890 = vst.msk [vmem:[%s1423_s26 + $0x50] sm:$0xff] %vm879_vm1, %v857_v4  ;;  %v795_v17 = vadd.f32 %v1407_v7, %v756_v11  ;;  %v1141_v19 = vpop.f32.mrb[14].mxu0 }
 0x105   : > { %906 = vst.msk [vmem:[%s1423_s26 + $0xd0] sm:$0xff] %vm879_vm1, %v873_v8  ;;  %v811_v18 = vadd.f32 %v1407_v7, %v772_v12  ;;  %v1165_v20 = vpop.f32.mrb[14].mxu1  ;;  %v860_v21 = vadd.f32 %v828_v9, %v796_v13  ;;  %v759_v23 = vmul.f32 %v1141_v19, %v1396_v6  ;;  %v648_v25 = vpop.f32.mrb[15].mxu0 }
 0x106   : > { %v876_v22 = vadd.f32 %v844_v10, %v812_v14  ;;  %v775_v24 = vmul.f32 %v1165_v20, %v1396_v6  ;;  %v728_v26 = vpop.f32.mrb[15].mxu1  ;;  %v859_v27 = vadd.f32 %v827_v15, %v795_v17  ;;  %v758_v31 = vmul.f32 %v1396_v6, %v648_v25 }
 0x107   : > { %v875_v28 = vadd.f32 %v843_v16, %v811_v18  ;;  %v774_v32 = vmul.f32 %v1396_v6, %v728_v26  ;;  %893 = vst.msk [vmem:[%s1423_s26 + $0x68] sm:$0xff] %vm879_vm1, %v860_v21  ;;  %v798_v33 = vadd.f32 %v1407_v7, %v759_v23 }
 0x108   : > { %909 = vst.msk [vmem:[%s1423_s26 + $0xe8] sm:$0xff] %vm879_vm1, %v876_v22  ;;  %v814_v34 = vadd.f32 %v1407_v7, %v775_v24  ;;  %892 = vst.msk [vmem:[%s1423_s26 + $0x60] sm:$0xff] %vm879_vm1, %v859_v27  ;;  %v797_v37 = vadd.f32 %v1407_v7, %v758_v31 }
 0x109   : > { %908 = vst.msk [vmem:[%s1423_s26 + $0xe0] sm:$0xff] %vm879_vm1, %v875_v28  ;;  %v813_v6 = vadd.f32 %v1407_v7, %v774_v32  ;;  %v862_v38 = vadd.f32 %v830_v29, %v798_v33 }
 0x10a   : > { %v878_v39 = vadd.f32 %v846_v30, %v814_v34  ;;  %v861_v40 = vadd.f32 %v829_v35, %v797_v37 }
 0x10b   : > { %v877_v41 = vadd.f32 %v845_v36, %v813_v6  ;;  %895 = vst.msk [vmem:[%s1423_s26 + $0x78] sm:$0xff] %vm879_vm1, %v862_v38 }
 0x10c   : > { %911 = vst.msk [vmem:[%s1423_s26 + $0xf8] sm:$0xff] %vm879_vm1, %v878_v39  ;;  %894 = vst.msk [vmem:[%s1423_s26 + $0x70] sm:$0xff] %vm879_vm1, %v861_v40 }
 0x10d   : > { %910 = vst.msk [vmem:[%s1423_s26 + $0xf0] sm:$0xff] %vm879_vm1, %v877_v41 }
 0x10e PF: > { %s16_s23 = sadd.s32 1, %s1220_s23   ;;  %s1591_s21 = smov %s1216_s22 }
 0x10f   : > { %p13_p5 = scmp.ge.s32.totalorder %s16_s23, 4   ;;  %s1592_s22 = smov %s1594_s24 }
 0x111   :  { %15 = sbr.rel (!%p13_p5) target bundleno = 2 (0x2), region = 80 }

// kernel: inverted_residual_forward.5
= control target key start
LH: loop header
LB: loop body
LE: loop exit
PB: predicated region body
PF: predicated region fallthrough
CT: control target
= control target key end

     0   :  { %s2003_s18 = smov 0   ;;  %s3294_s0 = inlined_call_operand.vmem [shape: f32[2,16,16,24], index: 0, kind: input, shape index: {}]   ;;  %s3295_s1 = inlined_call_operand.vmem [shape: f32[3,3,24], index: 1, kind: input, shape index: {}]   ;;  %s3296_s2 = inlined_call_operand.vmem [shape: f32[1,24], index: 2, kind: input, shape index: {}]   ;;  %s3297_s3 = inlined_call_operand.vmem [shape: f32[1,24], index: 3, kind: input, shape index: {}]   ;;  %s3298_s4 = inlined_call_operand.vmem [shape: f32[2,16,16,24], index: 4, kind: output, shape index: {0}]   ;;  %s3299_s5 = inlined_call_operand.vmem [shape: f32[2,1,24], index: 5, kind: output, shape index: {1}]  }
   0x1 LB: > { %s1754_s19 = sadd.s32 4294967295, %s1970_s18   ;;  %p1758_p0 = scmp.ge.s32.totalorder %s1970_s18, 1  ;;  %s1970_s18 = sphi %s2003_s18, %s16_s18  }
   0x2   : > { %p190_p1 = scmp.lt.s32.totalorder %s1970_s18, 3 }
   0x4   : > { %p191_p2 = pnand %p1758_p0, %p190_p1 }
   0x5   : > { %vm234_vm0 = vcmask (!%p191_p2), 195584   ;;  %vm237_vm1 = vcmask (!%p191_p2), 189440   ;;  %p2013_p3 = scmp.lt.s32.totalorder (!%p191_p2), %s1754_s19, 1  ;;  %v1972_v0 = vmov (!%p191_p2), 0.0   ;;  %v2127_v22 = vld [vmem:[%s3295_s1] ss:$0 sm:$0xff] (!%p191_p2) }
   0x6   : > { %194 = sbr.rel (%p191_p2) target bundleno = 294 (0x126), region = 36  ;;  %235 = vst.msk [vmem:[#allocation2] sm:$0xff] (!%p191_p2), %vm234_vm0, %v1972_v0  ;;  %236 = vst.msk [vmem:[#allocation2 + $0x8] sm:$0xff] (!%p191_p2), %vm234_vm0, %v1972_v0  ;;  %v2138_v26 = vld [vmem:[%s3295_s1 + $0x1] ss:$0 sm:$0xff] (!%p191_p2)  ;;  %vm1672_vm2 = vcmask (!%p191_p2), 188416  }
   0x7   : > { %239 = vst.msk [vmem:[#allocation2 + $0x18] sm:$0xff] (!%p191_p2), %vm234_vm0, %v1972_v0  ;;  %240 = vst.msk [vmem:[#allocation2 + $0x20] sm:$0xff] (!%p191_p2), %vm234_vm0, %v1972_v0  ;;  %v2143_v27 = vld [vmem:[%s3295_s1 + $0x2] ss:$0 sm:$0xff] (!%p191_p2)  ;;  %v2148_v28 = vld [vmem:[%s3295_s1 + $0x4] ss:$0 sm:$0xff] (!%p191_p2) }
   0x8   : > { %242 = vst.msk [vmem:[#allocation2 + $0x30] sm:$0xff] (!%p191_p2), %vm234_vm0, %v1972_v0  ;;  %243 = vst.msk [vmem:[#allocation2 + $0x38] sm:$0xff] (!%p191_p2), %vm234_vm0, %v1972_v0  ;;  %v2159_v32 = vld [vmem:[%s3295_s1 + $0x5] ss:$0 sm:$0xff] (!%p191_p2)  ;;  %v2164_v33 = vld [vmem:[%s3295_s1 + $0x6] ss:$0 sm:$0xff] (!%p191_p2) }
   0x9   : > { %245 = vst.msk [vmem:[#allocation2 + $0x48] sm:$0xff] (!%p191_p2), %vm234_vm0, %v1972_v0  ;;  %246 = vst.msk [vmem:[#allocation2 + $0x50] sm:$0xff] (!%p191_p2), %vm234_vm0, %v1972_v0  ;;  %v2169_v34 = vld [vmem:[%s3295_s1 + $0x8] ss:$0 sm:$0xff] (!%p191_p2)  ;;  %v2180_v38 = vld [vmem:[%s3295_s1 + $0x9] ss:$0 sm:$0xff] (!%p191_p2) }
   0xa   : > { %248 = vst.msk [vmem:[#allocation2 + $0x60] sm:$0xff] (!%p191_p2), %vm234_vm0, %v1972_v0  ;;  %249 = vst.msk [vmem:[#allocation2 + $0x68] sm:$0xff] (!%p191_p2), %vm234_vm0, %v1972_v0  ;;  %v2185_v39 = vld [vmem:[%s3295_s1 + $0xa] ss:$0 sm:$0xff] (!%p191_p2) }
   0xb   : > { %251 = vst.msk [vmem:[#allocation2 + $0x78] sm:$0xff] (!%p191_p2), %vm234_vm0, %v1972_v0  ;;  %252 = vst.msk [vmem:[#allocation2 + $0x80] sm:$0xff] (!%p191_p2), %vm234_vm0, %v1972_v0 }
   0xc   : > { %254 = vst.msk [vmem:[#allocation2 + $0x90] sm:$0xff] (!%p191_p2), %vm234_vm0, %v1972_v0  ;;  %255 = vst.msk [vmem:[#allocation2 + $0x98] sm:$0xff] (!%p191_p2), %vm234_vm0, %v1972_v0 }
   0xd   : > { %257 = vst.msk [vmem:[#allocation2 + $0xa8] sm:$0xff] %vm234_vm0, %v1972_v0  ;;  %258 = vst.msk [vmem:[#allocation2 + $0xb0] sm:$0xff] %vm234_vm0, %v1972_v0  ;;  %s3302_s19 = smov (!%p2013_p3, %s1754_s19), 1  ;;  %v355_v42 = vld [vmem:[#allocation2] sm:$0xff]  ;;  %v356_v59 = vld [vmem:[#allocation2 + $0x8] sm:$0xff] }
   0xe   : > { %260 = vst.msk [vmem:[#allocation2 + $0xc0] sm:$0xff] %vm234_vm0, %v1972_v0  ;;  %261 = vst.msk [vmem:[#allocation2 + $0xc8] sm:$0xff] %vm234_vm0, %v1972_v0  ;;  %s1814_s21 = sshll.u32 %s3302_s19, 8  ;;  %v392_v43 = vmul.f32 %v2127_v22, %v355_v42  ;;  %v456_v44 = vld [vmem:[#allocation2 + $0x1] sm:$0xff]  ;;  %s233_s29 = scalar_lea.vmem %s3299_s5, %s3302_s19 }
   0xf   : > { %263 = vst.msk [vmem:[#allocation2 + $0xd8] sm:$0xff] %vm234_vm0, %v1972_v0  ;;  %264 = vst.msk [vmem:[#allocation2 + $0xe0] sm:$0xff] %vm234_vm0, %v1972_v0  ;;  %s2083_s24 = scalar_lea.vmem %s3294_s0, %s1814_s21  ;;  %v557_v45 = vld [vmem:[#allocation2 + $0x2] sm:$0xff]  ;;  %v493_v47 = vmul.f32 %v2138_v26, %v456_v44  ;;  %s2463_s27 = scalar_lea.vmem %s3298_s4, %s1814_s21 }
  0x10   : > { %266 = vst.msk [vmem:[#allocation2 + $0xf0] sm:$0xff] %vm234_vm0, %v1972_v0  ;;  %267 = vst.msk [vmem:[#allocation2 + $0xf8] sm:$0xff] %vm234_vm0, %v1972_v0  ;;  %v290_v1 = vld [vmem:[%s2083_s24] sm:$0xff]  ;;  %v291_v2 = vld [vmem:[%s2083_s24 + $0x8] sm:$0xff]  ;;  %v594_v48 = vmul.f32 %v2143_v27, %v557_v45 }
  0x11   : > { %269 = vst.msk [vmem:[#allocation2 + $0x108] sm:$0xff] %vm234_vm0, %v1972_v0  ;;  %270 = vst.msk [vmem:[#allocation2 + $0x110] sm:$0xff] %vm234_vm0, %v1972_v0  ;;  %v292_v3 = vld [vmem:[%s2083_s24 + $0x10] sm:$0xff]  ;;  %v293_v4 = vld [vmem:[%s2083_s24 + $0x18] sm:$0xff]  ;;  %v525_v61 = vadd.f32 %v493_v47, %v392_v43 }
  0x12   : > { %272 = vst.msk [vmem:[#allocation2 + $0x120] sm:$0xff] %vm234_vm0, %v1972_v0  ;;  %273 = vst.msk [vmem:[#allocation2 + $0x128] sm:$0xff] %vm234_vm0, %v1972_v0  ;;  %v294_v5 = vld [vmem:[%s2083_s24 + $0x20] sm:$0xff]  ;;  %v295_v6 = vld [vmem:[%s2083_s24 + $0x28] sm:$0xff] }
  0x13   : > { %275 = vst.msk [vmem:[#allocation2 + $0x138] sm:$0xff] %vm234_vm0, %v1972_v0  ;;  %276 = vst.msk [vmem:[#allocation2 + $0x140] sm:$0xff] %vm234_vm0, %v1972_v0  ;;  %v296_v7 = vld [vmem:[%s2083_s24 + $0x30] sm:$0xff]  ;;  %v297_v8 = vld [vmem:[%s2083_s24 + $0x38] sm:$0xff] }
  0x14   : > { %278 = vst.msk [vmem:[#allocation2 + $0x150] sm:$0xff] %vm234_vm0, %v1972_v0  ;;  %279 = vst.msk [vmem:[#allocation2 + $0x158] sm:$0xff] %vm234_vm0, %v1972_v0  ;;  %v298_v9 = vld [vmem:[%s2083_s24 + $0x40] sm:$0xff]  ;;  %v299_v10 = vld [vmem:[%s2083_s24 + $0x48] sm:$0xff] }
  0x15   : > { %281 = vst.msk [vmem:[#allocation2 + $0x168] sm:$0xff] %vm234_vm0, %v1972_v0  ;;  %282 = vst.msk [vmem:[#allocation2 + $0x170] sm:$0xff] %vm234_vm0, %v1972_v0  ;;  %v300_v11 = vld [vmem:[%s2083_s24 + $0x50] sm:$0xff]  ;;  %v301_v12 = vld [vmem:[%s2083_s24 + $0x58] sm:$0xff] }
  0x16   : > { %284 = vst.msk [vmem:[#allocation2 + $0x180] sm:$0xff] %vm234_vm0, %v1972_v0  ;;  %285 = vst.msk [vmem:[#allocation2 + $0x188] sm:$0xff] %vm234_vm0, %v1972_v0  ;;  %v302_v13 = vld [vmem:[%s2083_s24 + $0x60] sm:$0xff]  ;;  %v303_v14 = vld [vmem:[%s2083_s24 + $0x68] sm:$0xff] }
  0x17   : > { %287 = vst.msk [vmem:[#allocation2 + $0x198] sm:$0xff] %vm234_vm0, %v1972_v0  ;;  %288 = vst.msk [vmem:[#allocation2 + $0x1a0] sm:$0xff] %vm234_vm0, %v1972_v0  ;;  %v304_v15 = vld [vmem:[%s2083_s24 + $0x70] sm:$0xff]  ;;  %v305_v16 = vld [vmem:[%s2083_s24 + $0x78] sm:$0xff] }
  0x18   : > { %238 = vst.msk [vmem:[#allocation2 + $0x10] sm:$0x3] %vm237_vm1, %v1972_v0  ;;  %241 = vst.msk [vmem:[#allocation2 + $0x28] sm:$0x3] %vm237_vm1, %v1972_v0  ;;  %v306_v17 = vld [vmem:[%s2083_s24 + $0x80] sm:$0xff]  ;;  %v307_v18 = vld [vmem:[%s2083_s24 + $0x88] sm:$0xff] }
  0x19   : > { %244 = vst.msk [vmem:[#allocation2 + $0x40] sm:$0x3] %vm237_vm1, %v1972_v0  ;;  %247 = vst.msk [vmem:[#allocation2 + $0x58] sm:$0x3] %vm237_vm1, %v1972_v0  ;;  %v308_v19 = vld [vmem:[%s2083_s24 + $0x90] sm:$0xff]  ;;  %v309_v20 = vld [vmem:[%s2083_s24 + $0x98] sm:$0xff] }
  0x1a   : > { %250 = vst.msk [vmem:[#allocation2 + $0x70] sm:$0x3] %vm237_vm1, %v1972_v0  ;;  %253 = vst.msk [vmem:[#allocation2 + $0x88] sm:$0x3] %vm237_vm1, %v1972_v0  ;;  %v310_v21 = vld [vmem:[%s2083_s24 + $0xa0] sm:$0xff]  ;;  %v311_v23 = vld [vmem:[%s2083_s24 + $0xa8] sm:$0xff] }
  0x1b   : > { %256 = vst.msk [vmem:[#allocation2 + $0xa0] sm:$0x3] %vm237_vm1, %v1972_v0  ;;  %259 = vst.msk [vmem:[#allocation2 + $0xb8] sm:$0x3] %vm237_vm1, %v1972_v0  ;;  %v312_v24 = vld [vmem:[%s2083_s24 + $0xb0] sm:$0xff]  ;;  %v313_v25 = vld [vmem:[%s2083_s24 + $0xb8] sm:$0xff] }
  0x1c   : > { %262 = vst.msk [vmem:[#allocation2 + $0xd0] sm:$0x3] %vm237_vm1, %v1972_v0  ;;  %265 = vst.msk [vmem:[#allocation2 + $0xe8] sm:$0x3] %vm237_vm1, %v1972_v0  ;;  %v314_v29 = vld [vmem:[%s2083_s24 + $0xc0] sm:$0xff]  ;;  %v315_v30 = vld [vmem:[%s2083_s24 + $0xc8] sm:$0xff] }
  0x1d   : > { %268 = vst.msk [vmem:[#allocation2 + $0x100] sm:$0x3] %vm237_vm1, %v1972_v0  ;;  %271 = vst.msk [vmem:[#allocation2 + $0x118] sm:$0x3] %vm237_vm1, %v1972_v0  ;;  %v316_v31 = vld [vmem:[%s2083_s24 + $0xd0] sm:$0xff]  ;;  %v317_v35 = vld [vmem:[%s2083_s24 + $0xd8] sm:$0xff] }
  0x1e   : > { %274 = vst.msk [vmem:[#allocation2 + $0x130] sm:$0x3] %vm237_vm1, %v1972_v0  ;;  %277 = vst.msk [vmem:[#allocation2 + $0x148] sm:$0x3] %vm237_vm1, %v1972_v0  ;;  %v318_v36 = vld [vmem:[%s2083_s24 + $0xe0] sm:$0xff]  ;;  %v319_v37 = vld [vmem:[%s2083_s24 + $0xe8] sm:$0xff] }
  0x1f   : > { %280 = vst.msk [vmem:[#allocation2 + $0x160] sm:$0x3] %vm237_vm1, %v1972_v0  ;;  %283 = vst.msk [vmem:[#allocation2 + $0x178] sm:$0x3] %vm237_vm1, %v1972_v0  ;;  %v320_v40 = vld [vmem:[%s2083_s24 + $0xf0] sm:$0xff]  ;;  %v321_v41 = vld [vmem:[%s2083_s24 + $0xf8] sm:$0xff] }
  0x20   : > { %286 = vst.msk [vmem:[#allocation2 + $0x190] sm:$0x3] %vm237_vm1, %v1972_v0  ;;  %289 = vst.msk [vmem:[#allocation2 + $0x1a8] sm:$0x3] %vm237_vm1, %v1972_v0  ;;  %v393_v0 = vmul.f32 %v2127_v22, %v356_v59 }
  0x21   : > { %323 = vst.msk [vmem:[#allocation2 + $0x19] sm:$0xff] %vm234_vm0, %v290_v1  ;;  %324 = vst.msk [vmem:[#allocation2 + $0x21] sm:$0xff] %vm234_vm0, %v291_v2  ;;  %v457_v1 = vld [vmem:[#allocation2 + $0x9] sm:$0xff] }
  0x22   : > { %325 = vst.msk [vmem:[#allocation2 + $0x31] sm:$0xff] %vm234_vm0, %v292_v3  ;;  %326 = vst.msk [vmem:[#allocation2 + $0x39] sm:$0xff] %vm234_vm0, %v293_v4  ;;  %v558_v2 = vld [vmem:[#allocation2 + $0xa] sm:$0xff]  ;;  %v494_v4 = vmul.f32 %v2138_v26, %v457_v1 }
  0x23   : > { %327 = vst.msk [vmem:[#allocation2 + $0x49] sm:$0xff] %vm234_vm0, %v294_v5  ;;  %328 = vst.msk [vmem:[#allocation2 + $0x51] sm:$0xff] %vm234_vm0, %v295_v6  ;;  %v595_v5 = vmul.f32 %v2143_v27, %v558_v2 }
  0x24   : > { %329 = vst.msk [vmem:[#allocation2 + $0x61] sm:$0xff] %vm234_vm0, %v296_v7  ;;  %330 = vst.msk [vmem:[#allocation2 + $0x69] sm:$0xff] %vm234_vm0, %v297_v8 }
  0x25   : > { %331 = vst.msk [vmem:[#allocation2 + $0x79] sm:$0xff] %vm234_vm0, %v298_v9  ;;  %332 = vst.msk [vmem:[#allocation2 + $0x81] sm:$0xff] %vm234_vm0, %v299_v10 }
  0x26   : > { %333 = vst.msk [vmem:[#allocation2 + $0x91] sm:$0xff] %vm234_vm0, %v300_v11  ;;  %334 = vst.msk [vmem:[#allocation2 + $0x99] sm:$0xff] %vm234_vm0, %v301_v12  ;;  %v626_v11 = vadd.f32 %v594_v48, %v525_v61 }
  0x27   : > { %335 = vst.msk [vmem:[#allocation2 + $0xa9] sm:$0xff] %vm234_vm0, %v302_v13  ;;  %336 = vst.msk [vmem:[#allocation2 + $0xb1] sm:$0xff] %vm234_vm0, %v303_v14 }
  0x28   : > { %337 = vst.msk [vmem:[#allocation2 + $0xc1] sm:$0xff] %vm234_vm0, %v304_v15  ;;  %338 = vst.msk [vmem:[#allocation2 + $0xc9] sm:$0xff] %vm234_vm0, %v305_v16  ;;  %v658_v46 = vld [vmem:[#allocation2 + $0x18] sm:$0xff]  ;;  %v659_v3 = vld [vmem:[#allocation2 + $0x20] sm:$0xff] }
  0x29   : > { %339 = vst.msk [vmem:[#allocation2 + $0xd9] sm:$0xff] %vm234_vm0, %v306_v17  ;;  %340 = vst.msk [vmem:[#allocation2 + $0xe1] sm:$0xff] %vm234_vm0, %v307_v18  ;;  %v696_v49 = vmul.f32 %v2148_v28, %v658_v46  ;;  %v760_v50 = vld [vmem:[#allocation2 + $0x19] sm:$0xff]  ;;  %v2198_v52 = vld [vmem:[#allocation2 + $0x30] sm:$0xff]  ;;  %v394_v53 = vmul.f32 %v2127_v22, %v658_v46  ;;  %v697_v6 = vmul.f32 %v2148_v28, %v659_v3 }
  0x2a   : > { %341 = vst.msk [vmem:[#allocation2 + $0xf1] sm:$0xff] %vm234_vm0, %v308_v19  ;;  %342 = vst.msk [vmem:[#allocation2 + $0xf9] sm:$0xff] %vm234_vm0, %v309_v20  ;;  %v861_v51 = vld [vmem:[#allocation2 + $0x1a] sm:$0xff]  ;;  %v797_v54 = vmul.f32 %v2159_v32, %v760_v50  ;;  %v1001_v56 = vmul.f32 %v2169_v34, %v2198_v52  ;;  %v2205_v57 = vld [vmem:[#allocation2 + $0x31] sm:$0xff]  ;;  %v495_v60 = vmul.f32 %v2138_v26, %v760_v50 }
  0x2b   : > { %343 = vst.msk [vmem:[#allocation2 + $0x109] sm:$0xff] %vm234_vm0, %v310_v21  ;;  %344 = vst.msk [vmem:[#allocation2 + $0x111] sm:$0xff] %vm234_vm0, %v311_v23  ;;  %v898_v55 = vmul.f32 %v2164_v33, %v861_v51  ;;  %v2207_v58 = vld [vmem:[#allocation2 + $0x32] sm:$0xff]  ;;  %v1102_v62 = vmul.f32 %v2180_v38, %v2205_v57  ;;  %v761_v7 = vld [vmem:[#allocation2 + $0x21] sm:$0xff]  ;;  %v526_v17 = vadd.f32 %v494_v4, %v393_v0 }
  0x2c   : > { %345 = vst.msk [vmem:[#allocation2 + $0x121] sm:$0xff] %vm234_vm0, %v312_v24  ;;  %346 = vst.msk [vmem:[#allocation2 + $0x129] sm:$0xff] %vm234_vm0, %v313_v25  ;;  %v2214_v63 = vmul.f32 %v2185_v39, %v2207_v58  ;;  %v862_v8 = vld [vmem:[#allocation2 + $0x22] sm:$0xff]  ;;  %v2220_v9 = vld [vmem:[#allocation2 + $0x38] sm:$0xff]  ;;  %v527_v10 = vadd.f32 %v495_v60, %v394_v53  ;;  %v798_v12 = vmul.f32 %v2159_v32, %v761_v7 }
  0x2d   : > { %347 = vst.msk [vmem:[#allocation2 + $0x139] sm:$0xff] %vm234_vm0, %v314_v29  ;;  %348 = vst.msk [vmem:[#allocation2 + $0x141] sm:$0xff] %vm234_vm0, %v315_v30  ;;  %v899_v13 = vmul.f32 %v2164_v33, %v862_v8  ;;  %v1002_v14 = vmul.f32 %v2169_v34, %v2220_v9  ;;  %v2226_v15 = vld [vmem:[#allocation2 + $0x39] sm:$0xff]  ;;  %v596_v20 = vmul.f32 %v2143_v27, %v861_v51  ;;  %v2243_v29 = vld [vmem:[#allocation2 + $0x48] sm:$0xff] }
  0x2e   : > { %349 = vst.msk [vmem:[#allocation2 + $0x151] sm:$0xff] %vm234_vm0, %v316_v31  ;;  %350 = vst.msk [vmem:[#allocation2 + $0x159] sm:$0xff] %vm234_vm0, %v317_v35  ;;  %v2228_v16 = vld [vmem:[#allocation2 + $0x3a] sm:$0xff]  ;;  %v1103_v18 = vmul.f32 %v2180_v38, %v2226_v15  ;;  %v728_v21 = vadd.f32 %v696_v49, %v626_v11  ;;  %v698_v23 = vmul.f32 %v2148_v28, %v2198_v52  ;;  %v2245_v30 = vld [vmem:[#allocation2 + $0x49] sm:$0xff] }
  0x2f   : > { %351 = vst.msk [vmem:[#allocation2 + $0x169] sm:$0xff] %vm234_vm0, %v318_v36  ;;  %352 = vst.msk [vmem:[#allocation2 + $0x171] sm:$0xff] %vm234_vm0, %v319_v37  ;;  %v2234_v19 = vmul.f32 %v2185_v39, %v2228_v16  ;;  %v799_v24 = vmul.f32 %v2159_v32, %v2205_v57  ;;  %v900_v25 = vmul.f32 %v2164_v33, %v2207_v58  ;;  %v2266_v59 = vld [vmem:[#allocation2 + $0x51] sm:$0xff] }
  0x30   : > { %353 = vst.msk [vmem:[#allocation2 + $0x181] sm:$0xff] %vm234_vm0, %v320_v40  ;;  %354 = vst.msk [vmem:[#allocation2 + $0x189] sm:$0xff] %vm234_vm0, %v321_v41  ;;  %v627_v31 = vadd.f32 %v595_v5, %v526_v17  ;;  %v628_v35 = vadd.f32 %v596_v20, %v527_v10  ;;  %v1003_v36 = vmul.f32 %v2169_v34, %v2243_v29  ;;  %v2251_v40 = vld [vmem:[#allocation2 + $0x4a] sm:$0xff] }
  0x31   : > { %v1104_v37 = vmul.f32 %v2180_v38, %v2245_v30  ;;  %v829_v41 = vadd.f32 %v797_v54, %v728_v21  ;;  %v1205_v42 = vmul.f32 %v2185_v39, %v2251_v40  ;;  %v395_v43 = vmul.f32 %v2127_v22, %v659_v3  ;;  %v2264_v54 = vld [vmem:[#allocation2 + $0x50] sm:$0xff] }
  0x32   : > { %v496_v44 = vmul.f32 %v2138_v26, %v761_v7  ;;  %v729_v45 = vadd.f32 %v697_v6, %v627_v31  ;;  %v730_v46 = vadd.f32 %v698_v23, %v628_v35  ;;  %v597_v47 = vmul.f32 %v2143_v27, %v862_v8  ;;  %v2302_v35 = vld [vmem:[#allocation2 + $0x62] sm:$0xff] }
  0x33   : > { %v699_v48 = vmul.f32 %v2148_v28, %v2220_v9  ;;  %v930_v49 = vadd.f32 %v898_v55, %v829_v41  ;;  %v800_v51 = vmul.f32 %v2159_v32, %v2226_v15  ;;  %v901_v53 = vmul.f32 %v2164_v33, %v2228_v16  ;;  %v2272_v55 = vld [vmem:[#allocation2 + $0x52] sm:$0xff] }
  0x34   : > { %v528_v50 = vadd.f32 %v496_v44, %v395_v43  ;;  %v830_v60 = vadd.f32 %v798_v12, %v729_v45  ;;  %v831_v61 = vadd.f32 %v799_v24, %v730_v46  ;;  %v1004_v0 = vmul.f32 %v2169_v34, %v2264_v54 }
  0x35   : > { %v1105_v1 = vmul.f32 %v2180_v38, %v2266_v59  ;;  %v1033_v2 = vadd.f32 %v1001_v56, %v930_v49  ;;  %v1206_v4 = vmul.f32 %v2185_v39, %v2272_v55  ;;  %v396_v5 = vmul.f32 %v2127_v22, %v2198_v52  ;;  %v2289_v52 = vld [vmem:[%s3296_s2] ss:$0 sm:$0xff] }
  0x36   : > { %v629_v3 = vadd.f32 %v597_v47, %v528_v50  ;;  %v931_v6 = vadd.f32 %v899_v13, %v830_v60  ;;  %v932_v7 = vadd.f32 %v900_v25, %v831_v61  ;;  %v497_v8 = vmul.f32 %v2138_v26, %v2205_v57 }
  0x37   : > { %v598_v10 = vmul.f32 %v2143_v27, %v2207_v58  ;;  %v1134_v11 = vadd.f32 %v1102_v62, %v1033_v2  ;;  %v700_v56 = vmul.f32 %v2148_v28, %v2243_v29  ;;  %v801_v17 = vmul.f32 %v2159_v32, %v2245_v30  ;;  %v2293_v58 = vld [vmem:[#allocation2 + $0x60] sm:$0xff] }
  0x38   : > { %v731_v12 = vadd.f32 %v699_v48, %v629_v3  ;;  %v1034_v13 = vadd.f32 %v1002_v14, %v931_v6  ;;  %v1035_v20 = vadd.f32 %v1003_v36, %v932_v7  ;;  %v529_v21 = vadd.f32 %v497_v8, %v396_v5  ;;  %v2295_v62 = vld [vmem:[#allocation2 + $0x61] sm:$0xff]  ;;  %v2307_v14 = vld [vmem:[%s3297_s3] ss:$0 sm:$0xff] }
  0x39   : > { %v902_v57 = vmul.f32 %v2164_v33, %v2251_v40  ;;  %v1235_v23 = vadd.f32 %v2214_v63, %v1134_v11  ;;  %v1005_v25 = vmul.f32 %v2169_v34, %v2293_v58  ;;  %v1106_v31 = vmul.f32 %v2180_v38, %v2295_v62 }
  0x3a   : > { %v832_v24 = vadd.f32 %v800_v51, %v731_v12  ;;  %v1135_v36 = vadd.f32 %v1103_v18, %v1034_v13  ;;  %v1136_v41 = vadd.f32 %v1104_v37, %v1035_v20  ;;  %v630_v43 = vadd.f32 %v598_v10, %v529_v21  ;;  %v2341_v10 = vld [vmem:[#allocation2 + $0x69] sm:$0xff] }
  0x3b   : > { %v1207_v63 = vmul.f32 %v2185_v39, %v2302_v35  ;;  %v1274_v44 = vmul.f32 %v2289_v52, %v1235_v23  ;;  %v397_v46 = vmul.f32 %v2127_v22, %v2220_v9  ;;  %v498_v47 = vmul.f32 %v2138_v26, %v2226_v15 }
  0x3c   : > { %v933_v45 = vadd.f32 %v901_v53, %v832_v24  ;;  %v1236_v48 = vadd.f32 %v2234_v19, %v1135_v36  ;;  %v1237_v49 = vadd.f32 %v1205_v42, %v1136_v41  ;;  %v732_v50 = vadd.f32 %v700_v56, %v630_v43  ;;  %v2345_v56 = vld [vmem:[#allocation2 + $0x6a] sm:$0xff] }
  0x3d   : > { %v599_v18 = vmul.f32 %v2143_v27, %v2228_v16  ;;  %v2320_v37 = vadd.f32 %v2307_v14, %v1274_v44  ;;  %v530_v60 = vadd.f32 %v498_v47, %v397_v46  ;;  %v701_v53 = vmul.f32 %v2148_v28, %v2264_v54  ;;  %v2363_v46 = vld [vmem:[#allocation2 + $0x78] sm:$0xff] }
  0x3e   : > { %v1036_v51 = vadd.f32 %v1004_v0, %v933_v45  ;;  %v1275_v9 = vmul.f32 %v2289_v52, %v1236_v48  ;;  %v1276_v61 = vmul.f32 %v2289_v52, %v1237_v49  ;;  %v833_v15 = vadd.f32 %v801_v17, %v732_v50  ;;  %v2331_v0 = vld [vmem:[#allocation2 + $0x68] sm:$0xff]  ;;  %v2371_v47 = vld [vmem:[#allocation2 + $0x79] sm:$0xff] }
  0x3f   : > { %v802_v19 = vmul.f32 %v2159_v32, %v2266_v59  ;;  %v1780_v42 = vmul.f32 -1.442695, %v2320_v37  ;;  %v631_v16 = vadd.f32 %v599_v18, %v530_v60  ;;  %v903_v3 = vmul.f32 %v2164_v33, %v2272_v55 }
  0x40   : > { %v1137_v2 = vadd.f32 %v1105_v1, %v1036_v51  ;;  %v2334_v5 = vadd.f32 %v2307_v14, %v1275_v9  ;;  %v2337_v6 = vadd.f32 %v2307_v14, %v1276_v61  ;;  %v934_v7 = vadd.f32 %v902_v57, %v833_v15  ;;  %v2376_v51 = vld [vmem:[#allocation2 + $0x7a] sm:$0xff] }
  0x41   : > { %v1006_v8 = vmul.f32 %v2169_v34, %v2331_v0  ;;  %1825 = vpow2.f32 %v1780_v42  ;;  %v733_v11 = vadd.f32 %v701_v53, %v631_v16  ;;  %v1107_v12 = vmul.f32 %v2180_v38, %v2341_v10 }
  0x42   : > { %v1238_v1 = vadd.f32 %v1206_v4, %v1137_v2  ;;  %v1781_v17 = vmul.f32 -1.442695, %v2334_v5  ;;  %v1782_v13 = vmul.f32 -1.442695, %v2337_v6  ;;  %v1037_v20 = vadd.f32 %v1005_v25, %v934_v7 }
  0x43   : > { %v1208_v21 = vmul.f32 %v2185_v39, %v2345_v56  ;;  %v834_v23 = vadd.f32 %v802_v19, %v733_v11  ;;  %v398_v4 = vmul.f32 %v2127_v22, %v2243_v29  ;;  %v499_v24 = vmul.f32 %v2138_v26, %v2245_v30  ;;  %v2400_v11 = vld [vmem:[#allocation2 + $0x81] sm:$0xff] }
  0x44   : > { %v1277_v57 = vmul.f32 %v2289_v52, %v1238_v1  ;;  %1827 = vpow2.f32 %v1781_v17  ;;  %v1138_v36 = vadd.f32 %v1106_v31, %v1037_v20  ;;  %v600_v41 = vmul.f32 %v2143_v27, %v2251_v40 }
  0x45   : > { %v702_v25 = vmul.f32 %v2148_v28, %v2293_v58  ;;  %1829 = vpow2.f32 %v1782_v13  ;;  %v935_v44 = vadd.f32 %v903_v3, %v834_v23  ;;  %v531_v45 = vadd.f32 %v499_v24, %v398_v4 }
  0x46   : > { %v2361_v43 = vadd.f32 %v2307_v14, %v1277_v57  ;;  %v1239_v29 = vadd.f32 %v1207_v63, %v1138_v36  ;;  %v803_v30 = vmul.f32 %v2159_v32, %v2295_v62  ;;  %v904_v31 = vmul.f32 %v2164_v33, %v2302_v35  ;;  %v2405_v57 = vld [vmem:[#allocation2 + $0x82] sm:$0xff] }
  0x47   : > { %v1007_v40 = vmul.f32 %v2169_v34, %v2363_v46  ;;  %v1038_v49 = vadd.f32 %v1006_v8, %v935_v44  ;;  %v632_v50 = vadd.f32 %v600_v41, %v531_v45  ;;  %v1108_v18 = vmul.f32 %v2180_v38, %v2371_v47 }
  0x48   : > { %v1783_v48 = vmul.f32 -1.442695, %v2361_v43  ;;  %v1278_v63 = vmul.f32 %v2289_v52, %v1239_v29  ;;  %v1209_v60 = vmul.f32 %v2185_v39, %v2376_v51  ;;  %v399_v53 = vmul.f32 %v2127_v22, %v2264_v54  ;;  %v2394_v54 = vld [vmem:[#allocation2 + $0x80] sm:$0xff] }
  0x49   : > { %v500_v9 = vmul.f32 %v2138_v26, %v2266_v59  ;;  %v1139_v61 = vadd.f32 %v1107_v12, %v1038_v49  ;;  %v734_v15 = vadd.f32 %v702_v25, %v632_v50  ;;  %v601_v19 = vmul.f32 %v2143_v27, %v2272_v55 }
  0x4a   : > { %1831 = vpow2.f32 %v1783_v48  ;;  %v2388_v42 = vadd.f32 %v2307_v14, %v1278_v63  ;;  %v703_v16 = vmul.f32 %v2148_v28, %v2331_v0  ;;  %v804_v3 = vmul.f32 %v2159_v32, %v2341_v10 }
  0x4b   : > { %v532_v2 = vadd.f32 %v500_v9, %v399_v53  ;;  %v1826_v7 = vpop.eup %1825  ;;  %v1240_v59 = vadd.f32 %v1208_v21, %v1139_v61  ;;  %v835_v8 = vadd.f32 %v803_v30, %v734_v15  ;;  %v905_v1 = vmul.f32 %v2164_v33, %v2345_v56  ;;  %v2428_v15 = vld [vmem:[#allocation2 + $0x91] sm:$0xff] }
  0x4c   : > { %v1008_v55 = vmul.f32 %v2169_v34, %v2394_v54  ;;  %v1441_v12 = vadd.f32 1.0, %v1826_v7  ;;  %v1784_v17 = vmul.f32 -1.442695, %v2388_v42  ;;  %v1109_v20 = vmul.f32 %v2180_v38, %v2400_v11 }
  0x4d   : > { %v633_v13 = vadd.f32 %v601_v19, %v532_v2  ;;  %v1279_v21 = vmul.f32 %v2289_v52, %v1240_v59  ;;  %v936_v23 = vadd.f32 %v904_v31, %v835_v8  ;;  %v1210_v4 = vmul.f32 %v2185_v39, %v2405_v57 }
  0x4e   : > { %v400_v24 = vmul.f32 %v2127_v22, %v2293_v58  ;;  %v1828_v36 = vpop.eup %1827  ;;  %1833 = vrcp.f32 %v1441_v12  ;;  %v501_v25 = vmul.f32 %v2138_v26, %v2295_v62  ;;  %v602_v44 = vmul.f32 %v2143_v27, %v2302_v35 }
  0x4f   : > { %v735_v41 = vadd.f32 %v703_v16, %v633_v13  ;;  %v1830_v45 = vpop.eup %1829  ;;  %v1442_v29 = vadd.f32 1.0, %v1828_v36  ;;  %1835 = vpow2.f32 %v1784_v17  ;;  %v2417_v30 = vadd.f32 %v2307_v14, %v1279_v21 }
  0x50   : > { %v1039_v31 = vadd.f32 %v1007_v40, %v936_v23  ;;  %v1443_v48 = vadd.f32 1.0, %v1830_v45  ;;  %v533_v50 = vadd.f32 %v501_v25, %v400_v24  ;;  %v704_v58 = vmul.f32 %v2148_v28, %v2363_v46  ;;  %v2426_v40 = vld [vmem:[#allocation2 + $0x90] sm:$0xff]  ;;  %v2456_v25 = vld [vmem:[#allocation2 + $0x99] sm:$0xff] }
  0x51   : > { %v836_v49 = vadd.f32 %v804_v3, %v735_v41  ;;  %1837 = vrcp.f32 %v1442_v29  ;;  %v1785_v63 = vmul.f32 -1.442695, %v2417_v30  ;;  %v805_v35 = vmul.f32 %v2159_v32, %v2371_v47  ;;  %v2434_v3 = vld [vmem:[#allocation2 + $0x92] sm:$0xff] }
  0x52   : > { %v1140_v62 = vadd.f32 %v1108_v18, %v1039_v31  ;;  %1839 = vrcp.f32 %v1443_v48  ;;  %v634_v9 = vadd.f32 %v602_v44, %v533_v50  ;;  %v906_v61 = vmul.f32 %v2164_v33, %v2376_v51  ;;  %v2469_v31 = vld [vmem:[#allocation2 + $0x9a] sm:$0xff] }
  0x53   : > { %v937_v53 = vadd.f32 %v905_v1, %v836_v49  ;;  %1841 = vpow2.f32 %v1785_v63  ;;  %v1009_v16 = vmul.f32 %v2169_v34, %v2426_v40  ;;  %v1110_v18 = vmul.f32 %v2180_v38, %v2428_v15 }
  0x54   : > { %v1832_v19 = vpop.eup %1831  ;;  %v1241_v2 = vadd.f32 %v1209_v60, %v1140_v62  ;;  %v736_v8 = vadd.f32 %v704_v58, %v634_v9  ;;  %v1211_v1 = vmul.f32 %v2185_v39, %v2434_v3  ;;  %v401_v60 = vmul.f32 %v2127_v22, %v2331_v0 }
  0x55   : > { %v1444_v7 = vadd.f32 1.0, %v1832_v19  ;;  %v1040_v59 = vadd.f32 %v1008_v55, %v937_v53  ;;  %v502_v17 = vmul.f32 %v2138_v26, %v2341_v10  ;;  %v603_v13 = vmul.f32 %v2143_v27, %v2345_v56  ;;  %v2454_v10 = vld [vmem:[#allocation2 + $0x98] sm:$0xff] }
  0x56   : > { %v1280_v12 = vmul.f32 %v2289_v52, %v1241_v2  ;;  %v837_v23 = vadd.f32 %v805_v35, %v736_v8  ;;  %v705_v55 = vmul.f32 %v2148_v28, %v2394_v54  ;;  %v806_v41 = vmul.f32 %v2159_v32, %v2400_v11 }
  0x57   : > { %1843 = vrcp.f32 %v1444_v7  ;;  %v1141_v21 = vadd.f32 %v1109_v20, %v1040_v59  ;;  %v534_v36 = vadd.f32 %v502_v17, %v401_v60  ;;  %v907_v0 = vmul.f32 %v2164_v33, %v2405_v57 }
  0x58   : > { %v2448_v24 = vadd.f32 %v2307_v14, %v1280_v12  ;;  %v1834_v56 = vpop.eup %1833  ;;  %v938_v44 = vadd.f32 %v906_v61, %v837_v23  ;;  %v1010_v45 = vmul.f32 %v2169_v34, %v2454_v10  ;;  %v1111_v29 = vmul.f32 %v2180_v38, %v2456_v25 }
  0x59   : > { %v1242_v20 = vadd.f32 %v1210_v4, %v1141_v21  ;;  %v1836_v48 = vpop.eup %1835  ;;  %v1537_v49 = vmul.f32 %v1834_v56, %v2320_v37  ;;  %v635_v58 = vadd.f32 %v603_v13, %v534_v36  ;;  %v1212_v63 = vmul.f32 %v2185_v39, %v2469_v31 }
  0x5a   : > { %v1786_v50 = vmul.f32 -1.442695, %v2448_v24  ;;  %v1445_v62 = vadd.f32 1.0, %v1836_v48  ;;  %v1041_v35 = vadd.f32 %v1009_v16, %v938_v44  ;;  %v402_v53 = vmul.f32 %v2127_v22, %v2363_v46 }
  0x5b   : > { %v1281_v4 = vmul.f32 %v2289_v52, %v1242_v20  ;;  %v1838_v9 = vpop.eup %1837  ;;  %1569 = vst.msk [vmem:[%s2463_s27] sm:$0xff] %vm234_vm0, %v1537_v49  ;;  %v1601_v61 = vsel %vm234_vm0, %v1537_v49, 0.0  ;;  %v737_v37 = vadd.f32 %v705_v55, %v635_v58  ;;  %v503_v19 = vmul.f32 %v2138_v26, %v2371_v47 }
  0x5c   : > { %1845 = vpow2.f32 %v1786_v50  ;;  %v1840_v2 = vpop.eup %1839  ;;  %v1538_v7 = vmul.f32 %v1838_v9, %v2334_v5  ;;  %v1142_v46 = vadd.f32 %v1110_v18, %v1041_v35  ;;  %v604_v17 = vmul.f32 %v2143_v27, %v2376_v51  ;;  %v2508_v50 = vld [vmem:[#allocation2 + $0xa8] sm:$0xff] }
  0x5d   : > { %1847 = vrcp.f32 %v1445_v62  ;;  %v2485_v16 = vadd.f32 %v2307_v14, %v1281_v4  ;;  %v1842_v59 = vpop.eup %1841  ;;  %v1539_v8 = vmul.f32 %v1840_v2, %v2337_v6  ;;  %v838_v12 = vadd.f32 %v806_v41, %v737_v37  ;;  %v2522_v2 = vld [vmem:[#allocation2 + $0xaa] sm:$0xff] }
  0x5e   : > { %v535_v60 = vadd.f32 %v503_v19, %v402_v53  ;;  %1570 = vst.msk [vmem:[%s2463_s27 + $0x8] sm:$0xff] %vm234_vm0, %v1538_v7  ;;  %v1602_v47 = vsel %vm234_vm0, %v1538_v7, 0.0  ;;  %v1446_v13 = vadd.f32 1.0, %v1842_v59  ;;  %v1243_v21 = vadd.f32 %v1211_v1, %v1142_v46  ;;  %v2516_v53 = vld [vmem:[#allocation2 + $0xa9] sm:$0xff] }
  0x5f   : > { %v1787_v5 = vmul.f32 -1.442695, %v2485_v16  ;;  %v1603_v23 = vadd.f32 %v1602_v47, %v1601_v61  ;;  %1571 = vst.msk [vmem:[%s2463_s27 + $0x10] sm:$0xff] %vm234_vm0, %v1539_v8  ;;  %v1604_v18 = vsel %vm234_vm0, %v1539_v8, 0.0  ;;  %v939_v6 = vadd.f32 %v907_v0, %v838_v12 }
  0x60   : > { %v636_v55 = vadd.f32 %v604_v17, %v535_v60  ;;  %1849 = vrcp.f32 %v1446_v13  ;;  %v1282_v51 = vmul.f32 %v2289_v52, %v1243_v21  ;;  %v706_v41 = vmul.f32 %v2148_v28, %v2426_v40  ;;  %v2538_v13 = vld [vmem:[#allocation2 + $0xb0] sm:$0xff] }
  0x61   : > { %v1844_v36 = vpop.eup %1843  ;;  %v807_v56 = vmul.f32 %v2159_v32, %v2428_v15  ;;  %v1605_v20 = vadd.f32 %v1604_v18, %v1603_v23  ;;  %1851 = vpow2.f32 %v1787_v5  ;;  %v1042_v44 = vadd.f32 %v1010_v45, %v939_v6 }
  0x62   : > { %v1540_v1 = vmul.f32 %v1844_v36, %v2361_v43  ;;  %v2504_v48 = vadd.f32 %v2307_v14, %v1282_v51  ;;  %v738_v0 = vadd.f32 %v706_v41, %v636_v55  ;;  %v908_v49 = vmul.f32 %v2164_v33, %v2434_v3 }
  0x63   : > { %v1143_v62 = vadd.f32 %v1111_v29, %v1042_v44  ;;  %v1011_v4 = vmul.f32 %v2169_v34, %v2508_v50  ;;  %v403_v9 = vmul.f32 %v2127_v22, %v2394_v54  ;;  %v1112_v19 = vmul.f32 %v2180_v38, %v2516_v53 }
  0x64   : > { %1572 = vst.msk [vmem:[%s2463_s27 + $0x18] sm:$0xff] %vm234_vm0, %v1540_v1  ;;  %v1606_v58 = vsel %vm234_vm0, %v1540_v1, 0.0  ;;  %v1788_v45 = vmul.f32 -1.442695, %v2504_v48  ;;  %v839_v35 = vadd.f32 %v807_v56, %v738_v0  ;;  %v504_v29 = vmul.f32 %v2138_v26, %v2400_v11 }
  0x65   : > { %v1607_v43 = vadd.f32 %v1606_v58, %v1605_v20  ;;  %v1244_v37 = vadd.f32 %v1212_v63, %v1143_v62  ;;  %v605_v7 = vmul.f32 %v2143_v27, %v2405_v57  ;;  %v1213_v54 = vmul.f32 %v2185_v39, %v2522_v2 }
  0x66   : > { %v1846_v61 = vpop.eup %1845  ;;  %1853 = vpow2.f32 %v1788_v45  ;;  %v940_v8 = vadd.f32 %v908_v49, %v839_v35  ;;  %v536_v60 = vadd.f32 %v504_v29, %v403_v9  ;;  %v707_v17 = vmul.f32 %v2148_v28, %v2454_v10  ;;  %v2566_v45 = vld [vmem:[#allocation2 + $0xb2] sm:$0xff]  ;;  %v2574_v29 = vld [vmem:[#allocation2 + $0xc0] sm:$0xff] }
  0x67   : > { %v1848_v46 = vpop.eup %1847  ;;  %v1447_v59 = vadd.f32 1.0, %v1846_v61  ;;  %v1283_v12 = vmul.f32 %v2289_v52, %v1244_v37  ;;  %v808_v57 = vmul.f32 %v2159_v32, %v2456_v25  ;;  %v909_v47 = vmul.f32 %v2164_v33, %v2469_v31 }
  0x68   : > { %v1541_v63 = vmul.f32 %v1848_v46, %v2388_v42  ;;  %v1043_v11 = vadd.f32 %v1011_v4, %v940_v8  ;;  %v637_v21 = vadd.f32 %v605_v7, %v536_v60  ;;  %v1012_v23 = vmul.f32 %v2169_v34, %v2538_v13  ;;  %v2583_v60 = vld [vmem:[#allocation2 + $0xc1] sm:$0xff] }
  0x69   : > { %1855 = vrcp.f32 %v1447_v59  ;;  %v2544_v5 = vadd.f32 %v2307_v14, %v1283_v12  ;;  %v404_v36 = vmul.f32 %v2127_v22, %v2426_v40  ;;  %v505_v51 = vmul.f32 %v2138_v26, %v2428_v15 }
  0x6a   : > { %1573 = vst.msk [vmem:[%s2463_s27 + $0x20] sm:$0xff] %vm234_vm0, %v1541_v63  ;;  %v1608_v42 = vsel %vm234_vm0, %v1541_v63, 0.0  ;;  %v1850_v18 = vpop.eup %1849  ;;  %v1144_v55 = vadd.f32 %v1112_v19, %v1043_v11  ;;  %v739_v1 = vadd.f32 %v707_v17, %v637_v21  ;;  %v606_v44 = vmul.f32 %v2143_v27, %v2434_v3  ;;  %v2564_v3 = vld [vmem:[#allocation2 + $0xb1] sm:$0xff] }
  0x6b   : > { %v1609_v6 = vadd.f32 %v1608_v42, %v1607_v43  ;;  %v1852_v41 = vpop.eup %1851  ;;  %v1542_v56 = vmul.f32 %v1850_v18, %v2417_v30  ;;  %v1789_v20 = vmul.f32 -1.442695, %v2544_v5  ;;  %v537_v58 = vadd.f32 %v505_v51, %v404_v36 }
  0x6c   : > { %v1448_v0 = vadd.f32 1.0, %v1852_v41  ;;  %v1245_v49 = vadd.f32 %v1213_v54, %v1144_v55  ;;  %v708_v62 = vmul.f32 %v2148_v28, %v2508_v50  ;;  %v840_v15 = vadd.f32 %v808_v57, %v739_v1 }
  0x6d   : > { %1574 = vst.msk [vmem:[%s2463_s27 + $0x28] sm:$0xff] %vm234_vm0, %v1542_v56  ;;  %v1610_v40 = vsel %vm234_vm0, %v1542_v56, 0.0  ;;  %1857 = vpow2.f32 %v1789_v20  ;;  %v809_v30 = vmul.f32 %v2159_v32, %v2516_v53  ;;  %v638_v35 = vadd.f32 %v606_v44, %v537_v58  ;;  %v2606_v20 = vld [vmem:[#allocation2 + $0xc8] sm:$0xff] }
  0x6e   : > { %v1611_v4 = vadd.f32 %v1610_v40, %v1609_v6  ;;  %1859 = vrcp.f32 %v1448_v0  ;;  %v1284_v43 = vmul.f32 %v2289_v52, %v1245_v49  ;;  %v941_v9 = vadd.f32 %v909_v47, %v840_v15  ;;  %v2595_v6 = vld [vmem:[#allocation2 + $0xc2] sm:$0xff] }
  0x6f   : > { %v1113_v61 = vmul.f32 %v2180_v38, %v2564_v3  ;;  %v1214_v37 = vmul.f32 %v2185_v39, %v2566_v45  ;;  %v910_v19 = vmul.f32 %v2164_v33, %v2522_v2  ;;  %v740_v59 = vadd.f32 %v708_v62, %v638_v35  ;;  %v2613_v15 = vld [vmem:[#allocation2 + $0xc9] sm:$0xff] }
  0x70   : > { %v1854_v7 = vpop.eup %1853  ;;  %v2577_v46 = vadd.f32 %v2307_v14, %v1284_v43  ;;  %v1013_v8 = vmul.f32 %v2169_v34, %v2574_v29  ;;  %v405_v54 = vmul.f32 %v2127_v22, %v2454_v10  ;;  %v1044_v12 = vadd.f32 %v1012_v23, %v941_v9 }
  0x71   : > { %v1449_v63 = vadd.f32 1.0, %v1854_v7  ;;  %v506_v17 = vmul.f32 %v2138_v26, %v2456_v25  ;;  %v607_v11 = vmul.f32 %v2143_v27, %v2469_v31  ;;  %v841_v42 = vadd.f32 %v809_v30, %v740_v59 }
  0x72   : > { %v1790_v47 = vmul.f32 -1.442695, %v2577_v46  ;;  %v1114_v21 = vmul.f32 %v2180_v38, %v2583_v60  ;;  %v709_v10 = vmul.f32 %v2148_v28, %v2538_v13  ;;  %v1145_v18 = vadd.f32 %v1113_v61, %v1044_v12 }
  0x73   : > { %v1856_v57 = vpop.eup %1855  ;;  %1861 = vrcp.f32 %v1449_v63  ;;  %v538_v25 = vadd.f32 %v506_v17, %v405_v54  ;;  %v942_v55 = vadd.f32 %v910_v19, %v841_v42  ;;  %v1215_v31 = vmul.f32 %v2185_v39, %v2595_v6 }
  0x74   : > { %v1543_v23 = vmul.f32 %v1856_v57, %v2448_v24  ;;  %1863 = vpow2.f32 %v1790_v47  ;;  %v810_v36 = vmul.f32 %v2159_v32, %v2564_v3  ;;  %v1246_v41 = vadd.f32 %v1214_v37, %v1145_v18 }
  0x75   : > { %v639_v56 = vadd.f32 %v607_v11, %v538_v25  ;;  %v911_v24 = vmul.f32 %v2164_v33, %v2566_v45  ;;  %v1045_v44 = vadd.f32 %v1013_v8, %v942_v55  ;;  %v1014_v0 = vmul.f32 %v2169_v34, %v2606_v20  ;;  %v2637_v11 = vld [vmem:[#allocation2 + $0xd8] sm:$0xff] }
  0x76   : > { %1575 = vst.msk [vmem:[%s2463_s27 + $0x30] sm:$0xff] %vm234_vm0, %v1543_v23  ;;  %v1612_v51 = vsel %vm234_vm0, %v1543_v23, 0.0  ;;  %v406_v49 = vmul.f32 %v2127_v22, %v2508_v50  ;;  %v1285_v62 = vmul.f32 %v2289_v52, %v1246_v41  ;;  %v507_v30 = vmul.f32 %v2138_v26, %v2516_v53  ;;  %v2627_v53 = vld [vmem:[#allocation2 + $0xca] sm:$0xff] }
  0x77   : > { %v1613_v1 = vadd.f32 %v1612_v51, %v1611_v4  ;;  %v1858_v58 = vpop.eup %1857  ;;  %v741_v40 = vadd.f32 %v709_v10, %v639_v56  ;;  %v608_v4 = vmul.f32 %v2143_v27, %v2522_v2  ;;  %v1146_v9 = vadd.f32 %v1114_v21, %v1045_v44  ;;  %v2650_v51 = vld [vmem:[#allocation2 + $0xd9] sm:$0xff] }
  0x78   : > { %v1860_v43 = vpop.eup %1859  ;;  %v1450_v35 = vadd.f32 1.0, %v1858_v58  ;;  %v1115_v61 = vmul.f32 %v2180_v38, %v2613_v15  ;;  %v710_v50 = vmul.f32 %v2148_v28, %v2574_v29  ;;  %v2625_v19 = vadd.f32 %v2307_v14, %v1285_v62 }
  0x79   : > { %v1544_v37 = vmul.f32 %v1860_v43, %v2485_v16  ;;  %v842_v7 = vadd.f32 %v810_v36, %v741_v40  ;;  %v539_v59 = vadd.f32 %v507_v30, %v406_v49  ;;  %v1247_v2 = vadd.f32 %v1215_v31, %v1146_v9  ;;  %v2664_v40 = vld [vmem:[#allocation2 + $0xda] sm:$0xff] }
  0x7a   : > { %1865 = vrcp.f32 %v1450_v35  ;;  %v1216_v8 = vmul.f32 %v2185_v39, %v2627_v53  ;;  %v811_v54 = vmul.f32 %v2159_v32, %v2583_v60  ;;  %v1791_v16 = vmul.f32 -1.442695, %v2625_v19  ;;  %v2670_v35 = vld [vmem:[#allocation2 + $0xe0] sm:$0xff] }
  0x7b   : > { %1576 = vst.msk [vmem:[%s2463_s27 + $0x38] sm:$0xff] %vm234_vm0, %v1544_v37  ;;  %v1614_v63 = vsel %vm234_vm0, %v1544_v37, 0.0  ;;  %v943_v12 = vadd.f32 %v911_v24, %v842_v7  ;;  %v640_v17 = vadd.f32 %v608_v4, %v539_v59  ;;  %v1286_v47 = vmul.f32 %v2289_v52, %v1247_v2  ;;  %v2677_v2 = vld [vmem:[#allocation2 + $0xe1] sm:$0xff] }
  0x7c   : > { %v1615_v57 = vadd.f32 %v1614_v63, %v1613_v1  ;;  %v912_v42 = vmul.f32 %v2164_v33, %v2595_v6  ;;  %v1015_v21 = vmul.f32 %v2169_v34, %v2637_v11  ;;  %1867 = vpow2.f32 %v1791_v16 }
  0x7d   : > { %v1862_v10 = vpop.eup %1861  ;;  %v1046_v23 = vadd.f32 %v1014_v0, %v943_v12  ;;  %v742_v18 = vadd.f32 %v710_v50, %v640_v17  ;;  %v407_v25 = vmul.f32 %v2127_v22, %v2538_v13  ;;  %v2648_v36 = vadd.f32 %v2307_v14, %v1286_v47  ;;  %v2691_v47 = vld [vmem:[#allocation2 + $0xe2] sm:$0xff] }
  0x7e   : > { %v1864_v55 = vpop.eup %1863  ;;  %v1545_v31 = vmul.f32 %v1862_v10, %v2504_v48  ;;  %v508_v41 = vmul.f32 %v2138_v26, %v2564_v3  ;;  %v609_v56 = vmul.f32 %v2143_v27, %v2566_v45  ;;  %v1116_v13 = vmul.f32 %v2180_v38, %v2650_v51 }
  0x7f   : > { %v1451_v24 = vadd.f32 1.0, %v1864_v55  ;;  %v1147_v1 = vadd.f32 %v1115_v61, %v1046_v23  ;;  %v843_v44 = vadd.f32 %v811_v54, %v742_v18  ;;  %v1792_v0 = vmul.f32 -1.442695, %v2648_v36  ;;  %v2703_v55 = vld [vmem:[#allocation2 + $0xf0] sm:$0xff] }
  0x80   : > { %1577 = vst.msk [vmem:[%s2463_s27 + $0x40] sm:$0xff] %vm234_vm0, %v1545_v31  ;;  %v1616_v48 = vsel %vm234_vm0, %v1545_v31, 0.0  ;;  %v540_v49 = vadd.f32 %v508_v41, %v407_v25  ;;  %v711_v58 = vmul.f32 %v2148_v28, %v2606_v20  ;;  %v1217_v30 = vmul.f32 %v2185_v39, %v2664_v40 }
  0x81   : > { %v1617_v3 = vadd.f32 %v1616_v48, %v1615_v57  ;;  %1869 = vrcp.f32 %v1451_v24  ;;  %v1248_v62 = vadd.f32 %v1216_v8, %v1147_v1  ;;  %v944_v45 = vadd.f32 %v912_v42, %v843_v44  ;;  %v2710_v1 = vld [vmem:[#allocation2 + $0xf1] sm:$0xff] }
  0x82   : > { %1871 = vpow2.f32 %v1792_v0  ;;  %v641_v4 = vadd.f32 %v609_v56, %v540_v49  ;;  %v812_v43 = vmul.f32 %v2159_v32, %v2613_v15  ;;  %v913_v50 = vmul.f32 %v2164_v33, %v2627_v53  ;;  %v2729_v0 = vld [vmem:[%s3295_s1 + $0x1] ss:$0 sm:$0xff] }
  0x83   : > { %v1287_v9 = vmul.f32 %v2289_v52, %v1248_v62  ;;  %v1047_v61 = vadd.f32 %v1015_v21, %v944_v45  ;;  %v1016_v37 = vmul.f32 %v2169_v34, %v2670_v35  ;;  %v408_v8 = vmul.f32 %v2127_v22, %v2574_v29 }
  0x84   : > { %v1866_v7 = vpop.eup %1865  ;;  %v743_v59 = vadd.f32 %v711_v58, %v641_v4  ;;  %v509_v54 = vmul.f32 %v2138_v26, %v2583_v60  ;;  %v610_v63 = vmul.f32 %v2143_v27, %v2595_v6  ;;  %v1117_v57 = vmul.f32 %v2180_v38, %v2677_v2 }
  0x85   : > { %v1546_v16 = vmul.f32 %v1866_v7, %v2544_v5  ;;  %v2687_v12 = vadd.f32 %v2307_v14, %v1287_v9  ;;  %v1148_v17 = vadd.f32 %v1116_v13, %v1047_v61  ;;  %v1218_v22 = vmul.f32 %v2185_v39, %v2691_v47  ;;  %v2747_v9 = vld [vmem:[%s3295_s1 + $0x4] ss:$0 sm:$0xff] }
  0x86   : > { %v844_v42 = vadd.f32 %v812_v43, %v743_v59  ;;  %v541_v29 = vadd.f32 %v509_v54, %v408_v8  ;;  %v712_v26 = vmul.f32 %v2148_v28, %v2637_v11  ;;  %v1868_v27 = vpop.eup %1867  ;;  %v813_v21 = vmul.f32 %v2159_v32, %v2650_v51  ;;  %v2715_v32 = vld [vmem:[%s3295_s1] ss:$0 sm:$0xff]  ;;  %v2764_v8 = vld [vmem:[%s3295_s1 + $0x6] ss:$0 sm:$0xff] }
  0x87   : > { %1578 = vst.msk [vmem:[%s2463_s27 + $0x48] sm:$0xff] %vm234_vm0, %v1546_v16  ;;  %v1618_v5 = vsel %vm234_vm0, %v1546_v16, 0.0  ;;  %v1793_v60 = vmul.f32 -1.442695, %v2687_v12  ;;  %v1249_v6 = vadd.f32 %v1217_v30, %v1148_v17  ;;  %v1452_v23 = vadd.f32 1.0, %v1868_v27 }
  0x88   : > { %v1619_v10 = vadd.f32 %v1618_v5, %v1617_v3  ;;  %v945_v18 = vadd.f32 %v913_v50, %v844_v42  ;;  %v642_v25 = vadd.f32 %v610_v63, %v541_v29  ;;  %v914_v31 = vmul.f32 %v2164_v33, %v2664_v40  ;;  %v2768_v63 = vld [vmem:[#allocation2 + $0xf8] sm:$0xff] }
  0x89   : > { %1873 = vpow2.f32 %v1793_v60  ;;  %v1288_v28 = vmul.f32 %v2289_v52, %v1249_v6  ;;  %v1017_v41 = vmul.f32 %v2169_v34, %v2703_v55  ;;  %v409_v44 = vmul.f32 %v2715_v32, %v2606_v20  ;;  %v2724_v34 = vld [vmem:[#allocation2 + $0xf2] sm:$0xff]  ;;  %v2736_v20 = vld [vmem:[%s3295_s1 + $0x2] ss:$0 sm:$0xff] }
  0x8a   : > { %1875 = vrcp.f32 %v1452_v23  ;;  %v1048_v56 = vadd.f32 %v1016_v37, %v945_v18  ;;  %v744_v24 = vadd.f32 %v712_v26, %v642_v25  ;;  %v1118_v33 = vmul.f32 %v2180_v38, %v2710_v1  ;;  %v2778_v29 = vld [vmem:[#allocation2 + $0xf9] sm:$0xff] }
  0x8b   : > { %v1870_v13 = vpop.eup %1869  ;;  %v2720_v48 = vadd.f32 %v2307_v14, %v1288_v28  ;;  %v510_v49 = vmul.f32 %v2729_v0, %v2613_v15  ;;  %v611_v58 = vmul.f32 %v2736_v20, %v2627_v53  ;;  %v1219_v30 = vmul.f32 %v2185_v39, %v2724_v34  ;;  %v2757_v39 = vld [vmem:[%s3295_s1 + $0x5] ss:$0 sm:$0xff]  ;;  %v2780_v26 = vld [vmem:[#allocation2 + $0xfa] sm:$0xff] }
  0x8c   : > { %v1872_v38 = vpop.eup %1871  ;;  %v1547_v3 = vmul.f32 %v1870_v13, %v2577_v46  ;;  %v1149_v62 = vadd.f32 %v1117_v57, %v1048_v56  ;;  %v845_v45 = vadd.f32 %v813_v21, %v744_v24  ;;  %v713_v53 = vmul.f32 %v2747_v9, %v2670_v35  ;;  %v2774_v57 = vld [vmem:[%s3295_s1 + $0x8] ss:$0 sm:$0xff] }
  0x8d   : > { %v1453_v4 = vadd.f32 1.0, %v1872_v38  ;;  %v1794_v43 = vmul.f32 -1.442695, %v2720_v48  ;;  %v542_v15 = vadd.f32 %v510_v49, %v409_v44  ;;  %v814_v37 = vmul.f32 %v2757_v39, %v2677_v2 }
  0x8e   : > { %1579 = vst.msk [vmem:[%s2463_s27 + $0x50] sm:$0xff] %vm234_vm0, %v1547_v3  ;;  %v1620_v46 = vsel %vm234_vm0, %v1547_v3, 0.0  ;;  %v1250_v61 = vadd.f32 %v1218_v22, %v1149_v62  ;;  %v946_v50 = vadd.f32 %v914_v31, %v845_v45  ;;  %v915_v54 = vmul.f32 %v2764_v8, %v2691_v47 }
  0x8f   : > { %v1621_v7 = vadd.f32 %v1620_v46, %v1619_v10  ;;  %1877 = vrcp.f32 %v1453_v4  ;;  %v643_v59 = vadd.f32 %v611_v58, %v542_v15  ;;  %v1018_v42 = vmul.f32 %v2774_v57, %v2768_v63  ;;  %v2794_v10 = vld [vmem:[%s3295_s1 + $0x9] ss:$0 sm:$0xff] }
  0x90   : > { %1879 = vpow2.f32 %v1794_v43  ;;  %v1289_v16 = vmul.f32 %v2289_v52, %v1250_v61  ;;  %v1049_v17 = vadd.f32 %v1017_v41, %v946_v50  ;;  %v410_v27 = vmul.f32 %v2715_v32, %v2637_v11  ;;  %v2801_v11 = vld [vmem:[%s3295_s1 + $0xa] ss:$0 sm:$0xff] }
  0x91   : > { %v745_v22 = vadd.f32 %v713_v53, %v643_v59  ;;  %v511_v5 = vmul.f32 %v2729_v0, %v2650_v51  ;;  %v612_v60 = vmul.f32 %v2736_v20, %v2664_v40  ;;  %v1119_v23 = vmul.f32 %v2794_v10, %v2778_v29  ;;  %v2828_v46 = vld [vmem:[#allocation2 + $0x109] sm:$0xff] }
  0x92   : > { %v2789_v6 = vadd.f32 %v2307_v14, %v1289_v16  ;;  %v1150_v21 = vadd.f32 %v1118_v33, %v1049_v17  ;;  %v1220_v51 = vmul.f32 %v2801_v11, %v2780_v26  ;;  %v714_v28 = vmul.f32 %v2747_v9, %v2703_v55  ;;  %v2812_v33 = vld [vmem:[#allocation2 + $0x108] sm:$0xff] }
  0x93   : > { %v1874_v40 = vpop.eup %1873  ;;  %v846_v18 = vadd.f32 %v814_v37, %v745_v22  ;;  %v543_v25 = vadd.f32 %v511_v5, %v410_v27  ;;  %v815_v31 = vmul.f32 %v2757_v39, %v2710_v1  ;;  %v916_v13 = vmul.f32 %v2764_v8, %v2724_v34 }
  0x94   : > { %v1876_v41 = vpop.eup %1875  ;;  %v1454_v56 = vadd.f32 1.0, %v1874_v40  ;;  %v1795_v24 = vmul.f32 -1.442695, %v2789_v6  ;;  %v1251_v44 = vadd.f32 %v1219_v30, %v1150_v21  ;;  %v1019_v3 = vmul.f32 %v2774_v57, %v2812_v33 }
  0x95   : > { %v1548_v49 = vmul.f32 %v1876_v41, %v2625_v19  ;;  %v947_v58 = vadd.f32 %v915_v54, %v846_v18  ;;  %v644_v38 = vadd.f32 %v612_v60, %v543_v25  ;;  %v411_v45 = vmul.f32 %v2715_v32, %v2670_v35 }
  0x96   : > { %1881 = vrcp.f32 %v1454_v56  ;;  %v1290_v62 = vmul.f32 %v2289_v52, %v1251_v44  ;;  %v512_v30 = vmul.f32 %v2729_v0, %v2677_v2  ;;  %v613_v35 = vmul.f32 %v2736_v20, %v2691_v47 }
  0x97   : > { %1580 = vst.msk [vmem:[%s2463_s27 + $0x58] sm:$0xff] %vm234_vm0, %v1548_v49  ;;  %v1622_v4 = vsel %vm234_vm0, %v1548_v49, 0.0  ;;  %1883 = vpow2.f32 %v1795_v24  ;;  %v1050_v19 = vadd.f32 %v1018_v42, %v947_v58  ;;  %v746_v43 = vadd.f32 %v714_v28, %v644_v38  ;;  %v2838_v42 = vld [vmem:[#allocation2 + $0x10a] sm:$0xff] }
  0x98   : > { %v1623_v15 = vadd.f32 %v1622_v4, %v1621_v7  ;;  %v2826_v53 = vadd.f32 %v2307_v14, %v1290_v62  ;;  %v544_v61 = vadd.f32 %v512_v30, %v411_v45  ;;  %v1120_v59 = vmul.f32 %v2794_v10, %v2828_v46  ;;  %v2861_v49 = vld [vmem:[#allocation2 + $0x111] sm:$0xff] }
  0x99   : > { %v1878_v50 = vpop.eup %1877  ;;  %v1151_v2 = vadd.f32 %v1119_v23, %v1050_v19  ;;  %v847_v37 = vadd.f32 %v815_v31, %v746_v43  ;;  %v715_v54 = vmul.f32 %v2747_v9, %v2768_v63  ;;  %v816_v47 = vmul.f32 %v2757_v39, %v2778_v29  ;;  %v2850_v31 = vld [vmem:[#allocation2 + $0x110] sm:$0xff] }
  0x9a   : > { %v1880_v7 = vpop.eup %1879  ;;  %v1549_v16 = vmul.f32 %v1878_v50, %v2648_v36  ;;  %v1796_v17 = vmul.f32 -1.442695, %v2826_v53  ;;  %v645_v22 = vadd.f32 %v613_v35, %v544_v61  ;;  %v1221_v21 = vmul.f32 %v2801_v11, %v2838_v42  ;;  %v2867_v62 = vld [vmem:[#allocation2 + $0x112] sm:$0xff] }
  0x9b   : > { %v1455_v27 = vadd.f32 1.0, %v1880_v7  ;;  %v1252_v5 = vadd.f32 %v1220_v51, %v1151_v2  ;;  %v948_v60 = vadd.f32 %v916_v13, %v847_v37  ;;  %v917_v40 = vmul.f32 %v2764_v8, %v2780_v26  ;;  %v2891_v7 = vld [vmem:[%s3297_s3] ss:$0 sm:$0xff] }
  0x9c   : > { %1581 = vst.msk [vmem:[%s2463_s27 + $0x60] sm:$0xff] %vm234_vm0, %v1549_v16  ;;  %v1624_v23 = vsel %vm234_vm0, %v1549_v16, 0.0  ;;  %1885 = vpow2.f32 %v1796_v17  ;;  %v747_v36 = vadd.f32 %v715_v54, %v645_v22  ;;  %v1020_v41 = vmul.f32 %v2774_v57, %v2850_v31  ;;  %v2896_v17 = vld [vmem:[#allocation2 + $0x120] sm:$0xff] }
  0x9d   : > { %v1625_v18 = vadd.f32 %v1624_v23, %v1623_v15  ;;  %1887 = vrcp.f32 %v1455_v27  ;;  %v1291_v25 = vmul.f32 %v2289_v52, %v1252_v5  ;;  %v1051_v28 = vadd.f32 %v1019_v3, %v948_v60  ;;  %v2898_v22 = vld [vmem:[#allocation2 + $0x121] sm:$0xff] }
  0x9e   : > { %v848_v51 = vadd.f32 %v816_v47, %v747_v36  ;;  %v412_v56 = vmul.f32 %v2715_v32, %v2703_v55  ;;  %v513_v24 = vmul.f32 %v2729_v0, %v2710_v1  ;;  %v614_v52 = vmul.f32 %v2736_v20, %v2724_v34 }
  0x9f   : > { %v2859_v44 = vadd.f32 %v2307_v14, %v1291_v25  ;;  %v1152_v13 = vadd.f32 %v1120_v59, %v1051_v28  ;;  %v1121_v3 = vmul.f32 %v2794_v10, %v2861_v49  ;;  %v716_v1 = vmul.f32 %v2747_v9, %v2812_v33  ;;  %v2911_v28 = vld [vmem:[#allocation2 + $0x122] sm:$0xff] }
  0xa0   : > { %v1882_v58 = vpop.eup %1881  ;;  %v949_v38 = vadd.f32 %v917_v40, %v848_v51  ;;  %v545_v55 = vadd.f32 %v513_v24, %v412_v56  ;;  %v1222_v34 = vmul.f32 %v2801_v11, %v2867_v62  ;;  %v817_v61 = vmul.f32 %v2757_v39, %v2828_v46 }
  0xa1   : > { %v1884_v14 = vpop.eup %1883  ;;  %v1550_v45 = vmul.f32 %v1882_v58, %v2687_v12  ;;  %v1797_v30 = vmul.f32 -1.442695, %v2859_v44  ;;  %v1253_v4 = vadd.f32 %v1221_v21, %v1152_v13  ;;  %v2883_v12 = vld [vmem:[%s3296_s2] ss:$0 sm:$0xff]  ;;  %v918_v2 = vmul.f32 %v2764_v8, %v2838_v42 }
  0xa2   : > { %v1456_v19 = vadd.f32 1.0, %v1884_v14  ;;  %v1052_v43 = vadd.f32 %v1020_v41, %v949_v38  ;;  %v646_v15 = vadd.f32 %v614_v52, %v545_v55  ;;  %v413_v47 = vmul.f32 %v2715_v32, %v2768_v63  ;;  %v2929_v14 = vld [vmem:[#allocation2 + $0x128] sm:$0xff] }
  0xa3   : > { %1582 = vst.msk [vmem:[%s2463_s27 + $0x68] sm:$0xff] %vm234_vm0, %v1550_v45  ;;  %v1626_v35 = vsel %vm234_vm0, %v1550_v45, 0.0  ;;  %1889 = vpow2.f32 %v1797_v30  ;;  %v1292_v50 = vmul.f32 %v2883_v12, %v1253_v4  ;;  %v514_v27 = vmul.f32 %v2729_v0, %v2778_v29 }
  0xa4   : > { %v1627_v37 = vadd.f32 %v1626_v35, %v1625_v18  ;;  %1891 = vrcp.f32 %v1456_v19  ;;  %v1153_v59 = vadd.f32 %v1121_v3, %v1052_v43  ;;  %v748_v54 = vadd.f32 %v716_v1, %v646_v15  ;;  %v2938_v43 = vld [vmem:[#allocation2 + $0x129] sm:$0xff] }
  0xa5   : > { %v2894_v16 = vadd.f32 %v2891_v7, %v1292_v50  ;;  %v615_v5 = vmul.f32 %v2736_v20, %v2780_v26  ;;  %v1021_v36 = vmul.f32 %v2774_v57, %v2896_v17  ;;  %v1122_v40 = vmul.f32 %v2794_v10, %v2898_v22 }
  0xa6   : > { %v1886_v60 = vpop.eup %1885  ;;  %v1254_v21 = vadd.f32 %v1222_v34, %v1153_v59  ;;  %v849_v23 = vadd.f32 %v817_v61, %v748_v54  ;;  %v546_v29 = vadd.f32 %v514_v27, %v413_v47  ;;  %v717_v26 = vmul.f32 %v2747_v9, %v2850_v31 }
  0xa7   : > { %v1888_v18 = vpop.eup %1887  ;;  %v1457_v25 = vadd.f32 1.0, %v1886_v60  ;;  %v1798_v63 = vmul.f32 -1.442695, %v2894_v16  ;;  %v1223_v24 = vmul.f32 %v2801_v11, %v2911_v28  ;;  %v818_v52 = vmul.f32 %v2757_v39, %v2861_v49 }
  0xa8   : > { %v1551_v51 = vmul.f32 %v1888_v18, %v2720_v48  ;;  %v1293_v41 = vmul.f32 %v2883_v12, %v1254_v21  ;;  %v950_v56 = vadd.f32 %v918_v2, %v849_v23  ;;  %v647_v13 = vadd.f32 %v615_v5, %v546_v29 }
  0xa9   : > { %1893 = vrcp.f32 %v1457_v25  ;;  %v919_v58 = vmul.f32 %v2764_v8, %v2867_v62  ;;  %v414_v45 = vmul.f32 %v2715_v32, %v2812_v33  ;;  %v515_v30 = vmul.f32 %v2729_v0, %v2828_v46  ;;  %v2944_v33 = vld [vmem:[#allocation2 + $0x12a] sm:$0xff]  ;;  %v2961_v25 = vld [vmem:[#allocation2 + $0x138] sm:$0xff] }
  0xaa   : > { %1583 = vst.msk [vmem:[%s2463_s27 + $0x70] sm:$0xff] %vm234_vm0, %v1551_v51  ;;  %v1628_v38 = vsel %vm234_vm0, %v1551_v51, 0.0  ;;  %1895 = vpow2.f32 %v1798_v63  ;;  %v2927_v48 = vadd.f32 %v2891_v7, %v1293_v41  ;;  %v1053_v3 = vadd.f32 %v1021_v36, %v950_v56  ;;  %v2970_v41 = vld [vmem:[#allocation2 + $0x139] sm:$0xff] }
  0xab   : > { %v1629_v55 = vadd.f32 %v1628_v38, %v1627_v37  ;;  %v749_v1 = vadd.f32 %v717_v26, %v647_v13  ;;  %v1022_v19 = vmul.f32 %v2774_v57, %v2929_v14  ;;  %v616_v15 = vmul.f32 %v2736_v20, %v2838_v42 }
  0xac   : > { %v1799_v4 = vmul.f32 -1.442695, %v2927_v48  ;;  %v1154_v34 = vadd.f32 %v1122_v40, %v1053_v3  ;;  %v1123_v50 = vmul.f32 %v2794_v10, %v2938_v43  ;;  %v547_v46 = vadd.f32 %v515_v30, %v414_v45 }
  0xad   : > { %v1890_v61 = vpop.eup %1889  ;;  %v850_v35 = vadd.f32 %v818_v52, %v749_v1  ;;  %v718_v2 = vmul.f32 %v2747_v9, %v2896_v17  ;;  %v1224_v47 = vmul.f32 %v2801_v11, %v2944_v33  ;;  %v819_v60 = vmul.f32 %v2757_v39, %v2898_v22 }
  0xae   : > { %v1892_v37 = vpop.eup %1891  ;;  %v1458_v59 = vadd.f32 1.0, %v1890_v61  ;;  %1897 = vpow2.f32 %v1799_v4  ;;  %v1255_v54 = vadd.f32 %v1223_v24, %v1154_v34  ;;  %v648_v5 = vadd.f32 %v616_v15, %v547_v46 }
  0xaf   : > { %v1552_v42 = vmul.f32 %v1892_v37, %v2789_v6  ;;  %v951_v27 = vadd.f32 %v919_v58, %v850_v35  ;;  %v920_v23 = vmul.f32 %v2764_v8, %v2911_v28  ;;  %v415_v36 = vmul.f32 %v2715_v32, %v2850_v31 }
  0xb0   : > { %1899 = vrcp.f32 %v1458_v59  ;;  %v1294_v21 = vmul.f32 %v2883_v12, %v1255_v54  ;;  %v750_v6 = vadd.f32 %v718_v2, %v648_v5  ;;  %v516_v63 = vmul.f32 %v2729_v0, %v2861_v49  ;;  %v2976_v49 = vld [vmem:[#allocation2 + $0x13a] sm:$0xff] }
  0xb1   : > { %1584 = vst.msk [vmem:[%s2463_s27 + $0x78] sm:$0xff] %vm234_vm0, %v1552_v42  ;;  %v1630_v40 = vsel %vm234_vm0, %v1552_v42, 0.0  ;;  %v1054_v18 = vadd.f32 %v1022_v19, %v951_v27  ;;  %v1023_v51 = vmul.f32 %v2774_v57, %v2961_v25  ;;  %v617_v31 = vmul.f32 %v2736_v20, %v2867_v62  ;;  %v3003_v5 = vld [vmem:[#allocation2 + $0x140] sm:$0xff] }
  0xb2   : > { %v1631_v29 = vadd.f32 %v1630_v40, %v1629_v55  ;;  %v2966_v26 = vadd.f32 %v2891_v7, %v1294_v21  ;;  %v851_v13 = vadd.f32 %v819_v60, %v750_v6  ;;  %v1124_v52 = vmul.f32 %v2794_v10, %v2970_v41 }
  0xb3   : > { %v1894_v56 = vpop.eup %1893  ;;  %v1155_v24 = vadd.f32 %v1123_v50, %v1054_v18  ;;  %v548_v58 = vadd.f32 %v516_v63, %v415_v36  ;;  %v1225_v1 = vmul.f32 %v2801_v11, %v2976_v49  ;;  %v719_v62 = vmul.f32 %v2747_v9, %v2929_v14  ;;  %v3013_v18 = vld [vmem:[#allocation2 + $0x141] sm:$0xff] }
  0xb4   : > { %v1896_v38 = vpop.eup %1895  ;;  %v1553_v3 = vmul.f32 %v1894_v56, %v2826_v53  ;;  %v1800_v55 = vmul.f32 -1.442695, %v2966_v26  ;;  %v952_v4 = vadd.f32 %v920_v23, %v851_v13  ;;  %v820_v53 = vmul.f32 %v2757_v39, %v2938_v43 }
  0xb5   : > { %v1459_v45 = vadd.f32 1.0, %v1896_v38  ;;  %v1256_v30 = vadd.f32 %v1224_v47, %v1155_v24  ;;  %v649_v34 = vadd.f32 %v617_v31, %v548_v58  ;;  %v921_v15 = vmul.f32 %v2764_v8, %v2944_v33 }
  0xb6   : > { %1585 = vst.msk [vmem:[%s2463_s27 + $0x80] sm:$0xff] %vm234_vm0, %v1553_v3  ;;  %v1632_v19 = vsel %vm234_vm0, %v1553_v3, 0.0  ;;  %1901 = vpow2.f32 %v1800_v55  ;;  %v1055_v50 = vadd.f32 %v1023_v51, %v952_v4  ;;  %v416_v37 = vmul.f32 %v2715_v32, %v2896_v17  ;;  %v3034_v3 = vld [vmem:[#allocation2 + $0x150] sm:$0xff] }
  0xb7   : > { %v2991_v61 = vadd.f32 %v1632_v19, %v1631_v29  ;;  %1903 = vrcp.f32 %v1459_v45  ;;  %v1295_v35 = vmul.f32 %v2883_v12, %v1256_v30  ;;  %v751_v2 = vadd.f32 %v719_v62, %v649_v34  ;;  %v3017_v29 = vld [vmem:[#allocation2 + $0x142] sm:$0xff] }
  0xb8   : > { %v1898_v46 = vpop.eup %1897  ;;  %v517_v59 = vmul.f32 %v2729_v0, %v2898_v22  ;;  %v618_v54 = vmul.f32 %v2736_v20, %v2911_v28  ;;  %v1156_v27 = vadd.f32 %v1124_v52, %v1055_v50  ;;  %v1024_v23 = vmul.f32 %v2774_v57, %v3003_v5 }
  0xb9   : > { %v1460_v47 = vadd.f32 1.0, %v1898_v46  ;;  %v3001_v42 = vadd.f32 %v2891_v7, %v1295_v35  ;;  %v852_v21 = vadd.f32 %v820_v53, %v751_v2  ;;  %v720_v22 = vmul.f32 %v2747_v9, %v2961_v25  ;;  %v3043_v53 = vld [vmem:[#allocation2 + $0x151] sm:$0xff] }
  0xba   : > { %v1900_v60 = vpop.eup %1899  ;;  %v549_v17 = vadd.f32 %v517_v59, %v416_v37  ;;  %v1257_v40 = vadd.f32 %v1225_v1, %v1156_v27  ;;  %v1125_v63 = vmul.f32 %v2794_v10, %v3013_v18  ;;  %v821_v31 = vmul.f32 %v2757_v39, %v2970_v41  ;;  %v3052_v2 = vld [vmem:[#allocation2 + $0x152] sm:$0xff] }
  0xbb   : > { %v3010_v36 = vmul.f32 %v1900_v60, %v2859_v44  ;;  %1905 = vrcp.f32 %v1460_v47  ;;  %v1801_v28 = vmul.f32 -1.442695, %v3001_v42  ;;  %v953_v6 = vadd.f32 %v921_v15, %v852_v21 }
  0xbc   : > { %v650_v51 = vadd.f32 %v618_v54, %v549_v17  ;;  %v1296_v44 = vmul.f32 %v2883_v12, %v1257_v40  ;;  %v1226_v56 = vmul.f32 %v2801_v11, %v3017_v29  ;;  %v922_v52 = vmul.f32 %v2764_v8, %v2976_v49 }
  0xbd   : > { %1586 = vst.msk [vmem:[%s2463_s27 + $0x88] sm:$0xff] %vm234_vm0, %v3010_v36  ;;  %1907 = vpow2.f32 %v1801_v28  ;;  %v1056_v24 = vadd.f32 %v1024_v23, %v953_v6  ;;  %v417_v58 = vmul.f32 %v2715_v32, %v2929_v14  ;;  %v518_v55 = vmul.f32 %v2729_v0, %v2938_v43  ;;  %v3076_v6 = vld [vmem:[#allocation2 + $0x158] sm:$0xff] }
  0xbe   : > { %v752_v13 = vadd.f32 %v720_v22, %v650_v51  ;;  %v3032_v38 = vadd.f32 %v2891_v7, %v1296_v44  ;;  %v619_v1 = vmul.f32 %v2736_v20, %v2944_v33  ;;  %v1025_v4 = vmul.f32 %v2774_v57, %v3034_v3 }
  0xbf   : > { %v1157_v45 = vadd.f32 %v1125_v63, %v1056_v24  ;;  %v550_v15 = vadd.f32 %v518_v55, %v417_v58  ;;  %v721_v43 = vmul.f32 %v2747_v9, %v3003_v5  ;;  %v1126_v46 = vmul.f32 %v2794_v10, %v3043_v53  ;;  %v3086_v24 = vld [vmem:[#allocation2 + $0x159] sm:$0xff] }
  0xc0   : > { %v1902_v62 = vpop.eup %1901  ;;  %v853_v30 = vadd.f32 %v821_v31, %v752_v13  ;;  %v1802_v19 = vmul.f32 -1.442695, %v3032_v38  ;;  %v822_v59 = vmul.f32 %v2757_v39, %v3013_v18  ;;  %v418_v54 = vmul.f32 %v2715_v32, %v2961_v25  ;;  %v3090_v58 = vld [vmem:[#allocation2 + $0x15a] sm:$0xff] }
  0xc1   : > { %v1904_v34 = vpop.eup %1903  ;;  %v1461_v14 = vadd.f32 1.0, %v1902_v62  ;;  %v1258_v33 = vadd.f32 %v1226_v56, %v1157_v45  ;;  %v651_v37 = vadd.f32 %v619_v1, %v550_v15  ;;  %v1227_v27 = vmul.f32 %v2801_v11, %v3052_v2  ;;  %v3104_v15 = vld [vmem:[#allocation2 + $0x168] sm:$0xff] }
  0xc2   : > { %v3048_v35 = vmul.f32 %v1904_v34, %v2894_v16  ;;  %v954_v50 = vadd.f32 %v922_v52, %v853_v30  ;;  %v923_v23 = vmul.f32 %v2764_v8, %v3017_v29  ;;  %v519_v17 = vmul.f32 %v2729_v0, %v2970_v41 }
  0xc3   : > { %1909 = vrcp.f32 %v1461_v14  ;;  %v1297_v16 = vmul.f32 %v2883_v12, %v1258_v33  ;;  %v753_v21 = vadd.f32 %v721_v43, %v651_v37  ;;  %v620_v25 = vmul.f32 %v2736_v20, %v2976_v49 }
  0xc4   : > { %1587 = vst.msk [vmem:[%s2463_s27 + $0x90] sm:$0xff] %vm234_vm0, %v3048_v35  ;;  %1911 = vpow2.f32 %v1802_v19  ;;  %v1057_v47 = vadd.f32 %v1025_v4, %v954_v50  ;;  %v1026_v31 = vmul.f32 %v2774_v57, %v3076_v6  ;;  %v551_v44 = vadd.f32 %v519_v17, %v418_v54  ;;  %v3124_v17 = vld [vmem:[#allocation2 + $0x16a] sm:$0xff] }
  0xc5   : > { %v1906_v60 = vpop.eup %1905  ;;  %v3074_v28 = vadd.f32 %v2891_v7, %v1297_v16  ;;  %v854_v51 = vadd.f32 %v822_v59, %v753_v21  ;;  %v722_v41 = vmul.f32 %v2747_v9, %v3034_v3  ;;  %v1127_v52 = vmul.f32 %v2794_v10, %v3086_v24 }
  0xc6   : > { %v3071_v22 = vmul.f32 %v1906_v60, %v2927_v48  ;;  %v1158_v40 = vadd.f32 %v1126_v46, %v1057_v47  ;;  %v652_v55 = vadd.f32 %v620_v25, %v551_v44  ;;  %v823_v1 = vmul.f32 %v2757_v39, %v3043_v53 }
  0xc7   : > { %v1908_v63 = vpop.eup %1907  ;;  %v1803_v49 = vmul.f32 -1.442695, %v3074_v28  ;;  %v955_v13 = vadd.f32 %v923_v23, %v854_v51  ;;  %v1228_v45 = vmul.f32 %v2801_v11, %v3090_v58  ;;  %v924_v30 = vmul.f32 %v2764_v8, %v3052_v2 }
  0xc8   : > { %1588 = vst.msk [vmem:[%s2463_s27 + $0x98] sm:$0xff] %vm234_vm0, %v3071_v22  ;;  %v1462_v48 = vadd.f32 1.0, %v1908_v63  ;;  %v1259_v56 = vadd.f32 %v1227_v27, %v1158_v40  ;;  %v754_v34 = vadd.f32 %v722_v41, %v652_v55  ;;  %v419_v14 = vmul.f32 %v2715_v32, %v3003_v5 }
  0xc9   : > { %v1058_v4 = vadd.f32 %v1026_v31, %v955_v13  ;;  %v520_v43 = vmul.f32 %v2729_v0, %v3013_v18  ;;  %v621_v33 = vmul.f32 %v2736_v20, %v3017_v29  ;;  %v1634_v46 = vsel %vm234_vm0, %v3010_v36, 0.0  ;;  %v3118_v18 = vld [vmem:[#allocation2 + $0x169] sm:$0xff] }
  0xca   : > { %1913 = vrcp.f32 %v1462_v48  ;;  %v1298_v62 = vmul.f32 %v2883_v12, %v1259_v56  ;;  %v855_v59 = vadd.f32 %v823_v1, %v754_v34  ;;  %v1027_v5 = vmul.f32 %v2774_v57, %v3104_v15  ;;  %v3148_v1 = vld [vmem:[#allocation2 + $0x170] sm:$0xff] }
  0xcb   : > { %1915 = vpow2.f32 %v1803_v49  ;;  %v1159_v37 = vadd.f32 %v1127_v52, %v1058_v4  ;;  %v552_v27 = vadd.f32 %v520_v43, %v419_v14  ;;  %v723_v29 = vmul.f32 %v2747_v9, %v3076_v6 }
  0xcc   : > { %v3102_v19 = vadd.f32 %v2891_v7, %v1298_v62  ;;  %v956_v36 = vadd.f32 %v924_v30, %v855_v59  ;;  %v1128_v23 = vmul.f32 %v2794_v10, %v3118_v18  ;;  %v824_v40 = vmul.f32 %v2757_v39, %v3086_v24 }
  0xcd   : > { %v1910_v50 = vpop.eup %1909  ;;  %v1260_v21 = vadd.f32 %v1228_v45, %v1159_v37  ;;  %v653_v25 = vadd.f32 %v621_v33, %v552_v27  ;;  %v925_v31 = vmul.f32 %v2764_v8, %v3090_v58  ;;  %v420_v41 = vmul.f32 %v2715_v32, %v3034_v3  ;;  %v3152_v45 = vld [vmem:[#allocation2 + $0x171] sm:$0xff] }
  0xce   : > { %v1912_v54 = vpop.eup %1911  ;;  %v3115_v16 = vmul.f32 %v1910_v50, %v2966_v26  ;;  %v1804_v47 = vmul.f32 -1.442695, %v3102_v19  ;;  %v1229_v26 = vmul.f32 %v2801_v11, %v3124_v17  ;;  %v1059_v51 = vadd.f32 %v1027_v5, %v956_v36  ;;  %v3162_v50 = vld [vmem:[#allocation2 + $0x172] sm:$0xff]  ;;  %v991_v5 = vld [vmem:[#allocation2 + $0x180] sm:$0xff] }
  0xcf   : > { %v1463_v60 = vadd.f32 1.0, %v1912_v54  ;;  %v1299_v63 = vmul.f32 %v2883_v12, %v1260_v21  ;;  %v755_v44 = vadd.f32 %v723_v29, %v653_v25  ;;  %v521_v48 = vmul.f32 %v2729_v0, %v3043_v53  ;;  %v1093_v36 = vld [vmem:[#allocation2 + $0x181] sm:$0xff] }
  0xd0   : > { %1589 = vst.msk [vmem:[%s2463_s27 + $0xa0] sm:$0xff] %vm234_vm0, %v3115_v16  ;;  %1917 = vpow2.f32 %v1804_v47  ;;  %v622_v49 = vmul.f32 %v2736_v20, %v3052_v2  ;;  %v1635_v56 = vadd.f32 %v1634_v46, %v2991_v61  ;;  %v1636_v13 = vsel %vm234_vm0, %v3048_v35, 0.0 }
  0xd1   : > { %1919 = vrcp.f32 %v1463_v60  ;;  %v3146_v52 = vadd.f32 %v2891_v7, %v1299_v63  ;;  %v1160_v55 = vadd.f32 %v1128_v23, %v1059_v51  ;;  %v856_v3 = vadd.f32 %v824_v40, %v755_v44 }
  0xd2   : > { %v1028_v53 = vmul.f32 %v2774_v57, %v3148_v1  ;;  %v553_v2 = vadd.f32 %v521_v48, %v420_v41  ;;  %v724_v61 = vmul.f32 %v2747_v9, %v3104_v15  ;;  %v1129_v14 = vmul.f32 %v2794_v10, %v3152_v45  ;;  %v1194_v48 = vld [vmem:[#allocation2 + $0x182] sm:$0xff] }
  0xd3   : > { %v1805_v4 = vmul.f32 -1.442695, %v3146_v52  ;;  %v1261_v34 = vadd.f32 %v1229_v26, %v1160_v55  ;;  %v957_v33 = vadd.f32 %v925_v31, %v856_v3  ;;  %v825_v37 = vmul.f32 %v2757_v39, %v3118_v18  ;;  %v992_v3 = vld [vmem:[#allocation2 + $0x188] sm:$0xff] }
  0xd4   : > { %v1914_v62 = vpop.eup %1913  ;;  %v654_v46 = vadd.f32 %v622_v49, %v553_v2  ;;  %v1230_v59 = vmul.f32 %v2801_v11, %v3162_v50  ;;  %v421_v54 = vmul.f32 %v2715_v32, %v3076_v6  ;;  %v926_v29 = vmul.f32 %v2764_v8, %v3124_v17 }
  0xd5   : > { %v1916_v30 = vpop.eup %1915  ;;  %v3157_v35 = vmul.f32 %v1914_v62, %v3001_v42  ;;  %1921 = vpow2.f32 %v1805_v4  ;;  %v1300_v42 = vmul.f32 %v2883_v12, %v1261_v34  ;;  %v1060_v47 = vadd.f32 %v1028_v53, %v957_v33 }
  0xd6   : > { %v1464_v43 = vadd.f32 1.0, %v1916_v30  ;;  %v756_v27 = vadd.f32 %v724_v61, %v654_v46  ;;  %v1637_v60 = vadd.f32 %v1636_v13, %v1635_v56  ;;  %v522_v23 = vmul.f32 %v2729_v0, %v3086_v24  ;;  %v1094_v30 = vld [vmem:[#allocation2 + $0x189] sm:$0xff] }
  0xd7   : > { %1590 = vst.msk [vmem:[%s2463_s27 + $0xa8] sm:$0xff] %vm234_vm0, %v3157_v35  ;;  %v3177_v21 = vadd.f32 %v2891_v7, %v1300_v42  ;;  %v623_v26 = vmul.f32 %v2736_v20, %v3090_v58  ;;  %v1638_v6 = vsel %vm234_vm0, %v3071_v22, 0.0  ;;  %v1161_v40 = vadd.f32 %v1129_v14, %v1060_v47  ;;  %v1195_v14 = vld [vmem:[#allocation2 + $0x18a] sm:$0xff] }
  0xd8   : > { %1923 = vrcp.f32 %v1464_v43  ;;  %v857_v63 = vadd.f32 %v825_v37, %v756_v27  ;;  %v1029_v51 = vmul.f32 %v2774_v57, %v991_v5  ;;  %v554_v49 = vadd.f32 %v522_v23, %v421_v54 }
  0xd9   : > { %v1806_v41 = vmul.f32 -1.442695, %v3177_v21  ;;  %v725_v24 = vmul.f32 %v2747_v9, %v3148_v1  ;;  %v1262_v56 = vadd.f32 %v1230_v59, %v1161_v40  ;;  %v1130_v22 = vmul.f32 %v2794_v10, %v1093_v36 }
  0xda   : > { %v1918_v25 = vpop.eup %1917  ;;  %v958_v13 = vadd.f32 %v926_v29, %v857_v63  ;;  %v655_v55 = vadd.f32 %v623_v26, %v554_v49  ;;  %v826_v62 = vmul.f32 %v2757_v39, %v3152_v45  ;;  %v422_v53 = vmul.f32 %v2715_v32, %v3104_v15 }
  0xdb   : > { %v1920_v31 = vpop.eup %1919  ;;  %v1465_v44 = vadd.f32 1.0, %v1918_v25  ;;  %v1231_v61 = vmul.f32 %v2801_v11, %v1194_v48  ;;  %v927_v34 = vmul.f32 %v2764_v8, %v3162_v50  ;;  %v523_v43 = vmul.f32 %v2729_v0, %v3118_v18 }
  0xdc   : > { %v3190_v58 = vmul.f32 %v1920_v31, %v3032_v38  ;;  %v1301_v38 = vmul.f32 %v2883_v12, %v1262_v56  ;;  %v1061_v2 = vadd.f32 %v1029_v51, %v958_v13  ;;  %v757_v4 = vadd.f32 %v725_v24, %v655_v55  ;;  %v993_v31 = vld [vmem:[#allocation2 + $0x198] sm:$0xff] }
  0xdd   : > { %1925 = vrcp.f32 %v1465_v44  ;;  %v624_v15 = vmul.f32 %v2736_v20, %v3124_v17  ;;  %v1639_v33 = vadd.f32 %v1638_v6, %v1637_v60  ;;  %v1030_v42 = vmul.f32 %v2774_v57, %v992_v3  ;;  %v1095_v56 = vld [vmem:[#allocation2 + $0x199] sm:$0xff] }
  0xde   : > { %1591 = vst.msk [vmem:[%s2463_s27 + $0xb0] sm:$0xff] %vm234_vm0, %v3190_v58  ;;  %1927 = vpow2.f32 %v1806_v41  ;;  %v3209_v46 = vadd.f32 %v2891_v7, %v1301_v38  ;;  %v1162_v37 = vadd.f32 %v1130_v22, %v1061_v2  ;;  %v858_v54 = vadd.f32 %v826_v62, %v757_v4 }
  0xdf   : > { %v1922_v59 = vpop.eup %1921  ;;  %v1131_v47 = vmul.f32 %v2794_v10, %v1094_v30  ;;  %v555_v27 = vadd.f32 %v523_v43, %v422_v53  ;;  %v726_v29 = vmul.f32 %v2747_v9, %v991_v5  ;;  %v1232_v60 = vmul.f32 %v2801_v11, %v1195_v14  ;;  %v1196_v53 = vld [vmem:[#allocation2 + $0x19a] sm:$0xff] }
  0xe0   : > { %v1466_v18 = vadd.f32 1.0, %v1922_v59  ;;  %v1807_v26 = vmul.f32 -1.442695, %v3209_v46  ;;  %v1263_v17 = vadd.f32 %v1231_v61, %v1162_v37  ;;  %v959_v6 = vadd.f32 %v927_v34, %v858_v54  ;;  %v994_v34 = vld [vmem:[#allocation2 + $0x1a0] sm:$0xff] }
  0xe1   : > { %v656_v40 = vadd.f32 %v624_v15, %v555_v27  ;;  %v827_v63 = vmul.f32 %v2757_v39, %v1093_v36  ;;  %v423_v5 = vmul.f32 %v2715_v32, %v3148_v1  ;;  %v524_v44 = vmul.f32 %v2729_v0, %v3152_v45  ;;  %v1197_v54 = vld [vmem:[#allocation2 + $0x1a2] sm:$0xff] }
  0xe2   : > { %v1924_v23 = vpop.eup %1923  ;;  %1929 = vrcp.f32 %v1466_v18  ;;  %v1302_v51 = vmul.f32 %v2883_v12, %v1263_v17  ;;  %v928_v49 = vmul.f32 %v2764_v8, %v1194_v48  ;;  %v1640_v36 = vsel %vm234_vm0, %v3115_v16, 0.0 }
  0xe3   : > { %v3217_v25 = vmul.f32 %v1924_v23, %v3074_v28  ;;  %1931 = vpow2.f32 %v1807_v26  ;;  %v1062_v28 = vadd.f32 %v1030_v42, %v959_v6  ;;  %v758_v41 = vadd.f32 %v726_v29, %v656_v40 }
  0xe4   : > { %v3232_v24 = vadd.f32 %v2891_v7, %v1302_v51  ;;  %v556_v13 = vadd.f32 %v524_v44, %v423_v5  ;;  %v625_v32 = vmul.f32 %v2736_v20, %v3162_v50  ;;  %v1031_v22 = vmul.f32 %v2774_v57, %v993_v31 }
  0xe5   : > { %1592 = vst.msk [vmem:[%s2463_s27 + $0xb8] sm:$0xff] %vm234_vm0, %v3217_v25  ;;  %v1163_v1 = vadd.f32 %v1131_v47, %v1062_v28  ;;  %v859_v45 = vadd.f32 %v827_v63, %v758_v41  ;;  %v727_v55 = vmul.f32 %v2747_v9, %v992_v3  ;;  %v828_v2 = vmul.f32 %v2757_v39, %v1094_v30  ;;  %v1096_v39 = vld [vmem:[#allocation2 + $0x1a1] sm:$0xff] }
  0xe6   : > { %v1808_v16 = vmul.f32 -1.442695, %v3232_v24  ;;  %v657_v38 = vadd.f32 %v625_v32, %v556_v13  ;;  %v1132_v50 = vmul.f32 %v2794_v10, %v1095_v56  ;;  %v1641_v43 = vadd.f32 %v1640_v36, %v1639_v33 }
  0xe7   : > { %v1926_v0 = vpop.eup %1925  ;;  %v1264_v4 = vadd.f32 %v1232_v60, %v1163_v1  ;;  %v960_v20 = vadd.f32 %v928_v49, %v859_v45  ;;  %v929_v3 = vmul.f32 %v2764_v8, %v1195_v14  ;;  %v1233_v37 = vmul.f32 %v2801_v11, %v1196_v53 }
  0xe8   : > { %v1928_v48 = vpop.eup %1927  ;;  %v1561_v62 = vmul.f32 %v1926_v0, %v3102_v19  ;;  %1933 = vpow2.f32 %v1808_v16  ;;  %v759_v9 = vadd.f32 %v727_v55, %v657_v38  ;;  %v1032_v42 = vmul.f32 %v2774_v57, %v994_v34 }
  0xe9   : > { %v1467_v61 = vadd.f32 1.0, %v1928_v48  ;;  %v1303_v19 = vmul.f32 %v2883_v12, %v1264_v4  ;;  %v1063_v15 = vadd.f32 %v1031_v22, %v960_v20  ;;  %v1642_v27 = vsel %vm234_vm0, %v3157_v35, 0.0 }
  0xea   : > { %1593 = vst.msk [vmem:[%s2463_s27 + $0xc0] sm:$0xff] %vm234_vm0, %v1561_v62  ;;  %v860_v30 = vadd.f32 %v828_v2, %v759_v9  ;;  %v1133_v14 = vmul.f32 %v2794_v10, %v1096_v39  ;;  %v1643_v23 = vadd.f32 %v1642_v27, %v1641_v43  ;;  %v1234_v6 = vmul.f32 %v2801_v11, %v1197_v54 }
  0xeb   : > { %1935 = vrcp.f32 %v1467_v61  ;;  %v1342_v59 = vadd.f32 %v2891_v7, %v1303_v19  ;;  %v1164_v33 = vadd.f32 %v1132_v50, %v1063_v15  ;;  %v1644_v35 = vsel %vm234_vm0, %v3190_v58, 0.0 }
  0xec   : > { %v1930_v47 = vpop.eup %1929  ;;  %v961_v8 = vadd.f32 %v929_v3, %v860_v30  ;;  %v1645_v63 = vadd.f32 %v1644_v35, %v1643_v23  ;;  %v1646_v11 = vsel %vm234_vm0, %v3217_v25, 0.0  ;;  %v1648_v56 = vsel %vm234_vm0, %v1561_v62, 0.0 }
  0xed   : > { %v1932_v29 = vpop.eup %1931  ;;  %v1562_v18 = vmul.f32 %v1930_v47, %v3146_v52  ;;  %v1809_v26 = vmul.f32 -1.442695, %v1342_v59  ;;  %v1265_v17 = vadd.f32 %v1233_v37, %v1164_v33 }
  0xee   : > { %v1468_v60 = vadd.f32 1.0, %v1932_v29  ;;  %v1064_v57 = vadd.f32 %v1032_v42, %v961_v8  ;;  %v1647_v36 = vadd.f32 %v1646_v11, %v1645_v63 }
  0xef   : > { %1594 = vst.msk [vmem:[%s2463_s27 + $0xc8] sm:$0xff] %vm234_vm0, %v1562_v18  ;;  %1937 = vpow2.f32 %v1809_v26  ;;  %v1304_v40 = vmul.f32 %v2883_v12, %v1265_v17 }
  0xf0   : > { %1939 = vrcp.f32 %v1468_v60  ;;  %v1165_v10 = vadd.f32 %v1133_v14, %v1064_v57  ;;  %v1649_v0 = vadd.f32 %v1648_v56, %v1647_v36 }
  0xf1   : > { %v1343_v52 = vadd.f32 %v2891_v7, %v1304_v40 }
  0xf2   : > { %v1934_v51 = vpop.eup %1933  ;;  %v1266_v31 = vadd.f32 %v1234_v6, %v1165_v10 }
  0xf3   : > { %v1469_v44 = vadd.f32 1.0, %v1934_v51  ;;  %v1810_v28 = vmul.f32 -1.442695, %v1343_v52 }
  0xf4   : > { %v1305_v49 = vmul.f32 %v2883_v12, %v1266_v31  ;;  %v1650_v12 = vsel %vm234_vm0, %v1562_v18, 0.0 }
  0xf5   : > { %v1936_v5 = vpop.eup %1935  ;;  %1941 = vrcp.f32 %v1469_v44  ;;  %v1651_v45 = vadd.f32 %v1650_v12, %v1649_v0 }
  0xf6   : > { %v1563_v41 = vmul.f32 %v1936_v5, %v3177_v21  ;;  %1943 = vpow2.f32 %v1810_v28  ;;  %v1344_v58 = vadd.f32 %v2891_v7, %v1305_v49 }
  0xf8   : > { %1595 = vst.msk [vmem:[%s2463_s27 + $0xd0] sm:$0xff] %vm234_vm0, %v1563_v41  ;;  %v1811_v13 = vmul.f32 -1.442695, %v1344_v58  ;;  %v1652_v7 = vsel %vm234_vm0, %v1563_v41, 0.0 }
  0xf9   : > { %v1938_v32 = vpop.eup %1937  ;;  %v1653_v62 = vadd.f32 %v1652_v7, %v1651_v45 }
  0xfa   : > { %v1940_v1 = vpop.eup %1939  ;;  %v1470_v25 = vadd.f32 1.0, %v1938_v32  ;;  %1945 = vpow2.f32 %v1811_v13 }
  0xfb   : > { %v1564_v21 = vmul.f32 %v1940_v1, %v3209_v46 }
  0xfc   : > { %1947 = vrcp.f32 %v1470_v25 }
  0xfd   : > { %1596 = vst.msk [vmem:[%s2463_s27 + $0xd8] sm:$0xff] %vm234_vm0, %v1564_v21  ;;  %v1654_v53 = vsel %vm234_vm0, %v1564_v21, 0.0 }
  0xfe   : > { %v1655_v38 = vadd.f32 %v1654_v53, %v1653_v62 }
  0xff   : > { %v1942_v22 = vpop.eup %1941 }
 0x100   : > { %v1944_v55 = vpop.eup %1943  ;;  %v1565_v48 = vmul.f32 %v1942_v22, %v3232_v24 }
 0x101   : > { %v1471_v16 = vadd.f32 1.0, %v1944_v55 }
 0x102   : > { %1597 = vst.msk [vmem:[%s2463_s27 + $0xe0] sm:$0xff] %vm234_vm0, %v1565_v48  ;;  %v1656_v20 = vsel %vm234_vm0, %v1565_v48, 0.0 }
 0x103   : > { %1949 = vrcp.f32 %v1471_v16  ;;  %v1657_v50 = vadd.f32 %v1656_v20, %v1655_v38 }
 0x104   : > { %v1946_v46 = vpop.eup %1945 }
 0x105   : > { %v1472_v2 = vadd.f32 1.0, %v1946_v46 }
 0x106   : > { %v1948_v61 = vpop.eup %1947 }
 0x107   : > { %v1566_v4 = vmul.f32 %v1948_v61, %v1342_v59  ;;  %1951 = vrcp.f32 %v1472_v2 }
 0x109   : > { %1598 = vst.msk [vmem:[%s2463_s27 + $0xe8] sm:$0xff] %vm234_vm0, %v1566_v4  ;;  %v1658_v24 = vsel %vm234_vm0, %v1566_v4, 0.0 }
 0x10a   : > { %v1659_v43 = vadd.f32 %v1658_v24, %v1657_v50 }
 0x10d   : > { %v1950_v34 = vpop.eup %1949 }
 0x10e   : > { %v1567_v9 = vmul.f32 %v1950_v34, %v1343_v52 }
 0x110   : > { %1599 = vst.msk [vmem:[%s2463_s27 + $0xf0] sm:$0xff] %vm234_vm0, %v1567_v9  ;;  %v1660_v3 = vsel %vm234_vm0, %v1567_v9, 0.0 }
 0x111   : > { %v1952_v19 = vpop.eup %1951  ;;  %v1661_v15 = vadd.f32 %v1660_v3, %v1659_v43 }
 0x112   : > { %v1568_v37 = vmul.f32 %v1952_v19, %v1344_v58 }
 0x114   : > { %1600 = vst.msk [vmem:[%s2463_s27 + $0xf8] sm:$0xff] %vm234_vm0, %v1568_v37  ;;  %v1662_v39 = vsel %vm234_vm0, %v1568_v37, 0.0 }
 0x115   : > { %v1663_v30 = vadd.f32 %v1662_v39, %v1661_v15 }
 0x117   : > { %v1664_v42 = vrot.slane %v1663_v30, 4 }
 0x119   : > { %v1665_v59 = vadd.f32 %v1664_v42, %v1663_v30 }
 0x11b   : > { %v1666_v33 = vrot.slane %v1665_v59, 2 }
 0x11d   : > { %v1667_v54 = vadd.f32 %v1666_v33, %v1665_v59 }
 0x11f   : > { %v1668_v47 = vrot.slane %v1667_v54, 1 }
 0x121   : > { %v1669_v27 = vadd.f32 %v1668_v47, %v1667_v54 }
 0x123   : > { %v1671_v8 = vmul.f32 0.00390625, %v1669_v27 }
 0x125   : > { %1673 = vst.msk [vmem:[%s233_s29] sm:$0x1] %vm1672_vm2, %v1671_v8 }
 0x126 PF: > { %s16_s18 = sadd.s32 1, %s1970_s18  }
 0x127   : > { %p13_p4 = scmp.ge.s32.totalorder %s16_s18, 4  }
 0x129   :  { %15 = sbr.rel (!%p13_p4) target bundleno = 1 (0x1), region = 82 }

</bundles_post_ra>
